<compile_context>
chip_gen: v6e
topology: v6e:2x2x1
jax: 0.10.0
libtpu: 0.0.40
codegen_flags: <defaults>
</compile_context>

<pallas_src>
import jax
import jax.numpy as jnp
from jax.experimental import pallas as pl
from jax.experimental.pallas import tpu as pltpu


# ----------------------------------------------------------------------------
# Pallas kernels
# ----------------------------------------------------------------------------
def _make_conv_mm_kernel(relu):
    """Transposed conv-as-matmul: o(Cout, TM) = W(Cout, K) @ colsT(K, TM) + b.

    The big M = N*OH*OW dimension is on lanes -> full-width vector stores.
    Operands are cast to bf16 in-kernel; accumulation stays f32 on the MXU."""

    def kernel(w_ref, c_ref, b_ref, o_ref):
        y = jnp.dot(
            w_ref[...].astype(jnp.bfloat16),
            c_ref[...].astype(jnp.bfloat16),
            preferred_element_type=jnp.float32,
        )
        y = y + b_ref[...]  # (Cout, 1) broadcasts over the lane (M) dim
        if relu:
            y = jnp.maximum(y, 0.0)
        o_ref[...] = y

    return kernel


def conv_matmul(w_mat, cols_t, b, relu, tm=512):
    """w_mat: (Cout, K), cols_t: (K, M) -> (Cout, M).  M tiled along the grid."""
    Cout, K = w_mat.shape
    K2, M = cols_t.shape
    assert K == K2
    b2 = b.reshape(Cout, 1).astype(jnp.float32)
    # Tile M; if the whole thing is smaller than one tile use the full extent
    # (always a legal block).  tm is a multiple of 128 -> lane-dense stores.
    tm_eff = M if M <= tm else tm
    grid_m = pl.cdiv(M, tm_eff)
    return pl.pallas_call(
        _make_conv_mm_kernel(relu),
        out_shape=jax.ShapeDtypeStruct((Cout, M), jnp.float32),
        grid=(grid_m,),
        in_specs=[
            pl.BlockSpec((Cout, K), lambda i: (0, 0)),      # weights resident
            pl.BlockSpec((K, tm_eff), lambda i: (0, i)),    # cols tile
            pl.BlockSpec((Cout, 1), lambda i: (0, 0)),      # bias resident
        ],
        out_specs=pl.BlockSpec((Cout, tm_eff), lambda i: (0, i)),
        compiler_params=pltpu.CompilerParams(
            dimension_semantics=("parallel",)),
    )(w_mat.astype(jnp.float32), cols_t.astype(jnp.float32), b2)


def _make_fused_mlp_kernel(final):
    """Two back-to-back FC layers fused: relu(a@W1+b1) @ W2 + b2 (+log_softmax)."""

    def kernel(a_ref, w1_ref, b1_ref, w2_ref, b2_ref, o_ref):
        h = jnp.dot(a_ref[...], w1_ref[...],
                    preferred_element_type=jnp.float32) + b1_ref[...]
        h = jnp.maximum(h, 0.0)
        y = jnp.dot(h, w2_ref[...],
                    preferred_element_type=jnp.float32) + b2_ref[...]
        if final == "log_softmax":
            m = jnp.max(y, axis=-1, keepdims=True)
            e = jnp.exp(y - m)
            y = y - m - jnp.log(jnp.sum(e, axis=-1, keepdims=True))
        o_ref[...] = y

    return kernel


def fused_mlp(a, w1, b1, w2, b2, final="none"):
    """a: (M, K); w1: (K, H); w2: (H, Nout).  M = batch (tiny) -> single block."""
    M, K = a.shape
    _, Hmid = w1.shape
    _, Nout = w2.shape
    b1r = b1.reshape(1, Hmid).astype(jnp.float32)
    b2r = b2.reshape(1, Nout).astype(jnp.float32)
    return pl.pallas_call(
        _make_fused_mlp_kernel(final),
        out_shape=jax.ShapeDtypeStruct((M, Nout), jnp.float32),
        grid=(1,),
        in_specs=[
            pl.BlockSpec((M, K), lambda i: (0, 0)),
            pl.BlockSpec((K, Hmid), lambda i: (0, 0)),
            pl.BlockSpec((1, Hmid), lambda i: (0, 0)),
            pl.BlockSpec((Hmid, Nout), lambda i: (0, 0)),
            pl.BlockSpec((1, Nout), lambda i: (0, 0)),
        ],
        out_specs=pl.BlockSpec((M, Nout), lambda i: (0, 0)),
    )(a.astype(jnp.float32), w1.astype(jnp.float32), b1r,
      w2.astype(jnp.float32), b2r)


def _make_grid_sample_kernel(H, W, HWp):
    """Fused affine_grid + separable bilinear grid_sample
    (padding_mode='zeros', align_corners=False).

    For a block of NB single-channel images:
      gx/gy      = theta-transform of the (constant) normalized base grid
      ix/iy      = un-normalized source coords in input-pixel units
      A_t[n,h,p] = relu(1 - |h - iy[n,p]|)   (row weight, 0 for OOB rows)
      B_t[n,w,p] = relu(1 - |w - ix[n,p]|)   (col weight, 0 for OOB cols)
      out[n, p]  = sum_w B_t[n,w,p] * (sum_h img[n,h,w] * A_t[n,h,p])
    The relu-abs form reproduces the 2x2 bilinear weights exactly and gives
    zero-padding behaviour for free.  All large intermediates keep HWp (a
    multiple of 128) on lanes."""

    def kernel(x_ref, th_ref, bx_ref, by_ref, o_ref):
        img = x_ref[...]                       # (NB, H, W)
        th = th_ref[...]                       # (NB, 6) affine params (row-major 2x3)
        bx = bx_ref[...]                       # (1, HWp) normalized x of output pixels
        by = by_ref[...]                       # (1, HWp) normalized y of output pixels
        NB = img.shape[0]

        # affine_grid: normalized output coords -> normalized source coords
        gx = th[:, 0:1] * bx + th[:, 1:2] * by + th[:, 2:3]      # (NB, HWp)
        gy = th[:, 3:4] * bx + th[:, 4:5] * by + th[:, 5:6]
        # un-normalize (align_corners=False) to input pixel coordinates
        ix = ((gx + 1.0) * W - 1.0) * 0.5
        iy = ((gy + 1.0) * H - 1.0) * 0.5

        hq = jax.lax.broadcasted_iota(jnp.int32, (NB, H, HWp), 1).astype(jnp.float32)
        A_t = jnp.maximum(0.0, 1.0 - jnp.abs(hq - iy[:, None, :]))   # (NB, H, HWp)
        wq = jax.lax.broadcasted_iota(jnp.int32, (NB, W, HWp), 1).astype(jnp.float32)
        B_t = jnp.maximum(0.0, 1.0 - jnp.abs(wq - ix[:, None, :]))   # (NB, W, HWp)

        # rows[n, w, p] = sum_h img[n, h, w] * A_t[n, h, p]
        rows = jnp.einsum("nhw,nhp->nwp", img, A_t,
                          preferred_element_type=jnp.float32)
        o_ref[...] = jnp.sum(rows * B_t, axis=1)                     # (NB, HWp)

    return kernel


def grid_sample(x_img, theta6, base_x, base_y, H, W, HWp):
    """x_img: (N, H, W) single channel; theta6: (N, 6); base_x/base_y: (1, HWp)
    constant normalized output-pixel coords (tail padded out-of-range so the
    padded lanes sample to zero).  Returns (N, HWp)."""
    N = x_img.shape[0]
    NB = min(8, N)            # pack images per step to fill sublanes / MXU rows
    grid_n = pl.cdiv(N, NB)
    return pl.pallas_call(
        _make_grid_sample_kernel(H, W, HWp),
        out_shape=jax.ShapeDtypeStruct((N, HWp), jnp.float32),
        grid=(grid_n,),
        in_specs=[
            pl.BlockSpec((NB, H, W), lambda n: (n, 0, 0)),
            pl.BlockSpec((NB, 6), lambda n: (n, 0)),
            pl.BlockSpec((1, HWp), lambda n: (0, 0)),
            pl.BlockSpec((1, HWp), lambda n: (0, 0)),
        ],
        out_specs=pl.BlockSpec((NB, HWp), lambda n: (n, 0)),
        compiler_params=pltpu.CompilerParams(
            dimension_semantics=("parallel",)),
    )(x_img.astype(jnp.float32), theta6.astype(jnp.float32),
      base_x.astype(jnp.float32), base_y.astype(jnp.float32))


# ----------------------------------------------------------------------------
# Plain-JAX glue (data rearrangement only)
# ----------------------------------------------------------------------------
def conv2d(x_nhwc, w_oihw, b, relu, tm=512):
    """VALID conv, stride 1, matches nn.Conv2d; matmul runs in Pallas.

    im2col is built directly in transposed (K, M) layout so the Pallas matmul
    output (Cout, M) is lane-dense along M = N*OH*OW."""
    # TODO(synk): im2col could be folded into the kernel (sum of KH*KW shifted
    # matmuls) to cut HBM traffic ~KH*KW further; kept in glue for simplicity.
    N, H, W, Cin = x_nhwc.shape
    Cout, Cin2, KH, KW = w_oihw.shape
    assert Cin == Cin2
    OH, OW = H - KH + 1, W - KW + 1
    slices = []
    for kh in range(KH):
        for kw in range(KW):
            slices.append(x_nhwc[:, kh:kh + OH, kw:kw + OW, :])
    p = jnp.stack(slices, axis=0)                       # (KH*KW, N, OH, OW, Cin)
    cols_t = jnp.transpose(p, (0, 4, 1, 2, 3)).reshape(KH * KW * Cin, N * OH * OW)
    w_mat = jnp.transpose(w_oihw, (0, 2, 3, 1)).reshape(Cout, KH * KW * Cin)
    y = conv_matmul(w_mat, cols_t, b, relu, tm)          # (Cout, N*OH*OW)
    y = y.reshape(Cout, N, OH, OW)
    return jnp.transpose(y, (1, 2, 3, 0))                # NHWC


def maxpool2(x_nhwc):
    """MaxPool2d(kernel=2, stride=2), floor mode (drops trailing odd row/col)."""
    N, H, W, C = x_nhwc.shape
    PH, PW = H // 2, W // 2
    x = x_nhwc[:, : PH * 2, : PW * 2, :].reshape(N, PH, 2, PW, 2, C)
    return jnp.max(x, axis=(2, 4))


def base_grid_coords(H, W, HWp):
    """Constant normalized output-pixel coordinates (align_corners=False),
    flattened row-major and padded past H*W with out-of-range sentinels so the
    padded lanes sample to zero inside the kernel.  Shape (1, HWp) each."""
    ys = (2.0 * jnp.arange(H, dtype=jnp.float32) + 1.0) / H - 1.0
    xs = (2.0 * jnp.arange(W, dtype=jnp.float32) + 1.0) / W - 1.0
    yg, xg = jnp.meshgrid(ys, xs, indexing="ij")
    bx = xg.reshape(1, H * W)
    by = yg.reshape(1, H * W)
    pad = HWp - H * W
    if pad:
        bx = jnp.pad(bx, ((0, 0), (0, pad)), constant_values=-10.0)
        by = jnp.pad(by, ((0, 0), (0, pad)), constant_values=-10.0)
    return bx, by


# ----------------------------------------------------------------------------
# Parameters (deterministic, shapes from Net.__init__)
# ----------------------------------------------------------------------------
def init_params(key):
    def u(k, shape, fan_in):
        bound = 1.0 / (fan_in ** 0.5)
        return jax.random.uniform(k, shape, jnp.float32, -bound, bound)

    ks = jax.random.split(key, 14)
    p = {}
    p["conv1_w"] = u(ks[0], (10, 1, 5, 5), 25);    p["conv1_b"] = u(ks[1], (10,), 25)
    p["conv2_w"] = u(ks[2], (20, 10, 5, 5), 250);  p["conv2_b"] = u(ks[3], (20,), 250)
    p["fc1_w"] = u(ks[4], (50, 320), 320);         p["fc1_b"] = u(ks[5], (50,), 320)
    p["fc2_w"] = u(ks[6], (10, 50), 50);           p["fc2_b"] = u(ks[7], (10,), 50)
    p["loc1_w"] = u(ks[8], (8, 1, 7, 7), 49);      p["loc1_b"] = u(ks[9], (8,), 49)
    p["loc2_w"] = u(ks[10], (10, 8, 5, 5), 200);   p["loc2_b"] = u(ks[11], (10,), 200)
    p["fcloc1_w"] = u(ks[12], (32, 90), 90);       p["fcloc1_b"] = u(ks[13], (32,), 90)
    p["fcloc2_w"] = jnp.zeros((6, 32), jnp.float32)
    p["fcloc2_b"] = jnp.array([1, 0, 0, 0, 1, 0], jnp.float32)
    return p


# ----------------------------------------------------------------------------
# Forward pass (matches Net.forward, eval-mode dropout)
# ----------------------------------------------------------------------------
def net_forward(x_nchw, p):
    N, C, H, W = x_nchw.shape
    assert C == 1  # Net is defined for single-channel (MNIST) input
    x_nhwc = jnp.transpose(x_nchw, (0, 2, 3, 1)).astype(jnp.float32)

    # ---- stn: localization network ----
    # PyTorch order is conv -> maxpool -> relu; relu is monotone, so fusing
    # relu into the conv kernel and pooling afterwards is equivalent.
    xs = conv2d(x_nhwc, p["loc1_w"], p["loc1_b"], relu=True)    # (N, 22, 22, 8)
    xs = maxpool2(xs)                                           # (N, 11, 11, 8)
    xs = conv2d(xs, p["loc2_w"], p["loc2_b"], relu=True)        # (N, 7, 7, 10)
    xs = maxpool2(xs)                                           # (N, 3, 3, 10)
    xs_flat = jnp.transpose(xs, (0, 3, 1, 2)).reshape(N, 90)    # NCHW flatten
    theta6 = fused_mlp(xs_flat, p["fcloc1_w"].T, p["fcloc1_b"],
                       p["fcloc2_w"].T, p["fcloc2_b"], final="none")   # (N, 6)

    # ---- stn: fused affine_grid + separable bilinear grid_sample ----
    HW = H * W
    HWp = ((HW + 127) // 128) * 128                             # lane-dense pad
    base_x, base_y = base_grid_coords(H, W, HWp)                # constants
    xt = grid_sample(x_nchw[:, 0].astype(jnp.float32), theta6,
                     base_x, base_y, H, W, HWp)
    xt = xt[:, :HW].reshape(N, H, W, 1)                         # NHWC, C=1

    # ---- main classifier ----
    y = conv2d(xt, p["conv1_w"], p["conv1_b"], relu=True)       # (N, 24, 24, 10)
    y = maxpool2(y)                                             # (N, 12, 12, 10)
    # TODO(synk): Dropout2d implemented as identity (eval mode); training RNG omitted.
    y = conv2d(y, p["conv2_w"], p["conv2_b"], relu=True)        # (N, 8, 8, 20)
    y = maxpool2(y)                                             # (N, 4, 4, 20)
    y_flat = jnp.transpose(y, (0, 3, 1, 2)).reshape(N, 320)     # NCHW flatten
    # TODO(synk): F.dropout implemented as identity (eval mode).
    out = fused_mlp(y_flat, p["fc1_w"].T, p["fc1_b"],
                    p["fc2_w"].T, p["fc2_b"], final="log_softmax")
    return out


# ----------------------------------------------------------------------------
if __name__ == "__main__":
    key = jax.random.PRNGKey(0)
    k_param, k_x = jax.random.split(key)
    params = init_params(k_param)

    # MNIST-shaped input required by the module's FC dims (320 = 20*4*4, 90 = 10*3*3)
    x = jax.random.normal(k_x, (2, 1, 28, 28), jnp.float32)

    out = jax.jit(net_forward)(x, params)
    out = jax.block_until_ready(out)
    assert out.shape == (2, 10)
    assert bool(jnp.all(jnp.isfinite(out)))
    # log_softmax rows must (approximately) sum to 1 in prob space
    assert bool(jnp.allclose(jnp.sum(jnp.exp(out), axis=1), 1.0, atol=1e-4))
    print("KERNEL_OK")
</pallas_src>

<mosaic_0001>
module attributes {stable_mosaic.version = 11 : i64} {
  func.func @kernel(%arg0: i32, %arg1: memref<8x49xf32, #tpu.memory_space<vmem>>, %arg2: memref<49x512xf32, #tpu.memory_space<vmem>>, %arg3: memref<8x1xf32, #tpu.memory_space<vmem>>, %arg4: memref<8x512xf32, #tpu.memory_space<vmem>>) attributes {dimension_semantics = [#tpu.dimension_semantics<parallel>], iteration_bounds = array<i64: 2>, scalar_prefetch = 0 : i64, scratch_operands = 0 : i64, tpu.core_type = #tpu.core_type<tc>, window_params = [{pipeline_mode = #tpu.pipeline_mode<synchronous>, transform_indices = @transform_0, window_bounds = array<i64: 8, 49>}, {transform_indices = @transform_1, window_bounds = array<i64: 49, 512>}, {pipeline_mode = #tpu.pipeline_mode<synchronous>, transform_indices = @transform_2, window_bounds = array<i64: 8, 1>}, {transform_indices = @transform_3, window_bounds = array<i64: 8, 512>}]} {
    %c0 = arith.constant 0 : index
    %c0_0 = arith.constant 0 : index
    %0 = vector.load %arg1[%c0, %c0_0] : memref<8x49xf32, #tpu.memory_space<vmem>>, vector<8x49xf32>
    %1 = arith.truncf %0 : vector<8x49xf32> to vector<8x49xbf16>
    %c0_1 = arith.constant 0 : index
    %c0_2 = arith.constant 0 : index
    %2 = vector.load %arg2[%c0_1, %c0_2] : memref<49x512xf32, #tpu.memory_space<vmem>>, vector<49x512xf32>
    %3 = arith.truncf %2 : vector<49x512xf32> to vector<49x512xbf16>
    %cst = arith.constant dense<0.000000e+00> : vector<8x512xf32>
    %4 = tpu.matmul %1, %3, %cst {dimension_numbers = #tpu.dot_dimension_numbers<[1], [0], [0], [1], [0, 0, 1, 1], [], []>} : vector<8x49xbf16>, vector<49x512xbf16>, vector<8x512xf32> -> vector<8x512xf32>
    %c0_3 = arith.constant 0 : index
    %c0_4 = arith.constant 0 : index
    %5 = vector.load %arg3[%c0_3, %c0_4] : memref<8x1xf32, #tpu.memory_space<vmem>>, vector<8x1xf32>
    %6 = vector.broadcast %5 : vector<8x1xf32> to vector<8x512xf32>
    %7 = arith.addf %4, %6 : vector<8x512xf32>
    %cst_5 = arith.constant 0.000000e+00 : f32
    %8 = vector.broadcast %cst_5 : f32 to vector<8x512xf32>
    %9 = arith.maximumf %7, %8 : vector<8x512xf32>
    %c0_6 = arith.constant 0 : index
    %c0_7 = arith.constant 0 : index
    %10 = vector.load %arg4[%c0_6, %c0_7] : memref<8x512xf32, #tpu.memory_space<vmem>>, vector<8x512xf32>
    tpu.vector_store %arg4[%c0_6, %c0_7], %9 {strides = array<i32>} : memref<8x512xf32, #tpu.memory_space<vmem>>, vector<8x512xf32>,
    return
  }
  func.func @transform_0(%arg0: i32) -> (i32, i32) {
    %c0_i32 = arith.constant 0 : i32
    %c0_i32_0 = arith.constant 0 : i32
    %c0_i32_1 = arith.constant 0 : i32
    return %c0_i32, %c0_i32_0 : i32, i32
  }
  func.func @transform_1(%arg0: i32) -> (i32, i32) {
    %c0_i32 = arith.constant 0 : i32
    %c0_i32_0 = arith.constant 0 : i32
    return %c0_i32, %arg0 : i32, i32
  }
  func.func @transform_2(%arg0: i32) -> (i32, i32) {
    %c0_i32 = arith.constant 0 : i32
    %c0_i32_0 = arith.constant 0 : i32
    %c0_i32_1 = arith.constant 0 : i32
    return %c0_i32, %c0_i32_0 : i32, i32
  }
  func.func @transform_3(%arg0: i32) -> (i32, i32) {
    %c0_i32 = arith.constant 0 : i32
    %c0_i32_0 = arith.constant 0 : i32
    return %c0_i32, %arg0 : i32, i32
  }
}

module attributes {stable_mosaic.version = 11 : i64} {
  func.func @kernel(%arg0: i32, %arg1: memref<10x200xf32, #tpu.memory_space<vmem>>, %arg2: memref<200x98xf32, #tpu.memory_space<vmem>>, %arg3: memref<10x1xf32, #tpu.memory_space<vmem>>, %arg4: memref<10x98xf32, #tpu.memory_space<vmem>>) attributes {dimension_semantics = [#tpu.dimension_semantics<parallel>], iteration_bounds = array<i64: 1>, scalar_prefetch = 0 : i64, scratch_operands = 0 : i64, tpu.core_type = #tpu.core_type<tc>, window_params = [{pipeline_mode = #tpu.pipeline_mode<synchronous>, transform_indices = @transform_0, window_bounds = array<i64: 10, 200>}, {transform_indices = @transform_1, window_bounds = array<i64: 200, 98>}, {pipeline_mode = #tpu.pipeline_mode<synchronous>, transform_indices = @transform_2, window_bounds = array<i64: 10, 1>}, {transform_indices = @transform_3, window_bounds = array<i64: 10, 98>}]} {
    %c0 = arith.constant 0 : index
    %c0_0 = arith.constant 0 : index
    %0 = vector.load %arg1[%c0, %c0_0] : memref<10x200xf32, #tpu.memory_space<vmem>>, vector<10x200xf32>
    %1 = arith.truncf %0 : vector<10x200xf32> to vector<10x200xbf16>
    %c0_1 = arith.constant 0 : index
    %c0_2 = arith.constant 0 : index
    %2 = vector.load %arg2[%c0_1, %c0_2] : memref<200x98xf32, #tpu.memory_space<vmem>>, vector<200x98xf32>
    %3 = arith.truncf %2 : vector<200x98xf32> to vector<200x98xbf16>
    %cst = arith.constant dense<0.000000e+00> : vector<10x98xf32>
    %4 = tpu.matmul %1, %3, %cst {dimension_numbers = #tpu.dot_dimension_numbers<[1], [0], [0], [1], [0, 0, 1, 1], [], []>} : vector<10x200xbf16>, vector<200x98xbf16>, vector<10x98xf32> -> vector<10x98xf32>
    %c0_3 = arith.constant 0 : index
    %c0_4 = arith.constant 0 : index
    %5 = vector.load %arg3[%c0_3, %c0_4] : memref<10x1xf32, #tpu.memory_space<vmem>>, vector<10x1xf32>
    %6 = vector.broadcast %5 : vector<10x1xf32> to vector<10x98xf32>
    %7 = arith.addf %4, %6 : vector<10x98xf32>
    %cst_5 = arith.constant 0.000000e+00 : f32
    %8 = vector.broadcast %cst_5 : f32 to vector<10x98xf32>
    %9 = arith.maximumf %7, %8 : vector<10x98xf32>
    %c0_6 = arith.constant 0 : index
    %c0_7 = arith.constant 0 : index
    %10 = vector.load %arg4[%c0_6, %c0_7] : memref<10x98xf32, #tpu.memory_space<vmem>>, vector<10x98xf32>
    tpu.vector_store %arg4[%c0_6, %c0_7], %9 {strides = array<i32>} : memref<10x98xf32, #tpu.memory_space<vmem>>, vector<10x98xf32>,
    return
  }
  func.func @transform_0(%arg0: i32) -> (i32, i32) {
    %c0_i32 = arith.constant 0 : i32
    %c0_i32_0 = arith.constant 0 : i32
    %c0_i32_1 = arith.constant 0 : i32
    return %c0_i32, %c0_i32_0 : i32, i32
  }
  func.func @transform_1(%arg0: i32) -> (i32, i32) {
    %c0_i32 = arith.constant 0 : i32
    %c0_i32_0 = arith.constant 0 : i32
    return %c0_i32, %arg0 : i32, i32
  }
  func.func @transform_2(%arg0: i32) -> (i32, i32) {
    %c0_i32 = arith.constant 0 : i32
    %c0_i32_0 = arith.constant 0 : i32
    %c0_i32_1 = arith.constant 0 : i32
    return %c0_i32, %c0_i32_0 : i32, i32
  }
  func.func @transform_3(%arg0: i32) -> (i32, i32) {
    %c0_i32 = arith.constant 0 : i32
    %c0_i32_0 = arith.constant 0 : i32
    return %c0_i32, %arg0 : i32, i32
  }
}

module attributes {stable_mosaic.version = 11 : i64} {
  func.func @kernel(%arg0: i32, %arg1: memref<2x90xf32, #tpu.memory_space<vmem>>, %arg2: memref<90x32xf32, #tpu.memory_space<vmem>>, %arg3: memref<1x32xf32, #tpu.memory_space<vmem>>, %arg4: memref<32x6xf32, #tpu.memory_space<vmem>>, %arg5: memref<1x6xf32, #tpu.memory_space<vmem>>, %arg6: memref<2x6xf32, #tpu.memory_space<vmem>>) attributes {dimension_semantics = [#tpu.dimension_semantics<arbitrary>], iteration_bounds = array<i64: 1>, scalar_prefetch = 0 : i64, scratch_operands = 0 : i64, tpu.core_type = #tpu.core_type<tc>, window_params = [{pipeline_mode = #tpu.pipeline_mode<synchronous>, transform_indices = @transform_0, window_bounds = array<i64: 2, 90>}, {pipeline_mode = #tpu.pipeline_mode<synchronous>, transform_indices = @transform_1, window_bounds = array<i64: 90, 32>}, {pipeline_mode = #tpu.pipeline_mode<synchronous>, transform_indices = @transform_2, window_bounds = array<i64: 1, 32>}, {pipeline_mode = #tpu.pipeline_mode<synchronous>, transform_indices = @transform_3, window_bounds = array<i64: 32, 6>}, {pipeline_mode = #tpu.pipeline_mode<synchronous>, transform_indices = @transform_4, window_bounds = array<i64: 1, 6>}, {pipeline_mode = #tpu.pipeline_mode<synchronous>, transform_indices = @transform_5, window_bounds = array<i64: 2, 6>}]} {
    %c0 = arith.constant 0 : index
    %c0_0 = arith.constant 0 : index
    %0 = vector.load %arg1[%c0, %c0_0] : memref<2x90xf32, #tpu.memory_space<vmem>>, vector<2x90xf32>
    %c0_1 = arith.constant 0 : index
    %c0_2 = arith.constant 0 : index
    %1 = vector.load %arg2[%c0_1, %c0_2] : memref<90x32xf32, #tpu.memory_space<vmem>>, vector<90x32xf32>
    %cst = arith.constant dense<0.000000e+00> : vector<2x32xf32>
    %2 = tpu.matmul %0, %1, %cst {dimension_numbers = #tpu.dot_dimension_numbers<[1], [0], [0], [1], [0, 0, 1, 1], [], []>} : vector<2x90xf32>, vector<90x32xf32>, vector<2x32xf32> -> vector<2x32xf32>
    %c0_3 = arith.constant 0 : index
    %c0_4 = arith.constant 0 : index
    %3 = vector.load %arg3[%c0_3, %c0_4] : memref<1x32xf32, #tpu.memory_space<vmem>>, vector<1x32xf32>
    %4 = vector.broadcast %3 : vector<1x32xf32> to vector<2x32xf32>
    %5 = arith.addf %2, %4 : vector<2x32xf32>
    %cst_5 = arith.constant 0.000000e+00 : f32
    %6 = vector.broadcast %cst_5 : f32 to vector<2x32xf32>
    %7 = arith.maximumf %5, %6 : vector<2x32xf32>
    %c0_6 = arith.constant 0 : index
    %c0_7 = arith.constant 0 : index
    %8 = vector.load %arg4[%c0_6, %c0_7] : memref<32x6xf32, #tpu.memory_space<vmem>>, vector<32x6xf32>
    %cst_8 = arith.constant dense<0.000000e+00> : vector<2x6xf32>
    %9 = tpu.matmul %7, %8, %cst_8 {dimension_numbers = #tpu.dot_dimension_numbers<[1], [0], [0], [1], [0, 0, 1, 1], [], []>} : vector<2x32xf32>, vector<32x6xf32>, vector<2x6xf32> -> vector<2x6xf32>
    %c0_9 = arith.constant 0 : index
    %c0_10 = arith.constant 0 : index
    %10 = vector.load %arg5[%c0_9, %c0_10] : memref<1x6xf32, #tpu.memory_space<vmem>>, vector<1x6xf32>
    %11 = vector.broadcast %10 : vector<1x6xf32> to vector<2x6xf32>
    %12 = arith.addf %9, %11 : vector<2x6xf32>
    %c0_11 = arith.constant 0 : index
    %c0_12 = arith.constant 0 : index
    %13 = vector.load %arg6[%c0_11, %c0_12] : memref<2x6xf32, #tpu.memory_space<vmem>>, vector<2x6xf32>
    tpu.vector_store %arg6[%c0_11, %c0_12], %12 {strides = array<i32>} : memref<2x6xf32, #tpu.memory_space<vmem>>, vector<2x6xf32>,
    return
  }
  func.func @transform_0(%arg0: i32) -> (i32, i32) {
    %c0_i32 = arith.constant 0 : i32
    %c0_i32_0 = arith.constant 0 : i32
    %c0_i32_1 = arith.constant 0 : i32
    return %c0_i32, %c0_i32_0 : i32, i32
  }
  func.func @transform_1(%arg0: i32) -> (i32, i32) {
    %c0_i32 = arith.constant 0 : i32
    %c0_i32_0 = arith.constant 0 : i32
    %c0_i32_1 = arith.constant 0 : i32
    return %c0_i32, %c0_i32_0 : i32, i32
  }
  func.func @transform_2(%arg0: i32) -> (i32, i32) {
    %c0_i32 = arith.constant 0 : i32
    %c0_i32_0 = arith.constant 0 : i32
    %c0_i32_1 = arith.constant 0 : i32
    return %c0_i32, %c0_i32_0 : i32, i32
  }
  func.func @transform_3(%arg0: i32) -> (i32, i32) {
    %c0_i32 = arith.constant 0 : i32
    %c0_i32_0 = arith.constant 0 : i32
    %c0_i32_1 = arith.constant 0 : i32
    return %c0_i32, %c0_i32_0 : i32, i32
  }
  func.func @transform_4(%arg0: i32) -> (i32, i32) {
    %c0_i32 = arith.constant 0 : i32
    %c0_i32_0 = arith.constant 0 : i32
    %c0_i32_1 = arith.constant 0 : i32
    return %c0_i32, %c0_i32_0 : i32, i32
  }
  func.func @transform_5(%arg0: i32) -> (i32, i32) {
    %c0_i32 = arith.constant 0 : i32
    %c0_i32_0 = arith.constant 0 : i32
    %c0_i32_1 = arith.constant 0 : i32
    return %c0_i32, %c0_i32_0 : i32, i32
  }
}

module attributes {stable_mosaic.version = 11 : i64} {
  func.func @kernel(%arg0: i32, %arg1: memref<2x28x28xf32, #tpu.memory_space<vmem>>, %arg2: memref<2x6xf32, #tpu.memory_space<vmem>>, %arg3: memref<1x896xf32, #tpu.memory_space<vmem>>, %arg4: memref<1x896xf32, #tpu.memory_space<vmem>>, %arg5: memref<2x896xf32, #tpu.memory_space<vmem>>) attributes {dimension_semantics = [#tpu.dimension_semantics<parallel>], iteration_bounds = array<i64: 1>, scalar_prefetch = 0 : i64, scratch_operands = 0 : i64, tpu.core_type = #tpu.core_type<tc>, window_params = [{transform_indices = @transform_0, window_bounds = array<i64: 2, 28, 28>}, {transform_indices = @transform_1, window_bounds = array<i64: 2, 6>}, {pipeline_mode = #tpu.pipeline_mode<synchronous>, transform_indices = @transform_2, window_bounds = array<i64: 1, 896>}, {pipeline_mode = #tpu.pipeline_mode<synchronous>, transform_indices = @transform_3, window_bounds = array<i64: 1, 896>}, {transform_indices = @transform_4, window_bounds = array<i64: 2, 896>}]} {
    %c0 = arith.constant 0 : index
    %c0_0 = arith.constant 0 : index
    %c0_1 = arith.constant 0 : index
    %0 = vector.load %arg1[%c0, %c0_0, %c0_1] : memref<2x28x28xf32, #tpu.memory_space<vmem>>, vector<2x28x28xf32>
    %c0_2 = arith.constant 0 : index
    %c0_3 = arith.constant 0 : index
    %1 = vector.load %arg2[%c0_2, %c0_3] : memref<2x6xf32, #tpu.memory_space<vmem>>, vector<2x6xf32>
    %c0_4 = arith.constant 0 : index
    %c0_5 = arith.constant 0 : index
    %2 = vector.load %arg3[%c0_4, %c0_5] : memref<1x896xf32, #tpu.memory_space<vmem>>, vector<1x896xf32>
    %c0_6 = arith.constant 0 : index
    %c0_7 = arith.constant 0 : index
    %3 = vector.load %arg4[%c0_6, %c0_7] : memref<1x896xf32, #tpu.memory_space<vmem>>, vector<1x896xf32>
    %4 = vector.extract_strided_slice %1 {offsets = [0, 0], sizes = [2, 1], strides = [1, 1]} : vector<2x6xf32> to vector<2x1xf32>
    %5 = vector.broadcast %4 : vector<2x1xf32> to vector<2x896xf32>
    %6 = vector.broadcast %2 : vector<1x896xf32> to vector<2x896xf32>
    %7 = arith.mulf %5, %6 : vector<2x896xf32>
    %8 = vector.extract_strided_slice %1 {offsets = [0, 1], sizes = [2, 1], strides = [1, 1]} : vector<2x6xf32> to vector<2x1xf32>
    %9 = vector.broadcast %8 : vector<2x1xf32> to vector<2x896xf32>
    %10 = vector.broadcast %3 : vector<1x896xf32> to vector<2x896xf32>
    %11 = arith.mulf %9, %10 : vector<2x896xf32>
    %12 = arith.addf %7, %11 : vector<2x896xf32>
    %13 = vector.extract_strided_slice %1 {offsets = [0, 2], sizes = [2, 1], strides = [1, 1]} : vector<2x6xf32> to vector<2x1xf32>
    %14 = vector.broadcast %13 : vector<2x1xf32> to vector<2x896xf32>
    %15 = arith.addf %12, %14 : vector<2x896xf32>
    %16 = vector.extract_strided_slice %1 {offsets = [0, 3], sizes = [2, 1], strides = [1, 1]} : vector<2x6xf32> to vector<2x1xf32>
    %17 = vector.broadcast %16 : vector<2x1xf32> to vector<2x896xf32>
    %18 = vector.broadcast %2 : vector<1x896xf32> to vector<2x896xf32>
    %19 = arith.mulf %17, %18 : vector<2x896xf32>
    %20 = vector.extract_strided_slice %1 {offsets = [0, 4], sizes = [2, 1], strides = [1, 1]} : vector<2x6xf32> to vector<2x1xf32>
    %21 = vector.broadcast %20 : vector<2x1xf32> to vector<2x896xf32>
    %22 = vector.broadcast %3 : vector<1x896xf32> to vector<2x896xf32>
    %23 = arith.mulf %21, %22 : vector<2x896xf32>
    %24 = arith.addf %19, %23 : vector<2x896xf32>
    %25 = vector.extract_strided_slice %1 {offsets = [0, 5], sizes = [2, 1], strides = [1, 1]} : vector<2x6xf32> to vector<2x1xf32>
    %26 = vector.broadcast %25 : vector<2x1xf32> to vector<2x896xf32>
    %27 = arith.addf %24, %26 : vector<2x896xf32>
    %cst = arith.constant 1.000000e+00 : f32
    %28 = vector.broadcast %cst : f32 to vector<2x896xf32>
    %29 = arith.addf %15, %28 : vector<2x896xf32>
    %cst_8 = arith.constant 2.800000e+01 : f32
    %30 = vector.broadcast %cst_8 : f32 to vector<2x896xf32>
    %31 = arith.mulf %29, %30 : vector<2x896xf32>
    %cst_9 = arith.constant 1.000000e+00 : f32
    %32 = vector.broadcast %cst_9 : f32 to vector<2x896xf32>
    %33 = arith.subf %31, %32 : vector<2x896xf32>
    %cst_10 = arith.constant 5.000000e-01 : f32
    %34 = vector.broadcast %cst_10 : f32 to vector<2x896xf32>
    %35 = arith.mulf %33, %34 : vector<2x896xf32>
    %cst_11 = arith.constant 1.000000e+00 : f32
    %36 = vector.broadcast %cst_11 : f32 to vector<2x896xf32>
    %37 = arith.addf %27, %36 : vector<2x896xf32>
    %cst_12 = arith.constant 2.800000e+01 : f32
    %38 = vector.broadcast %cst_12 : f32 to vector<2x896xf32>
    %39 = arith.mulf %37, %38 : vector<2x896xf32>
    %cst_13 = arith.constant 1.000000e+00 : f32
    %40 = vector.broadcast %cst_13 : f32 to vector<2x896xf32>
    %41 = arith.subf %39, %40 : vector<2x896xf32>
    %cst_14 = arith.constant 5.000000e-01 : f32
    %42 = vector.broadcast %cst_14 : f32 to vector<2x896xf32>
    %43 = arith.mulf %41, %42 : vector<2x896xf32>
    %44 = tpu.iota {dimensions = array<i32: 1>} : vector<2x28x896xi32>
    %45 = arith.sitofp %44 : vector<2x28x896xi32> to vector<2x28x896xf32>
    %46 = vector.shape_cast %43 : vector<2x896xf32> to vector<2x1x896xf32>
    %47 = vector.broadcast %46 : vector<2x1x896xf32> to vector<2x28x896xf32>
    %48 = arith.subf %45, %47 : vector<2x28x896xf32>
    %49 = math.absf %48 : vector<2x28x896xf32>
    %cst_15 = arith.constant 1.000000e+00 : f32
    %50 = vector.broadcast %cst_15 : f32 to vector<2x28x896xf32>
    %51 = arith.subf %50, %49 : vector<2x28x896xf32>
    %cst_16 = arith.constant 0.000000e+00 : f32
    %52 = vector.broadcast %cst_16 : f32 to vector<2x28x896xf32>
    %53 = arith.maximumf %52, %51 : vector<2x28x896xf32>
    %54 = tpu.iota {dimensions = array<i32: 1>} : vector<2x28x896xi32>
    %55 = arith.sitofp %54 : vector<2x28x896xi32> to vector<2x28x896xf32>
    %56 = vector.shape_cast %35 : vector<2x896xf32> to vector<2x1x896xf32>
    %57 = vector.broadcast %56 : vector<2x1x896xf32> to vector<2x28x896xf32>
    %58 = arith.subf %55, %57 : vector<2x28x896xf32>
    %59 = math.absf %58 : vector<2x28x896xf32>
    %cst_17 = arith.constant 1.000000e+00 : f32
    %60 = vector.broadcast %cst_17 : f32 to vector<2x28x896xf32>
    %61 = arith.subf %60, %59 : vector<2x28x896xf32>
    %cst_18 = arith.constant 0.000000e+00 : f32
    %62 = vector.broadcast %cst_18 : f32 to vector<2x28x896xf32>
    %63 = arith.maximumf %62, %61 : vector<2x28x896xf32>
    "tpu.trace_start"() <{level = 10 : i32, message = "nhw,nhp->nwp"}> : () -> ()
    %cst_19 = arith.constant dense<0.000000e+00> : vector<2x28x896xf32>
    %64 = tpu.matmul %0, %53, %cst_19 {dimension_numbers = #tpu.dot_dimension_numbers<[1], [1], [2], [2], [0, 0, 0, 2, 1, 2], [0], [0]>} : vector<2x28x28xf32>, vector<2x28x896xf32>, vector<2x28x896xf32> -> vector<2x28x896xf32>
    "tpu.trace_stop"() : () -> ()
    %65 = arith.mulf %64, %63 : vector<2x28x896xf32>
    %cst_20 = arith.constant dense<0.000000e+00> : vector<2x896xf32>
    %66 = vector.multi_reduction <add>, %65, %cst_20 [1] : vector<2x28x896xf32> to vector<2x896xf32>
    %c0_21 = arith.constant 0 : index
    %c0_22 = arith.constant 0 : index
    %67 = vector.load %arg5[%c0_21, %c0_22] : memref<2x896xf32, #tpu.memory_space<vmem>>, vector<2x896xf32>
    tpu.vector_store %arg5[%c0_21, %c0_22], %66 {strides = array<i32>} : memref<2x896xf32, #tpu.memory_space<vmem>>, vector<2x896xf32>,
    return
  }
  func.func @transform_0(%arg0: i32) -> (i32, i32, i32) {
    %c0_i32 = arith.constant 0 : i32
    %c0_i32_0 = arith.constant 0 : i32
    %c0_i32_1 = arith.constant 0 : i32
    return %arg0, %c0_i32, %c0_i32_0 : i32, i32, i32
  }
  func.func @transform_1(%arg0: i32) -> (i32, i32) {
    %c0_i32 = arith.constant 0 : i32
    %c0_i32_0 = arith.constant 0 : i32
    return %arg0, %c0_i32 : i32, i32
  }
  func.func @transform_2(%arg0: i32) -> (i32, i32) {
    %c0_i32 = arith.constant 0 : i32
    %c0_i32_0 = arith.constant 0 : i32
    %c0_i32_1 = arith.constant 0 : i32
    return %c0_i32, %c0_i32_0 : i32, i32
  }
  func.func @transform_3(%arg0: i32) -> (i32, i32) {
    %c0_i32 = arith.constant 0 : i32
    %c0_i32_0 = arith.constant 0 : i32
    %c0_i32_1 = arith.constant 0 : i32
    return %c0_i32, %c0_i32_0 : i32, i32
  }
  func.func @transform_4(%arg0: i32) -> (i32, i32) {
    %c0_i32 = arith.constant 0 : i32
    %c0_i32_0 = arith.constant 0 : i32
    return %arg0, %c0_i32 : i32, i32
  }
}

module attributes {stable_mosaic.version = 11 : i64} {
  func.func @kernel(%arg0: i32, %arg1: memref<10x25xf32, #tpu.memory_space<vmem>>, %arg2: memref<25x512xf32, #tpu.memory_space<vmem>>, %arg3: memref<10x1xf32, #tpu.memory_space<vmem>>, %arg4: memref<10x512xf32, #tpu.memory_space<vmem>>) attributes {dimension_semantics = [#tpu.dimension_semantics<parallel>], iteration_bounds = array<i64: 3>, scalar_prefetch = 0 : i64, scratch_operands = 0 : i64, tpu.core_type = #tpu.core_type<tc>, window_params = [{pipeline_mode = #tpu.pipeline_mode<synchronous>, transform_indices = @transform_0, window_bounds = array<i64: 10, 25>}, {transform_indices = @transform_1, window_bounds = array<i64: 25, 512>}, {pipeline_mode = #tpu.pipeline_mode<synchronous>, transform_indices = @transform_2, window_bounds = array<i64: 10, 1>}, {transform_indices = @transform_3, window_bounds = array<i64: 10, 512>}]} {
    %c0 = arith.constant 0 : index
    %c0_0 = arith.constant 0 : index
    %0 = vector.load %arg1[%c0, %c0_0] : memref<10x25xf32, #tpu.memory_space<vmem>>, vector<10x25xf32>
    %1 = arith.truncf %0 : vector<10x25xf32> to vector<10x25xbf16>
    %c0_1 = arith.constant 0 : index
    %c0_2 = arith.constant 0 : index
    %2 = vector.load %arg2[%c0_1, %c0_2] : memref<25x512xf32, #tpu.memory_space<vmem>>, vector<25x512xf32>
    %3 = arith.truncf %2 : vector<25x512xf32> to vector<25x512xbf16>
    %cst = arith.constant dense<0.000000e+00> : vector<10x512xf32>
    %4 = tpu.matmul %1, %3, %cst {dimension_numbers = #tpu.dot_dimension_numbers<[1], [0], [0], [1], [0, 0, 1, 1], [], []>} : vector<10x25xbf16>, vector<25x512xbf16>, vector<10x512xf32> -> vector<10x512xf32>
    %c0_3 = arith.constant 0 : index
    %c0_4 = arith.constant 0 : index
    %5 = vector.load %arg3[%c0_3, %c0_4] : memref<10x1xf32, #tpu.memory_space<vmem>>, vector<10x1xf32>
    %6 = vector.broadcast %5 : vector<10x1xf32> to vector<10x512xf32>
    %7 = arith.addf %4, %6 : vector<10x512xf32>
    %cst_5 = arith.constant 0.000000e+00 : f32
    %8 = vector.broadcast %cst_5 : f32 to vector<10x512xf32>
    %9 = arith.maximumf %7, %8 : vector<10x512xf32>
    %c0_6 = arith.constant 0 : index
    %c0_7 = arith.constant 0 : index
    %10 = vector.load %arg4[%c0_6, %c0_7] : memref<10x512xf32, #tpu.memory_space<vmem>>, vector<10x512xf32>
    tpu.vector_store %arg4[%c0_6, %c0_7], %9 {strides = array<i32>} : memref<10x512xf32, #tpu.memory_space<vmem>>, vector<10x512xf32>,
    return
  }
  func.func @transform_0(%arg0: i32) -> (i32, i32) {
    %c0_i32 = arith.constant 0 : i32
    %c0_i32_0 = arith.constant 0 : i32
    %c0_i32_1 = arith.constant 0 : i32
    return %c0_i32, %c0_i32_0 : i32, i32
  }
  func.func @transform_1(%arg0: i32) -> (i32, i32) {
    %c0_i32 = arith.constant 0 : i32
    %c0_i32_0 = arith.constant 0 : i32
    return %c0_i32, %arg0 : i32, i32
  }
  func.func @transform_2(%arg0: i32) -> (i32, i32) {
    %c0_i32 = arith.constant 0 : i32
    %c0_i32_0 = arith.constant 0 : i32
    %c0_i32_1 = arith.constant 0 : i32
    return %c0_i32, %c0_i32_0 : i32, i32
  }
  func.func @transform_3(%arg0: i32) -> (i32, i32) {
    %c0_i32 = arith.constant 0 : i32
    %c0_i32_0 = arith.constant 0 : i32
    return %c0_i32, %arg0 : i32, i32
  }
}

module attributes {stable_mosaic.version = 11 : i64} {
  func.func @kernel(%arg0: i32, %arg1: memref<20x250xf32, #tpu.memory_space<vmem>>, %arg2: memref<250x128xf32, #tpu.memory_space<vmem>>, %arg3: memref<20x1xf32, #tpu.memory_space<vmem>>, %arg4: memref<20x128xf32, #tpu.memory_space<vmem>>) attributes {dimension_semantics = [#tpu.dimension_semantics<parallel>], iteration_bounds = array<i64: 1>, scalar_prefetch = 0 : i64, scratch_operands = 0 : i64, tpu.core_type = #tpu.core_type<tc>, window_params = [{pipeline_mode = #tpu.pipeline_mode<synchronous>, transform_indices = @transform_0, window_bounds = array<i64: 20, 250>}, {transform_indices = @transform_1, window_bounds = array<i64: 250, 128>}, {pipeline_mode = #tpu.pipeline_mode<synchronous>, transform_indices = @transform_2, window_bounds = array<i64: 20, 1>}, {transform_indices = @transform_3, window_bounds = array<i64: 20, 128>}]} {
    %c0 = arith.constant 0 : index
    %c0_0 = arith.constant 0 : index
    %0 = vector.load %arg1[%c0, %c0_0] : memref<20x250xf32, #tpu.memory_space<vmem>>, vector<20x250xf32>
    %1 = arith.truncf %0 : vector<20x250xf32> to vector<20x250xbf16>
    %c0_1 = arith.constant 0 : index
    %c0_2 = arith.constant 0 : index
    %2 = vector.load %arg2[%c0_1, %c0_2] : memref<250x128xf32, #tpu.memory_space<vmem>>, vector<250x128xf32>
    %3 = arith.truncf %2 : vector<250x128xf32> to vector<250x128xbf16>
    %cst = arith.constant dense<0.000000e+00> : vector<20x128xf32>
    %4 = tpu.matmul %1, %3, %cst {dimension_numbers = #tpu.dot_dimension_numbers<[1], [0], [0], [1], [0, 0, 1, 1], [], []>} : vector<20x250xbf16>, vector<250x128xbf16>, vector<20x128xf32> -> vector<20x128xf32>
    %c0_3 = arith.constant 0 : index
    %c0_4 = arith.constant 0 : index
    %5 = vector.load %arg3[%c0_3, %c0_4] : memref<20x1xf32, #tpu.memory_space<vmem>>, vector<20x1xf32>
    %6 = vector.broadcast %5 : vector<20x1xf32> to vector<20x128xf32>
    %7 = arith.addf %4, %6 : vector<20x128xf32>
    %cst_5 = arith.constant 0.000000e+00 : f32
    %8 = vector.broadcast %cst_5 : f32 to vector<20x128xf32>
    %9 = arith.maximumf %7, %8 : vector<20x128xf32>
    %c0_6 = arith.constant 0 : index
    %c0_7 = arith.constant 0 : index
    %10 = vector.load %arg4[%c0_6, %c0_7] : memref<20x128xf32, #tpu.memory_space<vmem>>, vector<20x128xf32>
    tpu.vector_store %arg4[%c0_6, %c0_7], %9 {strides = array<i32>} : memref<20x128xf32, #tpu.memory_space<vmem>>, vector<20x128xf32>,
    return
  }
  func.func @transform_0(%arg0: i32) -> (i32, i32) {
    %c0_i32 = arith.constant 0 : i32
    %c0_i32_0 = arith.constant 0 : i32
    %c0_i32_1 = arith.constant 0 : i32
    return %c0_i32, %c0_i32_0 : i32, i32
  }
  func.func @transform_1(%arg0: i32) -> (i32, i32) {
    %c0_i32 = arith.constant 0 : i32
    %c0_i32_0 = arith.constant 0 : i32
    return %c0_i32, %arg0 : i32, i32
  }
  func.func @transform_2(%arg0: i32) -> (i32, i32) {
    %c0_i32 = arith.constant 0 : i32
    %c0_i32_0 = arith.constant 0 : i32
    %c0_i32_1 = arith.constant 0 : i32
    return %c0_i32, %c0_i32_0 : i32, i32
  }
  func.func @transform_3(%arg0: i32) -> (i32, i32) {
    %c0_i32 = arith.constant 0 : i32
    %c0_i32_0 = arith.constant 0 : i32
    return %c0_i32, %arg0 : i32, i32
  }
}

module attributes {stable_mosaic.version = 11 : i64} {
  func.func @kernel(%arg0: i32, %arg1: memref<2x320xf32, #tpu.memory_space<vmem>>, %arg2: memref<320x50xf32, #tpu.memory_space<vmem>>, %arg3: memref<1x50xf32, #tpu.memory_space<vmem>>, %arg4: memref<50x10xf32, #tpu.memory_space<vmem>>, %arg5: memref<1x10xf32, #tpu.memory_space<vmem>>, %arg6: memref<2x10xf32, #tpu.memory_space<vmem>>) attributes {dimension_semantics = [#tpu.dimension_semantics<arbitrary>], iteration_bounds = array<i64: 1>, scalar_prefetch = 0 : i64, scratch_operands = 0 : i64, tpu.core_type = #tpu.core_type<tc>, window_params = [{pipeline_mode = #tpu.pipeline_mode<synchronous>, transform_indices = @transform_0, window_bounds = array<i64: 2, 320>}, {pipeline_mode = #tpu.pipeline_mode<synchronous>, transform_indices = @transform_1, window_bounds = array<i64: 320, 50>}, {pipeline_mode = #tpu.pipeline_mode<synchronous>, transform_indices = @transform_2, window_bounds = array<i64: 1, 50>}, {pipeline_mode = #tpu.pipeline_mode<synchronous>, transform_indices = @transform_3, window_bounds = array<i64: 50, 10>}, {pipeline_mode = #tpu.pipeline_mode<synchronous>, transform_indices = @transform_4, window_bounds = array<i64: 1, 10>}, {pipeline_mode = #tpu.pipeline_mode<synchronous>, transform_indices = @transform_5, window_bounds = array<i64: 2, 10>}]} {
    %c0 = arith.constant 0 : index
    %c0_0 = arith.constant 0 : index
    %0 = vector.load %arg1[%c0, %c0_0] : memref<2x320xf32, #tpu.memory_space<vmem>>, vector<2x320xf32>
    %c0_1 = arith.constant 0 : index
    %c0_2 = arith.constant 0 : index
    %1 = vector.load %arg2[%c0_1, %c0_2] : memref<320x50xf32, #tpu.memory_space<vmem>>, vector<320x50xf32>
    %cst = arith.constant dense<0.000000e+00> : vector<2x50xf32>
    %2 = tpu.matmul %0, %1, %cst {dimension_numbers = #tpu.dot_dimension_numbers<[1], [0], [0], [1], [0, 0, 1, 1], [], []>} : vector<2x320xf32>, vector<320x50xf32>, vector<2x50xf32> -> vector<2x50xf32>
    %c0_3 = arith.constant 0 : index
    %c0_4 = arith.constant 0 : index
    %3 = vector.load %arg3[%c0_3, %c0_4] : memref<1x50xf32, #tpu.memory_space<vmem>>, vector<1x50xf32>
    %4 = vector.broadcast %3 : vector<1x50xf32> to vector<2x50xf32>
    %5 = arith.addf %2, %4 : vector<2x50xf32>
    %cst_5 = arith.constant 0.000000e+00 : f32
    %6 = vector.broadcast %cst_5 : f32 to vector<2x50xf32>
    %7 = arith.maximumf %5, %6 : vector<2x50xf32>
    %c0_6 = arith.constant 0 : index
    %c0_7 = arith.constant 0 : index
    %8 = vector.load %arg4[%c0_6, %c0_7] : memref<50x10xf32, #tpu.memory_space<vmem>>, vector<50x10xf32>
    %cst_8 = arith.constant dense<0.000000e+00> : vector<2x10xf32>
    %9 = tpu.matmul %7, %8, %cst_8 {dimension_numbers = #tpu.dot_dimension_numbers<[1], [0], [0], [1], [0, 0, 1, 1], [], []>} : vector<2x50xf32>, vector<50x10xf32>, vector<2x10xf32> -> vector<2x10xf32>
    %c0_9 = arith.constant 0 : index
    %c0_10 = arith.constant 0 : index
    %10 = vector.load %arg5[%c0_9, %c0_10] : memref<1x10xf32, #tpu.memory_space<vmem>>, vector<1x10xf32>
    %11 = vector.broadcast %10 : vector<1x10xf32> to vector<2x10xf32>
    %12 = arith.addf %9, %11 : vector<2x10xf32>
    %cst_11 = arith.constant dense<0xFF800000> : vector<2xf32>
    %13 = vector.multi_reduction <maximumf>, %12, %cst_11 [1] : vector<2x10xf32> to vector<2xf32>
    %14 = vector.shape_cast %13 : vector<2xf32> to vector<2x1xf32>
    %15 = vector.broadcast %14 : vector<2x1xf32> to vector<2x10xf32>
    %16 = arith.subf %12, %15 : vector<2x10xf32>
    %17 = math.exp %16 : vector<2x10xf32>
    %18 = vector.broadcast %14 : vector<2x1xf32> to vector<2x10xf32>
    %19 = arith.subf %12, %18 : vector<2x10xf32>
    %cst_12 = arith.constant dense<0.000000e+00> : vector<2xf32>
    %20 = vector.multi_reduction <add>, %17, %cst_12 [1] : vector<2x10xf32> to vector<2xf32>
    %21 = vector.shape_cast %20 : vector<2xf32> to vector<2x1xf32>
    %22 = math.log %21 : vector<2x1xf32>
    %23 = vector.broadcast %22 : vector<2x1xf32> to vector<2x10xf32>
    %24 = arith.subf %19, %23 : vector<2x10xf32>
    %c0_13 = arith.constant 0 : index
    %c0_14 = arith.constant 0 : index
    %25 = vector.load %arg6[%c0_13, %c0_14] : memref<2x10xf32, #tpu.memory_space<vmem>>, vector<2x10xf32>
    tpu.vector_store %arg6[%c0_13, %c0_14], %24 {strides = array<i32>} : memref<2x10xf32, #tpu.memory_space<vmem>>, vector<2x10xf32>,
    return
  }
  func.func @transform_0(%arg0: i32) -> (i32, i32) {
    %c0_i32 = arith.constant 0 : i32
    %c0_i32_0 = arith.constant 0 : i32
    %c0_i32_1 = arith.constant 0 : i32
    return %c0_i32, %c0_i32_0 : i32, i32
  }
  func.func @transform_1(%arg0: i32) -> (i32, i32) {
    %c0_i32 = arith.constant 0 : i32
    %c0_i32_0 = arith.constant 0 : i32
    %c0_i32_1 = arith.constant 0 : i32
    return %c0_i32, %c0_i32_0 : i32, i32
  }
  func.func @transform_2(%arg0: i32) -> (i32, i32) {
    %c0_i32 = arith.constant 0 : i32
    %c0_i32_0 = arith.constant 0 : i32
    %c0_i32_1 = arith.constant 0 : i32
    return %c0_i32, %c0_i32_0 : i32, i32
  }
  func.func @transform_3(%arg0: i32) -> (i32, i32) {
    %c0_i32 = arith.constant 0 : i32
    %c0_i32_0 = arith.constant 0 : i32
    %c0_i32_1 = arith.constant 0 : i32
    return %c0_i32, %c0_i32_0 : i32, i32
  }
  func.func @transform_4(%arg0: i32) -> (i32, i32) {
    %c0_i32 = arith.constant 0 : i32
    %c0_i32_0 = arith.constant 0 : i32
    %c0_i32_1 = arith.constant 0 : i32
    return %c0_i32, %c0_i32_0 : i32, i32
  }
  func.func @transform_5(%arg0: i32) -> (i32, i32) {
    %c0_i32 = arith.constant 0 : i32
    %c0_i32_0 = arith.constant 0 : i32
    %c0_i32_1 = arith.constant 0 : i32
    return %c0_i32, %c0_i32_0 : i32, i32
  }
}

</mosaic_0001>

<bundles_post_ra>
// kernel: net_forward.7
= control target key start
LH: loop header
LB: loop body
LE: loop exit
PB: predicated region body
PF: predicated region fallthrough
CT: control target
= control target key end

     0   :  { %s558_s12 = smov 0   ;;  %s560_s13 = smov 0   ;;  %s706_s0 = inlined_call_operand.vmem [shape: f32[8,49], index: 0, kind: input, shape index: {}]   ;;  %s707_s1 = inlined_call_operand.vmem [shape: f32[49,968], index: 1, kind: input, shape index: {}]   ;;  %s708_s2 = inlined_call_operand.vmem [shape: f32[8,1], index: 2, kind: input, shape index: {}]   ;;  %s709_s3 = inlined_call_operand.vmem [shape: f32[8,968], index: 3, kind: output, shape index: {}]  }
   0x1   :  { %s562_s14 = smov 0  }
   0x2 LB: > { %s471_s15 = sadd.s32 4294967295, %s535_s14   ;;  %s575_s16 = sadd.s32 1, %s535_s14   ;;  %s535_s14 = sphi %s562_s14, %s712_s14   ;;  %s531_s13 = sphi %s560_s13, %s711_s13   ;;  %s527_s12 = sphi %s558_s12, %s710_s12  }
   0x3   : > { %s38_s17 = ssub.s32 %s535_s14, %s575_s16  ;;  %s41_s18 = sadd.s32 1, %s531_s13 }
   0x4   : > { %p39_p0 = scmp.eq.s32.totalorder %s38_s17, 0  ;;  %p48_p1 = scmp.ne.s32.totalorder %s531_s13, %s527_s12 }
   0x5   : > { %p49_p2 = scmp.eq.s32.totalorder %s535_s14, 0  ;;  %p474_p4 = scmp.ge.s32.totalorder %s535_s14, 2 }
   0x6   : > { %s584_s19 = scalar_select %p39_p0, %s531_s13, %s41_s18  }
   0x7   : > { %p50_p3 = por %p49_p2, %p48_p1  ;;  %127 = sbr.rel (%p474_p4) target bundleno = 31 (0x1f), region = 24 }
   0xc   : > { %130 = sbr.rel (!%p50_p3) target bundleno = 31 (0x1f), region = 28  ;;  %s132_s20 = sand.u32 (%p50_p3), 1, %s531_s13  }
   0xd   : > { %s484_s21 = sshll.u32 (%p50_p3), %s535_s14, 5  ;;  %s485_s22 = smul.u32 (%p50_p3), 224, %s132_s20 }
   0xe   : > { %s592_s25 = scalar_lea.vmem (%p50_p3), %s707_s1, %s484_s21 }
   0xf   : > { %v150_v0 = vld [vmem:[%s592_s25] sm:$0xff] (%p50_p3)  ;;  %v152_v1 = vld [vmem:[%s592_s25 + $0x8] sm:$0xff] (%p50_p3)  ;;  %v154_v2 = vld [vmem:[%s592_s25 + $0x10] sm:$0xff] (%p50_p3)  ;;  %s600_s26 = scalar_lea.vmem (%p50_p3), [#allocation2], %s485_s22 }
  0x10   : > { %v156_v3 = vld [vmem:[%s592_s25 + $0x18] sm:$0xff] (%p50_p3)  ;;  %v158_v4 = vld [vmem:[%s592_s25 + $0x40] sm:$0xff] (%p50_p3)  ;;  %v160_v5 = vld [vmem:[%s592_s25 + $0x48] sm:$0xff] (%p50_p3)  ;;  %151 = vst [vmem:[%s600_s26] sm:$0xff] (%p50_p3), %v150_v0 }
  0x11   : > { %153 = vst [vmem:[%s600_s26 + $0x8] sm:$0xff] %v152_v1  ;;  %155 = vst [vmem:[%s600_s26 + $0x10] sm:$0xff] %v154_v2  ;;  %v162_v6 = vld [vmem:[%s592_s25 + $0x50] sm:$0xff]  ;;  %v164_v7 = vld [vmem:[%s592_s25 + $0x58] sm:$0xff] }
  0x12   : > { %157 = vst [vmem:[%s600_s26 + $0x18] sm:$0xff] %v156_v3  ;;  %159 = vst [vmem:[%s600_s26 + $0x20] sm:$0xff] %v158_v4  ;;  %v166_v8 = vld [vmem:[%s592_s25 + $0x80] sm:$0xff]  ;;  %v168_v9 = vld [vmem:[%s592_s25 + $0x88] sm:$0xff] }
  0x13   : > { %161 = vst [vmem:[%s600_s26 + $0x28] sm:$0xff] %v160_v5  ;;  %163 = vst [vmem:[%s600_s26 + $0x30] sm:$0xff] %v162_v6  ;;  %v170_v10 = vld [vmem:[%s592_s25 + $0x90] sm:$0xff]  ;;  %v172_v11 = vld [vmem:[%s592_s25 + $0x98] sm:$0xff] }
  0x14   : > { %165 = vst [vmem:[%s600_s26 + $0x38] sm:$0xff] %v164_v7  ;;  %167 = vst [vmem:[%s600_s26 + $0x40] sm:$0xff] %v166_v8  ;;  %v174_v12 = vld [vmem:[%s592_s25 + $0xc0] sm:$0xff]  ;;  %v176_v13 = vld [vmem:[%s592_s25 + $0xc8] sm:$0xff] }
  0x15   : > { %169 = vst [vmem:[%s600_s26 + $0x48] sm:$0xff] %v168_v9  ;;  %171 = vst [vmem:[%s600_s26 + $0x50] sm:$0xff] %v170_v10  ;;  %v178_v14 = vld [vmem:[%s592_s25 + $0xd0] sm:$0xff]  ;;  %v180_v15 = vld [vmem:[%s592_s25 + $0xd8] sm:$0xff] }
  0x16   : > { %173 = vst [vmem:[%s600_s26 + $0x58] sm:$0xff] %v172_v11  ;;  %175 = vst [vmem:[%s600_s26 + $0x60] sm:$0xff] %v174_v12  ;;  %v182_v16 = vld [vmem:[%s592_s25 + $0x100] sm:$0xff]  ;;  %v184_v17 = vld [vmem:[%s592_s25 + $0x108] sm:$0xff] }
  0x17   : > { %177 = vst [vmem:[%s600_s26 + $0x68] sm:$0xff] %v176_v13  ;;  %179 = vst [vmem:[%s600_s26 + $0x70] sm:$0xff] %v178_v14  ;;  %v186_v18 = vld [vmem:[%s592_s25 + $0x110] sm:$0xff]  ;;  %v188_v19 = vld [vmem:[%s592_s25 + $0x118] sm:$0xff] }
  0x18   : > { %181 = vst [vmem:[%s600_s26 + $0x78] sm:$0xff] %v180_v15  ;;  %183 = vst [vmem:[%s600_s26 + $0x80] sm:$0xff] %v182_v16  ;;  %v190_v20 = vld [vmem:[%s592_s25 + $0x140] sm:$0xff]  ;;  %v192_v21 = vld [vmem:[%s592_s25 + $0x148] sm:$0xff] }
  0x19   : > { %185 = vst [vmem:[%s600_s26 + $0x88] sm:$0xff] %v184_v17  ;;  %187 = vst [vmem:[%s600_s26 + $0x90] sm:$0xff] %v186_v18  ;;  %v194_v22 = vld [vmem:[%s592_s25 + $0x150] sm:$0xff]  ;;  %v196_v23 = vld [vmem:[%s592_s25 + $0x158] sm:$0xff] }
  0x1a   : > { %189 = vst [vmem:[%s600_s26 + $0x98] sm:$0xff] %v188_v19  ;;  %191 = vst [vmem:[%s600_s26 + $0xa0] sm:$0xff] %v190_v20  ;;  %v198_v24 = vld [vmem:[%s592_s25 + $0x180] sm:$0xff]  ;;  %v200_v25 = vld [vmem:[%s592_s25 + $0x188] sm:$0xff] }
  0x1b   : > { %193 = vst [vmem:[%s600_s26 + $0xa8] sm:$0xff] %v192_v21  ;;  %195 = vst [vmem:[%s600_s26 + $0xb0] sm:$0xff] %v194_v22  ;;  %v202_v26 = vld [vmem:[%s592_s25 + $0x190] sm:$0xff]  ;;  %v204_v27 = vld [vmem:[%s592_s25 + $0x198] sm:$0xff] }
  0x1c   : > { %197 = vst [vmem:[%s600_s26 + $0xb8] sm:$0xff] %v196_v23  ;;  %199 = vst [vmem:[%s600_s26 + $0xc0] sm:$0xff] %v198_v24 }
  0x1d   : > { %201 = vst [vmem:[%s600_s26 + $0xc8] sm:$0xff] %v200_v25  ;;  %203 = vst [vmem:[%s600_s26 + $0xd0] sm:$0xff] %v202_v26 }
  0x1e   : > { %205 = vst [vmem:[%s600_s26 + $0xd8] sm:$0xff] %v204_v27 }
  0x1f PF: > { %p477_p5 = scmp.ge.s32.totalorder %s535_s14, 1  ;;  %p210_p6 = scmp.lt.s32.totalorder %s535_s14, 3 }
  0x21   : > { %p211_p7 = pnand %p477_p5, %p210_p6 }
  0x22   : > { %s217_s27 = sand.u32 (!%p211_p7), 1, %s527_s12   ;;  %s478_s7 = sshll.u32 (!%p211_p7), %s471_s15, 2 }
  0x23   : > { %214 = sbr.rel (%p211_p7) target bundleno = 262 (0x106), region = 51  ;;  %p242_p8 = scmp.lt.s32.totalorder (!%p211_p7), %s478_s7, 7 }
  0x24   : > { %s486_s30 = smul.u32 (!%p211_p7), 224, %s217_s27 }
  0x26   : > { %s658_s4 = scalar_lea.vmem (!%p211_p7), [#allocation2], %s486_s30 }
  0x28   : > { %vm304_vm0 = vcmask 1040384   ;;  %v294_v28 = vld [vmem:[%s708_s2] sm:$0xff]  ;;  %v537_v29 = vmov 0   ;;  %v275_v31 = vld [vmem:[%s658_s4 + $0xc8] sm:$0x1]  ;;  %v269_v42 = vld [vmem:[%s658_s4 + $0x98] sm:$0xff] }
  0x29   : > { %351 = vmatprep.mubr.bf16.mxu0 %v537_v29  ;;  %392 = vmatprep.mubr.bf16.mxu1 %v537_v29  ;;  %v306_v30 = vsel %vm304_vm0, 65535, %v537_v29  ;;  %v277_v32 = vld [vmem:[%s658_s4 + $0xd8] sm:$0x1]  ;;  %v274_v33 = vld [vmem:[%s658_s4 + $0xc0] sm:$0x1]  ;;  %v291_v34 = vpack.c.bf16 %v275_v31, %v275_v31  ;;  %v267_v38 = vld [vmem:[%s658_s4 + $0x88] sm:$0xff] }
  0x2a   : > { %512 = vset.pattern.permute.xlu0 %v537_v29  ;;  %v293_v35 = vpack.c.bf16 %v277_v32, %v277_v32  ;;  %v290_v36 = vpack.c.bf16 %v274_v33, %v274_v33  ;;  %v276_v37 = vld [vmem:[%s658_s4 + $0xd0] sm:$0x1]  ;;  %v271_v39 = vld [vmem:[%s658_s4 + $0xa8] sm:$0xff]  ;;  %v273_v43 = vld [vmem:[%s658_s4 + $0xb8] sm:$0xff]  ;;  %vm300_vm1 = vcmask 400384   ;;  %s714_s7 = smov (!%p242_p8, %s478_s7), 7 }
  0x2b   : > { %297 = vperm.xlu0 %512, %v294_v28   ;;  %v292_v40 = vpack.c.bf16 %v276_v37, %v276_v37  ;;  %v287_v41 = vpack.c.bf16 %v271_v39, %v267_v38  ;;  %v266_v44 = vld [vmem:[%s658_s4 + $0x80] sm:$0xff]  ;;  %v311_v45 = vand.u32 %v306_v30, %v291_v34  ;;  %v289_v48 = vpack.c.bf16 %v273_v43, %v269_v42  ;;  %v268_v50 = vld [vmem:[%s658_s4 + $0x90] sm:$0xff]  ;;  %v259_v53 = vld [vmem:[%s658_s4 + $0x48] sm:$0xff]  ;;  %s479_s8 = sshll.u32 %s714_s7, 3 }
  0x2c   : > { %v317_v46 = vand.u32 %v306_v30, %v293_v35  ;;  %v308_v47 = vand.u32 %v306_v30, %v290_v36  ;;  %v270_v49 = vld [vmem:[%s658_s4 + $0xa0] sm:$0xff]  ;;  %v272_v51 = vld [vmem:[%s658_s4 + $0xb0] sm:$0xff]  ;;  %v263_v54 = vld [vmem:[%s658_s4 + $0x68] sm:$0xff]  ;;  %s245_s11 = scalar_lea.vmem %s709_s3, %s479_s8 }
  0x2d   : > { %v314_v52 = vand.u32 %v306_v30, %v292_v40  ;;  %v261_v55 = vld [vmem:[%s658_s4 + $0x58] sm:$0xff]  ;;  %327 = vmatprep.subr.bf16.mxu0 %v311_v45  ;;  %v286_v57 = vpack.c.bf16 %v270_v49, %v266_v44  ;;  %v288_v58 = vpack.c.bf16 %v272_v51, %v268_v50  ;;  %v258_v59 = vld [vmem:[%s658_s4 + $0x40] sm:$0xff]  ;;  %v283_v61 = vpack.c.bf16 %v263_v54, %v259_v53  ;;  %v260_v63 = vld [vmem:[%s658_s4 + $0x50] sm:$0xff] }
  0x2e   : > { %368 = vmatprep.subr.bf16.mxu1 %v317_v46  ;;  %v265_v56 = vld [vmem:[%s658_s4 + $0x78] sm:$0xff]  ;;  %328 = vmatpush1.bf16.msra.mxu0 %v308_v47  ;;  %v262_v60 = vld [vmem:[%s658_s4 + $0x60] sm:$0xff]  ;;  %v264_v0 = vld [vmem:[%s658_s4 + $0x70] sm:$0xff] }
  0x2f   : > { %369 = vmatpush1.bf16.msra.mxu1 %v314_v52  ;;  %329 = vmatprep.subr.bf16.mxu0 %v287_v41  ;;  %v285_v62 = vpack.c.bf16 %v265_v56, %v261_v55  ;;  %v251_v1 = vld [vmem:[%s658_s4 + $0x8] sm:$0xff]  ;;  %v253_v3 = vld [vmem:[%s658_s4 + $0x18] sm:$0xff]  ;;  %v282_v5 = vpack.c.bf16 %v262_v60, %v258_v59  ;;  %v284_v6 = vpack.c.bf16 %v264_v0, %v260_v63  ;;  %v250_v7 = vld [vmem:[%s658_s4] sm:$0xff] }
  0x30   : > { %370 = vmatprep.subr.bf16.mxu1 %v289_v48  ;;  %v255_v2 = vld [vmem:[%s658_s4 + $0x28] sm:$0xff]  ;;  %v257_v4 = vld [vmem:[%s658_s4 + $0x38] sm:$0xff]  ;;  %v254_v10 = vld [vmem:[%s658_s4 + $0x20] sm:$0xff] }
  0x31   : > { %v279_v8 = vpack.c.bf16 %v255_v2, %v251_v1  ;;  %v281_v9 = vpack.c.bf16 %v257_v4, %v253_v3  ;;  %v252_v11 = vld [vmem:[%s658_s4 + $0x10] sm:$0xff]  ;;  %v278_v13 = vpack.c.bf16 %v254_v10, %v250_v7  ;;  %v248_v15 = vld [vmem:[%s706_s0] sm:$0xff] }
  0x32   : > { %330 = vmatpush1.bf16.msra.mxu0 %v286_v57  ;;  %v256_v12 = vld [vmem:[%s658_s4 + $0x30] sm:$0xff]  ;;  %v249_v16 = vpack.c.bf16 %v248_v15, %v248_v15 }
  0x33   : > { %371 = vmatpush1.bf16.msra.mxu1 %v288_v58  ;;  %331 = vmatprep.subr.bf16.mxu0 %v283_v61  ;;  %v280_v14 = vpack.c.bf16 %v256_v12, %v252_v11 }
  0x34   : > { %372 = vmatprep.subr.bf16.mxu1 %v285_v62 }
  0x36   : > { %332 = vmatpush1.bf16.msra.mxu0 %v282_v5 }
  0x37   : > { %373 = vmatpush1.bf16.msra.mxu1 %v284_v6  ;;  %333 = vmatprep.subr.bf16.mxu0 %v279_v8 }
  0x38   : > { %374 = vmatprep.subr.bf16.mxu1 %v281_v9 }
  0x3a   : > { %334 = vmatpush1.bf16.msra.mxu0 %v278_v13 }
  0x3b   : > { %375 = vmatpush1.bf16.msra.mxu1 %v280_v14 }
  0x3d   : > { %480 = vmatmul.mubr.msk.bf16.vlgmr.msra.gmra.mxu0 %vm300_vm1, %v249_v16 }
  0x3e   : > { %481 = vmatmul.mubr.msk.bf16.vlgmr.msra.gmra.mxu1 %vm300_vm1, %v249_v16 }
  0xa6   : > { %v298_v17 = vpop.permute.xlu0 %297 }
  0xfd   : > { %v353_v18 = vpop.f32.mrf.mxu0 }
  0xfe   : > { %v394_v19 = vpop.f32.mrf.mxu1  ;;  %v354_v20 = vadd.f32 %v353_v18, %v298_v17 }
  0xff   : > { %v395_v21 = vadd.f32 %v394_v19, %v298_v17  ;;  %v355_v22 = vpop.f32.mrf.mxu0 }
 0x100   : > { %v396_v23 = vpop.f32.mrf.mxu1  ;;  %v401_v24 = vmax.f32 %v354_v20, 0.0  ;;  %v356_v25 = vadd.f32 %v355_v22, %v298_v17 }
 0x101   : > { %v397_v26 = vadd.f32 %v396_v23, %v298_v17  ;;  %v357_v27 = vpop.f32.mrf.mxu0  ;;  %v403_v30 = vmax.f32 %v395_v21, 0.0 }
 0x102   : > { %v398_v28 = vpop.f32.mrf.mxu1  ;;  %405 = vst [vmem:[%s245_s11] sm:$0xff] %v401_v24  ;;  %v402_v29 = vmax.f32 %v356_v25, 0.0 }
 0x103   : > { %v358_v31 = vpop.f32.mrf.mxu0  ;;  %v404_v33 = vmax.f32 %v397_v26, 0.0  ;;  %407 = vst [vmem:[%s245_s11 + $0x10] sm:$0xff] %v403_v30 }
 0x104   : > { %v399_v32 = vpop.f32.mrf.mxu1  ;;  %406 = vst [vmem:[%s245_s11 + $0x8] sm:$0xff] %v402_v29 }
 0x105   : > { %408 = vst [vmem:[%s245_s11 + $0x18] sm:$0xff] %v404_v33 }
 0x106 PF: > { %p10_p9 = scmp.ge.s32.totalorder %s575_s16, 4   ;;  %s710_s12 = smov %s531_s13 }
 0x107   : > { %s711_s13 = smov %s584_s19  ;;  %s712_s14 = smov %s575_s16 }
 0x108   :  { %12 = sbr.rel (!%p10_p9) target bundleno = 2 (0x2), region = 90 }

// kernel: net_forward.8
= control target key start
LH: loop header
LB: loop body
LE: loop exit
PB: predicated region body
PF: predicated region fallthrough
CT: control target
= control target key end

     0   :  { %v133_v0 = vmov 0   ;;  %vm71_vm0 = vcmask 588800   ;;  %vm75_vm1 = vcmask 1043456   ;;  %vm122_vm2 = vcmask 801792   ;;  %s267_s1 = inlined_call_operand.vmem [shape: f32[200,98], index: 1, kind: input, shape index: {}]   ;;  %s268_s0 = inlined_call_operand.vmem [shape: f32[10,200], index: 0, kind: input, shape index: {}]   ;;  %s269_s2 = inlined_call_operand.vmem [shape: f32[10,1], index: 2, kind: input, shape index: {}]   ;;  %s270_s3 = inlined_call_operand.vmem [shape: f32[10,98], index: 3, kind: output, shape index: {}]  }
   0x1   :  { %79 = vmatprep.subr.bf16.mxu0 %v133_v0  ;;  %v35_v1 = vld [vmem:[%s267_s1 + $0x70] sm:$0xff]  ;;  %v36_v2 = vld [vmem:[%s267_s1 + $0x78] sm:$0xff]  ;;  %v33_v3 = vld [vmem:[%s267_s1 + $0x60] sm:$0xff]  ;;  %132 = vset.pattern.permute.xlu0 %v133_v0  ;;  %vm124_vm3 = vcmask 795648  }
   0x2   :  { %v53_v4 = vpack.c.bf16 %v36_v2, %v35_v1  ;;  %v34_v5 = vld [vmem:[%s267_s1 + $0x68] sm:$0xff]  ;;  %v31_v7 = vld [vmem:[%s267_s1 + $0x50] sm:$0xff]  ;;  %v32_v8 = vld [vmem:[%s267_s1 + $0x58] sm:$0xff] }
   0x3   :  { %v52_v6 = vpack.c.bf16 %v34_v5, %v33_v3  ;;  %v51_v9 = vpack.c.bf16 %v32_v8, %v31_v7  ;;  %v29_v10 = vld [vmem:[%s267_s1 + $0x40] sm:$0xff]  ;;  %v30_v11 = vld [vmem:[%s267_s1 + $0x48] sm:$0xff]  ;;  %v18_v13 = vld [vmem:[%s268_s0 + $0x18] sm:$0x3] }
   0x4   :  { %80 = vmatpush1.bf16.msra.mxu0 %v53_v4  ;;  %v16_v12 = vld [vmem:[%s268_s0 + $0x8] sm:$0xff]  ;;  %v59_v15 = vld [vmem:[%s269_s2] sm:$0xff]  ;;  %v50_v16 = vpack.c.bf16 %v30_v11, %v29_v10  ;;  %v27_v18 = vld [vmem:[%s267_s1 + $0x30] sm:$0xff] }
   0x5   :  { %81 = vmatprep.subr.bf16.mxu0 %v133_v0  ;;  %v20_v14 = vpack.c.bf16 %v18_v13, %v16_v12  ;;  %63 = vperm.xlu0 %132, %v59_v15   ;;  %v60_v17 = vld [vmem:[%s269_s2 + $0x8] sm:$0x3]  ;;  %v28_v19 = vld [vmem:[%s267_s1 + $0x38] sm:$0xff]  ;;  %v25_v21 = vld [vmem:[%s267_s1 + $0x20] sm:$0xff] }
   0x6   :  { %v49_v20 = vpack.c.bf16 %v28_v19, %v27_v18  ;;  %v26_v22 = vld [vmem:[%s267_s1 + $0x28] sm:$0xff]  ;;  %v23_v24 = vld [vmem:[%s267_s1 + $0x10] sm:$0xff]  ;;  %v24_v25 = vld [vmem:[%s267_s1 + $0x18] sm:$0xff] }
   0x7   :  { %130 = vmatprep.mubr.msk.bf16.mxu0 %vm71_vm0, %v20_v14  ;;  %v48_v23 = vpack.c.bf16 %v26_v22, %v25_v21  ;;  %v47_v26 = vpack.c.bf16 %v24_v25, %v23_v24  ;;  %v21_v27 = vld [vmem:[%s267_s1] sm:$0xff]  ;;  %v22_v28 = vld [vmem:[%s267_s1 + $0x8] sm:$0xff]  ;;  %v43_v33 = vld [vmem:[%s267_s1 + $0xb0] sm:$0xff] }
   0x8   :  { %82 = vmatpush1.bf16.msra.mxu0 %v52_v6  ;;  %v45_v29 = vld [vmem:[%s267_s1 + $0xc0] sm:$0xff]  ;;  %v46_v30 = vpack.c.bf16 %v22_v28, %v21_v27  ;;  %v44_v34 = vld [vmem:[%s267_s1 + $0xb8] sm:$0xff]  ;;  %v42_v37 = vld [vmem:[%s267_s1 + $0xa8] sm:$0xff] }
   0x9   :  { %83 = vmatprep.subr.bf16.mxu0 %v133_v0  ;;  %68 = vperm.xlu0 %132, %v60_v17   ;;  %v58_v31 = vpack.c.bf16 %v45_v29, %v45_v29  ;;  %v57_v35 = vpack.c.bf16 %v44_v34, %v43_v33  ;;  %v41_v36 = vld [vmem:[%s267_s1 + $0xa0] sm:$0xff]  ;;  %v39_v39 = vld [vmem:[%s267_s1 + $0x90] sm:$0xff]  ;;  %v40_v40 = vld [vmem:[%s267_s1 + $0x98] sm:$0xff] }
   0xa   :  { %v56_v38 = vpack.c.bf16 %v42_v37, %v41_v36  ;;  %v55_v41 = vpack.c.bf16 %v40_v40, %v39_v39  ;;  %v37_v42 = vld [vmem:[%s267_s1 + $0x80] sm:$0xff]  ;;  %v38_v43 = vld [vmem:[%s267_s1 + $0x88] sm:$0xff]  ;;  %v17_v46 = vld [vmem:[%s268_s0 + $0x10] sm:$0x3] }
   0xb   :  { %v77_v32 = vsel %vm75_vm1, %v58_v31, 0  ;;  %v54_v44 = vpack.c.bf16 %v38_v43, %v37_v42  ;;  %v15_v45 = vld [vmem:[%s268_s0] sm:$0xff] }
   0xc   :  { %84 = vmatpush1.bf16.msra.mxu0 %v51_v9  ;;  %v19_v47 = vpack.c.bf16 %v17_v46, %v15_v45 }
   0xd   :  { %85 = vmatprep.subr.bf16.mxu0 %v133_v0 }
  0x10   :  { %86 = vmatpush1.bf16.msra.mxu0 %v50_v16 }
  0x11   :  { %87 = vmatprep.subr.bf16.mxu0 %v133_v0 }
  0x14   :  { %88 = vmatpush1.bf16.msra.mxu0 %v49_v20 }
  0x15   :  { %89 = vmatprep.subr.bf16.mxu0 %v133_v0 }
  0x18   :  { %90 = vmatpush1.bf16.msra.mxu0 %v48_v23 }
  0x19   :  { %91 = vmatprep.subr.bf16.mxu0 %v133_v0 }
  0x1c   :  { %92 = vmatpush1.bf16.msra.mxu0 %v47_v26 }
  0x1d   :  { %93 = vmatprep.subr.bf16.mxu0 %v133_v0 }
  0x20   :  { %94 = vmatpush1.bf16.msra.mxu0 %v46_v30 }
  0x21   :  { %101 = vmatprep.subr.bf16.mxu0 %v133_v0 }
  0x24   :  { %102 = vmatpush2.bf16.msra.mxu0 %v77_v32 }
  0x25   :  { %103 = vmatprep.subr.bf16.mxu0 %v133_v0 }
  0x28   :  { %104 = vmatpush2.bf16.msra.mxu0 %v57_v35 }
  0x29   :  { %105 = vmatprep.subr.bf16.mxu0 %v133_v0 }
  0x2c   :  { %106 = vmatpush2.bf16.msra.mxu0 %v56_v38 }
  0x2d   :  { %107 = vmatprep.subr.bf16.mxu0 %v133_v0 }
  0x30   :  { %108 = vmatpush2.bf16.msra.mxu0 %v55_v41 }
  0x31   :  { %109 = vmatprep.subr.bf16.mxu0 %v133_v0 }
  0x34   :  { %110 = vmatpush2.bf16.msra.mxu0 %v54_v44 }
  0x37   :  { %112 = vmatmul.mubr.bf16.vlgmr.msra.gmra.mxu0 %v19_v47 }
  0x80   :  { %v64_v48 = vpop.permute.xlu0 %63 }
  0x84   :  { %v69_v53 = vpop.permute.xlu0 %68 }
  0xf7   :  { %v113_v49 = vpop.f32.mrf.mxu0 }
  0xf8   :  { %v114_v50 = vadd.f32 %v113_v49, %v64_v48 }
  0xf9   :  { %v115_v51 = vpop.f32.mrf.mxu0 }
  0xfa   :  { %v120_v52 = vmax.f32 %v114_v50, 0.0 }
  0xfb   :  { %v116_v54 = vpop.f32.mrf.mxu0 }
  0xfc   :  { %123 = vst.msk [vmem:[%s270_s3] sm:$0xff] %vm122_vm2, %v120_v52  ;;  %v117_v55 = vadd.f32 %v116_v54, %v69_v53 }
  0xfd   :  { %v118_v56 = vpop.f32.mrf.mxu0 }
  0xfe   :  { %v121_v57 = vmax.f32 %v117_v55, 0.0 }
 0x100   :  { %125 = vst.msk [vmem:[%s270_s3 + $0x8] sm:$0x3] %vm124_vm3, %v121_v57 }

// kernel: net_forward.9
= control target key start
LH: loop header
LB: loop body
LE: loop exit
PB: predicated region body
PF: predicated region fallthrough
CT: control target
= control target key end

     0   :  { %vm44_vm0 = vcmask 1041408   ;;  %v273_v0 = vmov 0.0   ;;  %vm274_vm1 = vmmov 0   ;;  %vm40_vm2 = vcmask 736256   ;;  %s365_s1 = inlined_call_operand.vmem [shape: f32[90,32], index: 1, kind: input, shape index: {}]   ;;  %s366_s3 = inlined_call_operand.vmem [shape: f32[32,6], index: 3, kind: input, shape index: {}]   ;;  %s367_s0 = inlined_call_operand.vmem [shape: f32[2,90], index: 0, kind: input, shape index: {}]   ;;  %s368_s2 = inlined_call_operand.vmem [shape: f32[1,32], index: 2, kind: input, shape index: {}]   ;;  %s369_s4 = inlined_call_operand.vmem [shape: f32[1,6], index: 4, kind: input, shape index: {}]   ;;  %s370_s5 = inlined_call_operand.vmem [shape: f32[2,6], index: 5, kind: output, shape index: {}]  }
   0x1   :  { %233 = vmatprep.subr.mxu0 %v273_v0  ;;  %v32_v1 = vld [vmem:[%s365_s1 + $0x58] sm:$0x3]  ;;  %v31_v2 = vld [vmem:[%s365_s1 + $0x50] sm:$0xff]  ;;  %257 = vmatprep.mubr.msk.f32.mxu0 %vm274_vm1, %v273_v0  ;;  %v30_v3 = vld [vmem:[%s365_s1 + $0x48] sm:$0xff]  ;;  %vm130_vm3 = vcmask 261120   ;;  %vm204_vm4 = vcmask 41984  }
   0x2   :  { %234 = vmatpush3.msk.msra.mxu0 %vm44_vm0, %v32_v1  ;;  %260 = vmatprep.subr.mxu1 %v273_v0  ;;  %v29_v4 = vld [vmem:[%s365_s1 + $0x40] sm:$0xff]  ;;  %v122_v5 = vld [vmem:[%s366_s3 + $0x18] sm:$0xff]  ;;  %v27_v7 = vld [vmem:[%s365_s1 + $0x30] sm:$0xff] }
   0x3   :  { %235 = vmatprep.subr.mxu0 %v273_v0  ;;  %268 = vmatprep.mubr.msk.f32.mxu1 %vm274_vm1, %v273_v0  ;;  %v28_v6 = vld [vmem:[%s365_s1 + $0x38] sm:$0xff]  ;;  %v26_v8 = vld [vmem:[%s365_s1 + $0x28] sm:$0xff]  ;;  %v25_v9 = vld [vmem:[%s365_s1 + $0x20] sm:$0xff] }
   0x4   :  { %236 = vmatpush3.msra.mxu0 %v31_v2  ;;  %261 = vmatpush3.msra.mxu1 %v122_v5  ;;  %v24_v10 = vld [vmem:[%s365_s1 + $0x18] sm:$0xff]  ;;  %v23_v11 = vld [vmem:[%s365_s1 + $0x10] sm:$0xff]  ;;  %v22_v12 = vld [vmem:[%s365_s1 + $0x8] sm:$0xff] }
   0x5   :  { %237 = vmatprep.subr.mxu0 %v273_v0  ;;  %262 = vmatprep.subr.mxu1 %v273_v0  ;;  %v21_v13 = vld [vmem:[%s365_s1] sm:$0xff]  ;;  %v121_v15 = vld [vmem:[%s366_s3 + $0x10] sm:$0xff]  ;;  %v120_v16 = vld [vmem:[%s366_s3 + $0x8] sm:$0xff] }
   0x6   :  { %238 = vmatpush3.msra.mxu0 %v30_v3  ;;  %v20_v14 = vld [vmem:[%s367_s0] sm:$0x3]  ;;  %263 = vmatpush3.msra.mxu1 %v121_v15 }
   0x7   :  { %239 = vmatprep.subr.mxu0 %v273_v0  ;;  %264 = vmatprep.subr.mxu1 %v273_v0  ;;  %v119_v17 = vld [vmem:[%s366_s3] sm:$0xff] }
   0x8   :  { %240 = vmatpush3.msra.mxu0 %v29_v4  ;;  %265 = vmatpush3.msra.mxu1 %v120_v16  ;;  %v210_v18 = vld [vmem:[%s368_s2] ss:$0 sm:$0xff] }
   0x9   :  { %241 = vmatprep.subr.mxu0 %v273_v0  ;;  %266 = vmatprep.subr.mxu1 %v273_v0  ;;  %v213_v23 = vld [vmem:[%s369_s4] ss:$0 sm:$0xff] }
   0xa   :  { %242 = vmatpush3.msra.mxu0 %v28_v6  ;;  %267 = vmatpush3.msra.mxu1 %v119_v17 }
   0xb   :  { %243 = vmatprep.subr.mxu0 %v273_v0 }
   0xc   :  { %244 = vmatpush3.msra.mxu0 %v27_v7 }
   0xd   :  { %245 = vmatprep.subr.mxu0 %v273_v0 }
   0xe   :  { %246 = vmatpush3.msra.mxu0 %v26_v8 }
   0xf   :  { %247 = vmatprep.subr.mxu0 %v273_v0 }
  0x10   :  { %248 = vmatpush3.msra.mxu0 %v25_v9 }
  0x11   :  { %249 = vmatprep.subr.mxu0 %v273_v0 }
  0x12   :  { %250 = vmatpush3.msra.mxu0 %v24_v10 }
  0x13   :  { %251 = vmatprep.subr.mxu0 %v273_v0 }
  0x14   :  { %252 = vmatpush3.msra.mxu0 %v23_v11 }
  0x15   :  { %253 = vmatprep.subr.mxu0 %v273_v0 }
  0x16   :  { %254 = vmatpush3.msra.mxu0 %v22_v12 }
  0x17   :  { %255 = vmatprep.subr.mxu0 %v273_v0 }
  0x18   :  { %256 = vmatpush3.msra.mxu0 %v21_v13 }
  0x19   :  { %258 = vmatmul.mubr.msk.f32.vlgmr.msra.gmra.mxu0 %vm40_vm2, %v20_v14 }
  0xd9   :  { %v114_v19 = vpop.f32.mrf.mxu0 }
  0xda   :  { %v115_v20 = vadd.f32 %v210_v18, %v114_v19 }
  0xdb   :  { %v259_v21 = vpop.f32.mrf.mxu0 }
  0xdc   :  { %v118_v22 = vmax.f32 %v115_v20, 0.0 }
  0xde   :  { %269 = vmatmul.mubr.msk.f32.vlgmr.msra.gmra.mxu1 %vm130_vm3, %v118_v22 }
 0x19e   :  { %v200_v24 = vpop.f32.mrf.mxu1 }
 0x19f   :  { %v201_v25 = vadd.f32 %v213_v23, %v200_v24 }
 0x1a0   :  { %v270_v26 = vpop.f32.mrf.mxu1 }
 0x1a1   :  { %205 = vst.msk [vmem:[%s370_s5] sm:$0x3] %vm204_vm4, %v201_v25 }

// kernel: net_forward.10
= control target key start
LH: loop header
LB: loop body
LE: loop exit
PB: predicated region body
PF: predicated region fallthrough
CT: control target
= control target key end

     0   :  { %v2238_v0 = vmov 3   ;;  %v2239_v2 = vmov 5   ;;  %v2240_v3 = vmov 4   ;;  %v3085_v11 = vmov 0.0   ;;  %s3080_s1 = inlined_call_operand.vmem [shape: f32[2,6], index: 1, kind: input, shape index: {}]   ;;  %s3081_s0 = inlined_call_operand.vmem [shape: f32[2,28,28], index: 0, kind: input, shape index: {}]   ;;  %s3082_s2 = inlined_call_operand.vmem [shape: f32[1,896], index: 2, kind: input, shape index: {}]   ;;  %s3083_s3 = inlined_call_operand.vmem [shape: f32[1,896], index: 3, kind: input, shape index: {}]   ;;  %s3084_s4 = inlined_call_operand.vmem [shape: f32[2,896], index: 4, kind: output, shape index: {}]  }
   0x1   :  { %2231 = vset.pattern.permute.xlu0 %v2238_v0  ;;  %v25_v1 = vld [vmem:[%s3080_s1] sm:$0x3]  ;;  %2233 = vset.pattern.permute.xlu1 %v2239_v2  ;;  %v22_v5 = vld [vmem:[%s3081_s0 + $0x28] sm:$0xff]  ;;  %v23_v7 = vld [vmem:[%s3081_s0 + $0x30] sm:$0xff]  ;;  %v2242_v13 = vmov 1   ;;  %v2243_v14 = vmov 0   ;;  %v34_v16 = vlaneseq }
   0x2   :  { %142 = vperm.xlu0 %2231, %v25_v1   ;;  %171 = vperm.xlu1 %2233, %v25_v1   ;;  %v21_v4 = vld [vmem:[%s3081_s0 + $0x20] sm:$0xff]  ;;  %v18_v8 = vld [vmem:[%s3081_s0 + $0x8] sm:$0xff]  ;;  %v24_v9 = vld [vmem:[%s3081_s0 + $0x38] sm:$0xf]  ;;  %v2244_v15 = vmov 2   ;;  %vm1023_vm0 = vcmask 1043456  }
   0x3   :  { %v17_v6 = vld [vmem:[%s3081_s0] sm:$0xff]  ;;  %v19_v10 = vld [vmem:[%s3081_s0 + $0x10] sm:$0xff]  ;;  %1109 = vmatprep.mubr.f32.mxu0 %v3085_v11  ;;  %1198 = vmatprep.mubr.f32.mxu1 %v3085_v11  ;;  %v20_v12 = vld [vmem:[%s3081_s0 + $0x18] sm:$0xf]  ;;  %v2301_v17 = vshrl.u32 %v34_v16, 7  ;;  %vm1010_vm1 = vcmask 228352  }
   0x4   :  { %v26_v20 = vld [vmem:[%s3082_s2] sm:$0xff]  ;;  %vm2095_vm2 = vcmask 1041409   ;;  %vm2097_vm3 = vcmask 1043459   ;;  %vm2099_vm4 = vcmask 1045509   ;;  %vm2101_vm5 = vcmask 1047559  }
   0x5   :  { %v2304_v18 = vsub.s32 0, %v2301_v17  ;;  %v2307_v19 = vsub.s32 1, %v2301_v17  ;;  %v2313_v21 = vsub.s32 2, %v2301_v17  ;;  %v2316_v22 = vsub.s32 3, %v2301_v17  ;;  %v27_v26 = vld [vmem:[%s3083_s3] sm:$0xff] }
   0x6   :  { %2232 = vset.pattern.permute.xlu0 %v2240_v3  ;;  %v2319_v23 = vsub.s32 4, %v2301_v17  ;;  %v2322_v24 = vsub.s32 5, %v2301_v17  ;;  %v2325_v25 = vsub.s32 6, %v2301_v17 }
   0x7   :  { %153 = vperm.xlu0 %2232, %v25_v1   ;;  %v2331_v27 = vrot.slane %v26_v20, %v2304_v18  ;;  %v2334_v28 = vrot.slane %v26_v20, %v2307_v19  ;;  %v2337_v30 = vrot.slane %v26_v20, %v2313_v21  ;;  %v2340_v31 = vrot.slane %v26_v20, %v2316_v22 }
   0x8   :  { %v2343_v32 = vrot.slane %v26_v20, %v2319_v23  ;;  %v2346_v33 = vrot.slane %v26_v20, %v2322_v24  ;;  %v2349_v34 = vrot.slane %v27_v26, %v2304_v18  ;;  %v2352_v35 = vrot.slane %v27_v26, %v2307_v19 }
   0x9   :  { %v2355_v36 = vrot.slane %v27_v26, %v2313_v21  ;;  %v2358_v37 = vrot.slane %v27_v26, %v2316_v22  ;;  %v2361_v38 = vrot.slane %v26_v20, %v2325_v25  ;;  %v2364_v39 = vrot.slane %v27_v26, %v2319_v23 }
   0xa   :  { %v2367_v40 = vrot.slane %v27_v26, %v2322_v24  ;;  %v2370_v41 = vrot.slane %v27_v26, %v2325_v25 }
  0x25   :  { %1397 = vxpose.xlu0.b32.start [1/4] (short) (narrow) %v21_v4, 32 }
  0x29   :  { %1398 = vxpose.xlu0.b32.cont [2/4] (short) (narrow) %v22_v5, 32  ;;  %v2245_v5 = vmov 1966171168  }
  0x2b   :  { %978 = vxpose.xlu1.b32.start [1/4] (short) (narrow) %v17_v6, 32  ;;  %v257_v6 = vunpack.c.l.s4 %v2245_v5 }
  0x2d   :  { %1399 = vxpose.xlu0.b32.cont [3/4] (short) (narrow) %v23_v7, 32 }
  0x2f   :  { %979 = vxpose.xlu1.b32.cont [2/4] (short) (narrow) %v18_v8, 32 }
  0x31   :  { %1400 = vxpose.xlu0.b32.end [4/4] (short) (narrow) %v24_v9, 32 }
  0x33   :  { %980 = vxpose.xlu1.b32.cont [3/4] (short) (narrow) %v19_v10, 32 }
  0x37   :  { %981 = vxpose.xlu1.b32.end [4/4] (short) (narrow) %v20_v12, 32 }
  0x55   :  { %2235 = vset.pattern.permute.xlu1 %v2242_v13 }
  0x56   :  { %77 = vperm.xlu1 %2235, %v25_v1  }
  0x5a   :  { %2234 = vset.pattern.permute.xlu0 %v2243_v14  ;;  %2236 = vset.pattern.permute.xlu1 %v2244_v15 }
  0x5b   :  { %30 = vperm.xlu0 %2234, %v25_v1   ;;  %131 = vperm.xlu1 %2236, %v25_v1  }
  0x5f   :  { %2237 = vset.pattern.permute.xlu0 %v2239_v2 }
  0x7d   :  { %v143_v29 = vpop.permute.xlu0 %142  ;;  %v172_v61 = vpop.permute.xlu1 %171 }
  0x7e   :  { %v145_v42 = vmul.f32 %v143_v29, %v2331_v27  ;;  %v146_v43 = vmul.f32 %v143_v29, %v2334_v28  ;;  %v147_v44 = vmul.f32 %v143_v29, %v2337_v30  ;;  %v148_v45 = vmul.f32 %v143_v29, %v2340_v31 }
  0x7f   :  { %v149_v46 = vmul.f32 %v143_v29, %v2343_v32  ;;  %v150_v47 = vmul.f32 %v143_v29, %v2346_v33  ;;  %v151_v53 = vmul.f32 %v143_v29, %v2361_v38 }
  0x82   :  { %v154_v48 = vpop.permute.xlu0 %153 }
  0x83   :  { %v156_v49 = vmul.f32 %v154_v48, %v2349_v34  ;;  %v157_v50 = vmul.f32 %v154_v48, %v2352_v35  ;;  %v158_v51 = vmul.f32 %v154_v48, %v2355_v36  ;;  %v159_v52 = vmul.f32 %v154_v48, %v2358_v37 }
  0x84   :  { %v160_v54 = vmul.f32 %v154_v48, %v2364_v39  ;;  %v161_v55 = vmul.f32 %v154_v48, %v2367_v40  ;;  %v162_v56 = vmul.f32 %v154_v48, %v2370_v41 }
  0x85   :  { %v163_v57 = vadd.f32 %v156_v49, %v145_v42  ;;  %v164_v58 = vadd.f32 %v157_v50, %v146_v43  ;;  %v165_v59 = vadd.f32 %v158_v51, %v147_v44  ;;  %v166_v60 = vadd.f32 %v159_v52, %v148_v45 }
  0x86   :  { %v167_v62 = vadd.f32 %v160_v54, %v149_v46  ;;  %v168_v63 = vadd.f32 %v161_v55, %v150_v47  ;;  %v169_v0 = vadd.f32 %v162_v56, %v151_v53  ;;  %v258_v44 = vunpack.c.0.s8 %v257_v6 }
  0x87   :  { %v174_v1 = vadd.f32 %v172_v61, %v163_v57  ;;  %v175_v2 = vadd.f32 %v172_v61, %v164_v58  ;;  %v176_v3 = vadd.f32 %v172_v61, %v165_v59  ;;  %v177_v4 = vadd.f32 %v172_v61, %v166_v60 }
  0x88   :  { %v178_v7 = vadd.f32 %v172_v61, %v167_v62  ;;  %v179_v8 = vadd.f32 %v172_v61, %v168_v63  ;;  %v180_v9 = vadd.f32 %v172_v61, %v169_v0  ;;  %v2387_v59 = vsub.s32 %v258_v44, %v2301_v17 }
  0x89   :  { %v209_v10 = vadd.f32 1.0, %v174_v1  ;;  %v210_v12 = vadd.f32 1.0, %v175_v2  ;;  %v211_v13 = vadd.f32 1.0, %v176_v3  ;;  %v212_v14 = vadd.f32 1.0, %v177_v4 }
  0x8a   :  { %v213_v15 = vadd.f32 1.0, %v178_v7  ;;  %v214_v16 = vadd.f32 1.0, %v179_v8  ;;  %v215_v20 = vadd.f32 1.0, %v180_v9 }
  0x8b   :  { %v216_v26 = vmul.f32 28.0, %v209_v10  ;;  %v217_v29 = vmul.f32 28.0, %v210_v12  ;;  %v218_v42 = vmul.f32 28.0, %v211_v13  ;;  %v219_v43 = vmul.f32 28.0, %v212_v14 }
  0x8c   :  { %v220_v45 = vmul.f32 28.0, %v213_v15  ;;  %v221_v46 = vmul.f32 28.0, %v214_v16  ;;  %v222_v47 = vmul.f32 28.0, %v215_v20  ;;  %v241_v10 = vadd.s32 24, %v2301_v17 }
  0x8d   :  { %v2125_v48 = vadd.f32 -1.0, %v216_v26  ;;  %v2126_v49 = vadd.f32 -1.0, %v217_v29  ;;  %v2127_v50 = vadd.f32 -1.0, %v218_v42  ;;  %v2128_v51 = vadd.f32 -1.0, %v219_v43 }
  0x8e   :  { %v2129_v52 = vadd.f32 -1.0, %v220_v45  ;;  %v2130_v53 = vadd.f32 -1.0, %v221_v46  ;;  %v2131_v54 = vadd.f32 -1.0, %v222_v47  ;;  %v240_v14 = vadd.s32 16, %v2301_v17 }
  0x8f   :  { %v230_v55 = vmul.f32 0.5, %v2125_v48  ;;  %v231_v56 = vmul.f32 0.5, %v2126_v49  ;;  %v232_v57 = vmul.f32 0.5, %v2127_v50  ;;  %v233_v58 = vmul.f32 0.5, %v2128_v51 }
  0x90   :  { %v234_v60 = vmul.f32 0.5, %v2129_v52  ;;  %v235_v61 = vmul.f32 0.5, %v2130_v53  ;;  %v236_v62 = vmul.f32 0.5, %v2131_v54  ;;  %v239_v15 = vadd.s32 8, %v2301_v17 }
  0x91   :  { %v253_v63 = vcombine.low %v230_v55, %v231_v56  ;;  %v254_v0 = vcombine.low %v232_v57, %v233_v58  ;;  %v2402_v42 = vcvt.s32.f32 %v241_v10  ;;  %v2404_v43 = vcvt.s32.f32 %v240_v14 }
  0x92   :  { %v255_v1 = vcombine.low %v234_v60, %v235_v61  ;;  %v283_v5 = vrot.slane %v236_v62, %v2387_v59  ;;  %v2406_v44 = vcvt.s32.f32 %v239_v15  ;;  %v2409_v45 = vcvt.s32.f32 %v2301_v17 }
  0x93   :  { %v262_v2 = vrot.slane %v253_v63, %v2387_v59  ;;  %v269_v3 = vrot.slane %v254_v0, %v2387_v59 }
  0x94   :  { %v276_v4 = vrot.slane %v255_v1, %v2387_v59 }
  0x95   :  { %v284_v6 = vcombine.low %v262_v2, %v269_v3  ;;  %v285_v7 = vcombine.high %v262_v2, %v269_v3 }
  0x96   :  { %v286_v8 = vcombine.low %v276_v4, %v283_v5  ;;  %v287_v9 = vcombine.high %v276_v4, %v283_v5 }
  0x97   :  { %v294_v12 = vrot.slane %v284_v6, %v2387_v59  ;;  %v301_v13 = vrot.slane %v285_v7, %v2387_v59 }
  0x98   :  { %v308_v16 = vrot.slane %v286_v8, %v2387_v59  ;;  %v315_v20 = vrot.slane %v287_v9, %v2387_v59 }
  0x9a   :  { %v316_v26 = vcombine.low %v294_v12, %v308_v16  ;;  %v2400_v29 = vcombine.low %v301_v13, %v315_v20 }
  0x9c   :  { %v325_v46 = vrot.slane %v316_v26, %v2307_v19  ;;  %v333_v47 = vrot.slane %v316_v26, %v2316_v22  ;;  %v2414_v48 = vrot.slane %v316_v26, %v2304_v18  ;;  %v2417_v49 = vrot.slane %v316_v26, %v2313_v21 }
  0x9d   :  { %v2420_v50 = vrot.slane %v316_v26, %v2322_v24  ;;  %v2423_v51 = vrot.slane %v316_v26, %v2325_v25  ;;  %v2426_v52 = vrot.slane %v316_v26, %v2319_v23  ;;  %v2430_v53 = vrot.slane %v2400_v29, %v2307_v19 }
  0x9e   :  { %v410_v54 = vsub.f32 %v2402_v42, %v325_v46  ;;  %v412_v55 = vsub.f32 %v2402_v42, %v333_v47  ;;  %v409_v56 = vsub.f32 %v2402_v42, %v2414_v48  ;;  %v411_v57 = vsub.f32 %v2402_v42, %v2417_v49 }
  0x9f   :  { %v403_v58 = vsub.f32 %v2404_v43, %v325_v46  ;;  %v405_v60 = vsub.f32 %v2404_v43, %v333_v47  ;;  %v402_v61 = vsub.f32 %v2404_v43, %v2414_v48  ;;  %v404_v62 = vsub.f32 %v2404_v43, %v2417_v49 }
  0xa0   :  { %v466_v63 = vand.u32 2147483647, %v410_v54  ;;  %v468_v0 = vand.u32 2147483647, %v412_v55  ;;  %v465_v1 = vand.u32 2147483647, %v409_v56  ;;  %v396_v2 = vsub.f32 %v2406_v44, %v325_v46 }
  0xa1   :  { %v467_v3 = vand.u32 2147483647, %v411_v57  ;;  %v459_v4 = vand.u32 2147483647, %v403_v58  ;;  %v461_v5 = vand.u32 2147483647, %v405_v60  ;;  %v398_v6 = vsub.f32 %v2406_v44, %v333_v47 }
  0xa2   :  { %v522_v7 = vsub.f32 1.0, %v466_v63  ;;  %v524_v8 = vsub.f32 1.0, %v468_v0  ;;  %v521_v9 = vsub.f32 1.0, %v465_v1  ;;  %v458_v10 = vand.u32 2147483647, %v402_v61 }
  0xa3   :  { %v523_v12 = vsub.f32 1.0, %v467_v3  ;;  %v515_v13 = vsub.f32 1.0, %v459_v4  ;;  %v517_v14 = vsub.f32 1.0, %v461_v5  ;;  %v460_v15 = vand.u32 2147483647, %v404_v62 }
  0xa4   :  { %v578_v16 = vmax.f32 %v522_v7, 0.0  ;;  %v580_v20 = vmax.f32 %v524_v8, 0.0  ;;  %v577_v26 = vmax.f32 %v521_v9, 0.0  ;;  %v514_v54 = vsub.f32 1.0, %v458_v10 }
  0xa5   :  { %v579_v55 = vmax.f32 %v523_v12, 0.0  ;;  %v571_v56 = vmax.f32 %v515_v13, 0.0  ;;  %v573_v11 = vmax.f32 %v517_v14, 0.0  ;;  %v516_v57 = vsub.f32 1.0, %v460_v15 }
  0xa6   :  { %2132 = vmatprep.subr.msk.mxu0 %vm1023_vm0, %v578_v16  ;;  %2138 = vmatprep.subr.msk.mxu1 %vm1023_vm0, %v580_v20  ;;  %v570_v58 = vmax.f32 %v514_v54, 0.0  ;;  %v452_v60 = vand.u32 2147483647, %v396_v2  ;;  %v454_v63 = vand.u32 2147483647, %v398_v6  ;;  %v395_v61 = vsub.f32 %v2406_v44, %v2414_v48 }
  0xa7   :  { %2133 = vmatpush1.msk.msra.mxu0 %vm1023_vm0, %v577_v26  ;;  %2139 = vmatpush1.msk.msra.mxu1 %vm1023_vm0, %v579_v55  ;;  %v572_v62 = vmax.f32 %v516_v57, 0.0  ;;  %v397_v0 = vsub.f32 %v2406_v44, %v2417_v49  ;;  %v389_v1 = vsub.f32 %v2409_v45, %v325_v46  ;;  %v391_v3 = vsub.f32 %v2409_v45, %v333_v47  ;;  %v2460_v20 = vpop.trf.xlu1 }
  0xa8   :  { %1071 = vmatprep.subr.mxu0 %v571_v56  ;;  %1160 = vmatprep.subr.mxu1 %v573_v11  ;;  %v508_v2 = vsub.f32 1.0, %v452_v60  ;;  %v510_v4 = vsub.f32 1.0, %v454_v63  ;;  %v451_v5 = vand.u32 2147483647, %v395_v61  ;;  %v388_v6 = vsub.f32 %v2409_v45, %v2414_v48 }
  0xa9   :  { %1072 = vmatpush1.msra.mxu0 %v570_v58  ;;  %1161 = vmatpush1.msra.mxu1 %v572_v62  ;;  %v453_v7 = vand.u32 2147483647, %v397_v0  ;;  %v445_v8 = vand.u32 2147483647, %v389_v1  ;;  %v447_v9 = vand.u32 2147483647, %v391_v3  ;;  %v390_v10 = vsub.f32 %v2409_v45, %v2417_v49 }
  0xaa   :  { %v564_v12 = vmax.f32 %v508_v2, 0.0  ;;  %v566_v46 = vmax.f32 %v510_v4, 0.0  ;;  %v507_v13 = vsub.f32 1.0, %v451_v5  ;;  %v444_v47 = vand.u32 2147483647, %v388_v6 }
  0xab   :  { %v509_v14 = vsub.f32 1.0, %v453_v7  ;;  %v501_v11 = vsub.f32 1.0, %v445_v8  ;;  %v503_v15 = vsub.f32 1.0, %v447_v9  ;;  %v446_v16 = vand.u32 2147483647, %v390_v10 }
  0xac   :  { %1073 = vmatprep.subr.mxu0 %v564_v12  ;;  %1162 = vmatprep.subr.mxu1 %v566_v46  ;;  %v563_v48 = vmax.f32 %v507_v13, 0.0  ;;  %v500_v26 = vsub.f32 1.0, %v444_v47  ;;  %v414_v54 = vsub.f32 %v2402_v42, %v2420_v50  ;;  %v415_v49 = vsub.f32 %v2402_v42, %v2423_v51  ;;  %v2478_v12 = vpop.trf.xlu1 }
  0xad   :  { %v565_v55 = vmax.f32 %v509_v14, 0.0  ;;  %v557_v56 = vmax.f32 %v501_v11, 0.0  ;;  %v559_v57 = vmax.f32 %v503_v15, 0.0  ;;  %v502_v58 = vsub.f32 1.0, %v446_v16 }
  0xae   :  { %1074 = vmatpush1.msra.mxu0 %v563_v48  ;;  %v556_v60 = vmax.f32 %v500_v26, 0.0  ;;  %v470_v63 = vand.u32 2147483647, %v414_v54  ;;  %v471_v61 = vand.u32 2147483647, %v415_v49  ;;  %v413_v62 = vsub.f32 %v2402_v42, %v2426_v52 }
  0xaf   :  { %1163 = vmatpush1.msra.mxu1 %v565_v55  ;;  %1075 = vmatprep.subr.mxu0 %v557_v56  ;;  %v558_v0 = vmax.f32 %v502_v58, 0.0  ;;  %v407_v1 = vsub.f32 %v2404_v43, %v2420_v50  ;;  %v408_v3 = vsub.f32 %v2404_v43, %v2423_v51  ;;  %v406_v2 = vsub.f32 %v2404_v43, %v2426_v52 }
  0xb0   :  { %1164 = vmatprep.subr.mxu1 %v559_v57  ;;  %1076 = vmatpush1.msra.mxu0 %v556_v60  ;;  %v526_v4 = vsub.f32 1.0, %v470_v63  ;;  %v527_v5 = vsub.f32 1.0, %v471_v61  ;;  %v469_v6 = vand.u32 2147483647, %v413_v62  ;;  %v400_v7 = vsub.f32 %v2406_v44, %v2420_v50 }
  0xb1   :  { %1165 = vmatpush1.msra.mxu1 %v558_v0  ;;  %2134 = vmatmul.mubr.msk.f32.vlgmr.msra.gmra.mxu0 %vm1010_vm1, %v2460_v20  ;;  %v463_v8 = vand.u32 2147483647, %v407_v1  ;;  %v464_v9 = vand.u32 2147483647, %v408_v3  ;;  %v462_v10 = vand.u32 2147483647, %v406_v2  ;;  %v401_v46 = vsub.f32 %v2406_v44, %v2423_v51 }
  0xb2   :  { %2140 = vmatmul.mubr.msk.f32.vlgmr.msra.gmra.mxu1 %vm1010_vm1, %v2460_v20  ;;  %v582_v13 = vmax.f32 %v526_v4, 0.0  ;;  %v583_v47 = vmax.f32 %v527_v5, 0.0  ;;  %v525_v14 = vsub.f32 1.0, %v469_v6  ;;  %v3088_v11 = vmov 0.0   ;;  %v2502_v4 = vpop.trf.xlu1 }
  0xb3   :  { %1115 = vmatprep.mubr.f32.mxu0 %v3088_v11  ;;  %v456_v15 = vand.u32 2147483647, %v400_v7  ;;  %v519_v16 = vsub.f32 1.0, %v463_v8  ;;  %v520_v48 = vsub.f32 1.0, %v464_v9  ;;  %1204 = vmatprep.mubr.f32.mxu1 %v3088_v11  ;;  %v518_v26 = vsub.f32 1.0, %v462_v10 }
  0xb4   :  { %v457_v54 = vand.u32 2147483647, %v401_v46  ;;  %2144 = vmatprep.subr.msk.mxu0 %vm1023_vm0, %v582_v13  ;;  %2194 = vmatprep.subr.msk.mxu1 %vm1023_vm0, %v583_v47  ;;  %v581_v49 = vmax.f32 %v525_v14, 0.0  ;;  %v399_v56 = vsub.f32 %v2406_v44, %v2426_v52  ;;  %v393_v57 = vsub.f32 %v2409_v45, %v2420_v50 }
  0xb5   :  { %v512_v55 = vsub.f32 1.0, %v456_v15  ;;  %2195 = vmatpush3.msk.msra.mxu1 %vm1023_vm0, %v583_v47  ;;  %v575_v58 = vmax.f32 %v519_v16, 0.0  ;;  %v576_v60 = vmax.f32 %v520_v48, 0.0  ;;  %v574_v63 = vmax.f32 %v518_v26, 0.0  ;;  %2135 = vmatmul.mubr.msk.f32.gmra.mxu0 %vm1010_vm1, %v2478_v12 }
  0xb6   :  { %v513_v61 = vsub.f32 1.0, %v457_v54  ;;  %2145 = vmatpush1.msk.msra.mxu0 %vm1023_vm0, %v581_v49  ;;  %2141 = vmatmul.mubr.msk.f32.gmra.mxu1 %vm1010_vm1, %v2478_v12  ;;  %v455_v0 = vand.u32 2147483647, %v399_v56  ;;  %v449_v1 = vand.u32 2147483647, %v393_v57  ;;  %v394_v50 = vsub.f32 %v2409_v45, %v2423_v51 }
  0xb7   :  { %v568_v62 = vmax.f32 %v512_v55, 0.0  ;;  %1249 = vmatprep.subr.mxu0 %v575_v58  ;;  %2196 = vmatprep.subr.mxu1 %v576_v60  ;;  %v392_v2 = vsub.f32 %v2409_v45, %v2426_v52  ;;  %v438_v5 = vsub.f32 %v2402_v42, %v2430_v53  ;;  %v2508_v6 = vrot.slane %v2400_v29, %v2316_v22 }
  0xb8   :  { %v569_v3 = vmax.f32 %v513_v61, 0.0  ;;  %1250 = vmatpush1.msra.mxu0 %v574_v63  ;;  %2197 = vmatpush3.msra.mxu1 %v576_v60  ;;  %v511_v7 = vsub.f32 1.0, %v455_v0  ;;  %v505_v8 = vsub.f32 1.0, %v449_v1  ;;  %v450_v51 = vand.u32 2147483647, %v394_v50 }
  0xb9   :  { %v2512_v9 = vrot.slane %v2400_v29, %v2304_v18  ;;  %1251 = vmatprep.subr.mxu0 %v568_v62  ;;  %v448_v52 = vand.u32 2147483647, %v392_v2  ;;  %v494_v10 = vand.u32 2147483647, %v438_v5  ;;  %v440_v46 = vsub.f32 %v2402_v42, %v2508_v6  ;;  %1121 = vmatprep.mubr.f32.mxu0 %v3088_v11  ;;  %v2535_v62 = vpop.trf.xlu1 }
  0xba   :  { %2198 = vmatprep.subr.mxu1 %v569_v3  ;;  %v2518_v13 = vrot.slane %v2400_v29, %v2313_v21  ;;  %v567_v47 = vmax.f32 %v511_v7, 0.0  ;;  %v561_v14 = vmax.f32 %v505_v8, 0.0  ;;  %v506_v15 = vsub.f32 1.0, %v450_v51  ;;  %1210 = vmatprep.mubr.f32.mxu1 %v3088_v11 }
  0xbb   :  { %2199 = vmatpush3.msra.mxu1 %v569_v3  ;;  %v437_v16 = vsub.f32 %v2402_v42, %v2512_v9  ;;  %v504_v48 = vsub.f32 1.0, %v448_v52  ;;  %2136 = vmatmul.mubr.msk.f32.gmra.mxu0 %vm1010_vm1, %v2502_v4  ;;  %v550_v26 = vsub.f32 1.0, %v494_v10  ;;  %v496_v54 = vand.u32 2147483647, %v440_v46 }
  0xbc   :  { %v439_v49 = vsub.f32 %v2402_v42, %v2518_v13  ;;  %1252 = vmatpush1.msra.mxu0 %v567_v47  ;;  %v562_v55 = vmax.f32 %v506_v15, 0.0  ;;  %2142 = vmatmul.mubr.msk.f32.gmra.mxu1 %vm1010_vm1, %v2502_v4  ;;  %v431_v57 = vsub.f32 %v2404_v43, %v2430_v53  ;;  %v433_v58 = vsub.f32 %v2404_v43, %v2508_v6 }
  0xbd   :  { %v493_v56 = vand.u32 2147483647, %v437_v16  ;;  %1253 = vmatprep.subr.mxu0 %v561_v14  ;;  %v560_v60 = vmax.f32 %v504_v48, 0.0  ;;  %v606_v63 = vmax.f32 %v550_v26, 0.0  ;;  %v552_v61 = vsub.f32 1.0, %v496_v54  ;;  %1127 = vmatprep.mubr.f32.mxu0 %v3088_v11 }
  0xbe   :  { %v495_v0 = vand.u32 2147483647, %v439_v49  ;;  %2200 = vmatprep.subr.mxu1 %v562_v55  ;;  %1216 = vmatprep.mubr.f32.mxu1 %v3088_v11  ;;  %v487_v50 = vand.u32 2147483647, %v431_v57  ;;  %v489_v3 = vand.u32 2147483647, %v433_v58  ;;  %v430_v2 = vsub.f32 %v2404_v43, %v2512_v9 }
  0xbf   :  { %v549_v1 = vsub.f32 1.0, %v493_v56  ;;  %1254 = vmatpush1.msra.mxu0 %v560_v60  ;;  %2201 = vmatpush3.msra.mxu1 %v562_v55  ;;  %v608_v5 = vmax.f32 %v552_v61, 0.0  ;;  %v432_v8 = vsub.f32 %v2404_v43, %v2518_v13  ;;  %v424_v51 = vsub.f32 %v2406_v44, %v2430_v53 }
  0xc0   :  { %v551_v7 = vsub.f32 1.0, %v495_v0  ;;  %2155 = vmatprep.subr.msk.mxu1 %vm1023_vm0, %v606_v63  ;;  %2137 = vmatmul.mubr.msk.f32.gmra.mxu0 %vm1010_vm1, %v2535_v62  ;;  %v543_v10 = vsub.f32 1.0, %v487_v50  ;;  %v545_v46 = vsub.f32 1.0, %v489_v3  ;;  %v486_v47 = vand.u32 2147483647, %v430_v2 }
  0xc1   :  { %v605_v52 = vmax.f32 %v549_v1, 0.0  ;;  %2161 = vmatprep.subr.msk.mxu0 %vm1023_vm0, %v608_v5  ;;  %2143 = vmatmul.mubr.msk.f32.gmra.mxu1 %vm1010_vm1, %v2535_v62  ;;  %v488_v15 = vand.u32 2147483647, %v432_v8  ;;  %v480_v16 = vand.u32 2147483647, %v424_v51  ;;  %v426_v48 = vsub.f32 %v2406_v44, %v2508_v6 }
  0xc2   :  { %v607_v14 = vmax.f32 %v551_v7, 0.0  ;;  %2202 = vmatprep.mubr.msk.f32.mxu1 %vm1010_vm1, %v2460_v20  ;;  %1287 = vmatprep.mubr.f32.mxu0 %v3088_v11  ;;  %v599_v26 = vmax.f32 %v543_v10, 0.0  ;;  %v601_v54 = vmax.f32 %v545_v46, 0.0  ;;  %v542_v49 = vsub.f32 1.0, %v486_v47  ;;  %v2575_v46 = vpop.trf.xlu0 }
  0xc3   :  { %v423_v55 = vsub.f32 %v2406_v44, %v2512_v9  ;;  %v544_v56 = vsub.f32 1.0, %v488_v15  ;;  %v536_v57 = vsub.f32 1.0, %v480_v16  ;;  %v482_v58 = vand.u32 2147483647, %v426_v48 }
  0xc4   :  { %v425_v60 = vsub.f32 %v2406_v44, %v2518_v13  ;;  %2146 = vmatmul.mubr.msk.f32.vlgmr.msra.gmra.mxu0 %vm1010_vm1, %v2460_v20  ;;  %v598_v63 = vmax.f32 %v542_v49, 0.0  ;;  %v417_v0 = vsub.f32 %v2409_v45, %v2430_v53  ;;  %v419_v1 = vsub.f32 %v2409_v45, %v2508_v6 }
  0xc5   :  { %v479_v61 = vand.u32 2147483647, %v423_v55  ;;  %2203 = vmatmul.mubr.msk.f32.vlgmr.msra.gmra.mxu1 %vm1010_vm1, %v2478_v12  ;;  %2162 = vmatpush1.msk.msra.mxu0 %vm1023_vm0, %v607_v14  ;;  %v600_v50 = vmax.f32 %v544_v56, 0.0  ;;  %v592_v3 = vmax.f32 %v536_v57, 0.0  ;;  %v538_v2 = vsub.f32 1.0, %v482_v58 }
  0xc6   :  { %v481_v5 = vand.u32 2147483647, %v425_v60  ;;  %2156 = vmatpush1.msk.msra.mxu1 %vm1023_vm0, %v605_v52  ;;  %2205 = vmatprep.mubr.msk.f32.mxu1 %vm1010_vm1, %v2502_v4  ;;  %v473_v7 = vand.u32 2147483647, %v417_v0  ;;  %v475_v53 = vand.u32 2147483647, %v419_v1  ;;  %v416_v6 = vsub.f32 %v2409_v45, %v2512_v9 }
  0xc7   :  { %v535_v20 = vsub.f32 1.0, %v479_v61  ;;  %1488 = vmatprep.subr.mxu1 %v599_v26  ;;  %1577 = vmatprep.subr.mxu0 %v601_v54  ;;  %v594_v8 = vmax.f32 %v538_v2, 0.0  ;;  %v418_v10 = vsub.f32 %v2409_v45, %v2518_v13  ;;  %v369_v52 = vrot.slane %v2400_v29, %v2322_v24 }
  0xc8   :  { %v537_v51 = vsub.f32 1.0, %v481_v5  ;;  %1489 = vmatpush1.msra.mxu1 %v598_v63  ;;  %1578 = vmatpush1.msra.mxu0 %v600_v50  ;;  %v529_v14 = vsub.f32 1.0, %v473_v7  ;;  %v531_v15 = vsub.f32 1.0, %v475_v53  ;;  %v472_v16 = vand.u32 2147483647, %v416_v6  ;;  %v2598_v5 = vpop.trf.xlu0 }
  0xc9   :  { %v591_v47 = vmax.f32 %v535_v20, 0.0  ;;  %1293 = vmatprep.mubr.f32.mxu0 %v3088_v11  ;;  %1490 = vmatprep.subr.mxu1 %v592_v3  ;;  %v474_v48 = vand.u32 2147483647, %v418_v10  ;;  %v442_v26 = vsub.f32 %v2402_v42, %v369_v52  ;;  %v2583_v13 = vrot.slane %v2400_v29, %v2325_v25 }
  0xca   :  { %v593_v9 = vmax.f32 %v537_v51, 0.0  ;;  %1579 = vmatprep.subr.mxu0 %v594_v8  ;;  %2147 = vmatmul.mubr.msk.f32.gmra.mxu0 %vm1010_vm1, %v2478_v12  ;;  %v585_v54 = vmax.f32 %v529_v14, 0.0  ;;  %v587_v49 = vmax.f32 %v531_v15, 0.0  ;;  %v528_v55 = vsub.f32 1.0, %v472_v16 }
  0xcb   :  { %v365_v56 = vrot.slane %v2400_v29, %v2319_v23  ;;  %2206 = vmatmul.mubr.msk.f32.gmra.mxu1 %vm1010_vm1, %v2535_v62  ;;  %v530_v57 = vsub.f32 1.0, %v474_v48  ;;  %v498_v58 = vand.u32 2147483647, %v442_v26  ;;  %v443_v60 = vsub.f32 %v2402_v42, %v2583_v13  ;;  %1299 = vmatprep.mubr.f32.mxu0 %v3088_v11 }
  0xcc   :  { %1580 = vmatpush1.msra.mxu0 %v593_v9  ;;  %v435_v63 = vsub.f32 %v2404_v43, %v369_v52  ;;  %1491 = vmatpush1.msra.mxu1 %v591_v47  ;;  %v584_v12 = vmax.f32 %v528_v55, 0.0  ;;  %v428_v29 = vsub.f32 %v2406_v44, %v369_v52  ;;  %v421_v47 = vsub.f32 %v2409_v45, %v369_v52 }
  0xcd   :  { %1581 = vmatprep.subr.mxu0 %v587_v49  ;;  %v441_v61 = vsub.f32 %v2402_v42, %v365_v56  ;;  %v434_v0 = vsub.f32 %v2404_v43, %v365_v56  ;;  %1492 = vmatprep.subr.mxu1 %v585_v54  ;;  %v586_v1 = vmax.f32 %v530_v57, 0.0  ;;  %v554_v50 = vsub.f32 1.0, %v498_v58  ;;  %v1415_v58 = vpop.trf.xlu0 }
  0xce   :  { %v499_v3 = vand.u32 2147483647, %v443_v60  ;;  %v491_v2 = vand.u32 2147483647, %v435_v63  ;;  %1493 = vmatpush1.msra.mxu1 %v584_v12  ;;  %1526 = vmatprep.mubr.f32.mxu1 %v3088_v11  ;;  %v484_v53 = vand.u32 2147483647, %v428_v29  ;;  %v427_v6 = vsub.f32 %v2406_v44, %v365_v56 }
  0xcf   :  { %v497_v20 = vand.u32 2147483647, %v441_v61  ;;  %v490_v7 = vand.u32 2147483647, %v434_v0  ;;  %1582 = vmatpush1.msra.mxu0 %v586_v1  ;;  %v610_v8 = vmax.f32 %v554_v50, 0.0  ;;  %2157 = vmatmul.mubr.msk.f32.vlgmr.msra.gmra.mxu1 %vm1010_vm1, %v2575_v46  ;;  %v420_v54 = vsub.f32 %v2409_v45, %v365_v56 }
  0xd0   :  { %v555_v51 = vsub.f32 1.0, %v499_v3  ;;  %v547_v10 = vsub.f32 1.0, %v491_v2  ;;  %2148 = vmatmul.mubr.msk.f32.gmra.mxu0 %vm1010_vm1, %v2502_v4  ;;  %1532 = vmatprep.mubr.f32.mxu1 %v3088_v11  ;;  %v483_v16 = vand.u32 2147483647, %v427_v6  ;;  %v540_v48 = vsub.f32 1.0, %v484_v53 }
  0xd1   :  { %v553_v14 = vsub.f32 1.0, %v497_v20  ;;  %v546_v15 = vsub.f32 1.0, %v490_v7  ;;  %2167 = vmatprep.subr.msk.mxu1 %vm1023_vm0, %v610_v8  ;;  %1305 = vmatprep.mubr.f32.mxu0 %v3088_v11  ;;  %v477_v26 = vand.u32 2147483647, %v421_v47  ;;  %v476_v57 = vand.u32 2147483647, %v420_v54  ;;  %v1416_v53 = vpop.trf.xlu0  ;;  %v78_v47 = vpop.permute.xlu1 %77 }
  0xd2   :  { %v611_v9 = vmax.f32 %v555_v51, 0.0  ;;  %v603_v55 = vmax.f32 %v547_v10, 0.0  ;;  %v539_v52 = vsub.f32 1.0, %v483_v16  ;;  %v436_v60 = vsub.f32 %v2404_v43, %v2583_v13 }
  0xd3   :  { %v609_v49 = vmax.f32 %v553_v14, 0.0  ;;  %2158 = vmatmul.mubr.msk.f32.gmra.mxu1 %vm1010_vm1, %v2598_v5  ;;  %v533_v4 = vsub.f32 1.0, %v477_v26  ;;  %v429_v63 = vsub.f32 %v2406_v44, %v2583_v13  ;;  %v602_v56 = vmax.f32 %v546_v15, 0.0 }
  0xd4   :  { %2208 = vmatprep.subr.msk.mxu0 %vm1023_vm0, %v611_v9  ;;  %2149 = vmatmul.mubr.msk.f32.gmra.mxu0 %vm1010_vm1, %v2535_v62  ;;  %v422_v12 = vsub.f32 %v2409_v45, %v2583_v13  ;;  %v596_v61 = vmax.f32 %v540_v48, 0.0  ;;  %v532_v0 = vsub.f32 1.0, %v476_v57  ;;  %v492_v29 = vand.u32 2147483647, %v436_v60 }
  0xd5   :  { %2168 = vmatpush1.msk.msra.mxu1 %vm1023_vm0, %v609_v49  ;;  %1538 = vmatprep.mubr.f32.mxu1 %v3088_v11  ;;  %v485_v1 = vand.u32 2147483647, %v429_v63  ;;  %v595_v50 = vmax.f32 %v539_v52, 0.0  ;;  %v589_v2 = vmax.f32 %v533_v4, 0.0  ;;  %v117_v16 = vmul.f32 %v2352_v35, %v78_v47 }
  0xd6   :  { %1666 = vmatprep.subr.mxu1 %v603_v55  ;;  %1615 = vmatprep.mubr.f32.mxu0 %v3088_v11  ;;  %v478_v3 = vand.u32 2147483647, %v422_v12  ;;  %v548_v62 = vsub.f32 1.0, %v492_v29  ;;  %v588_v13 = vmax.f32 %v532_v0, 0.0  ;;  %v31_v10 = vpop.permute.xlu0 %30  ;;  %v118_v26 = vmul.f32 %v2355_v36, %v78_v47  ;;  %v132_v4 = vpop.permute.xlu1 %131 }
  0xd7   :  { %1667 = vmatpush1.msra.mxu1 %v602_v56  ;;  %v541_v20 = vsub.f32 1.0, %v485_v1  ;;  %v69_v14 = vmul.f32 %v2331_v27, %v31_v10  ;;  %v70_v15 = vmul.f32 %v2334_v28, %v31_v10  ;;  %v74_v48 = vmul.f32 %v2346_v33, %v31_v10 }
  0xd8   :  { %1668 = vmatprep.subr.mxu1 %v596_v61  ;;  %2159 = vmatmul.mubr.msk.f32.gmra.mxu1 %vm1010_vm1, %v1415_v58  ;;  %v604_v7 = vmax.f32 %v548_v62, 0.0  ;;  %v534_v6 = vsub.f32 1.0, %v478_v3  ;;  %v119_v54 = vmul.f32 %v2358_v37, %v78_v47  ;;  %v120_v27 = vmul.f32 %v2364_v39, %v78_v47 }
  0xd9   :  { %1669 = vmatpush1.msra.mxu1 %v595_v50  ;;  %2163 = vmatmul.mubr.msk.f32.vlgmr.msra.gmra.mxu0 %vm1010_vm1, %v2575_v46  ;;  %v597_v8 = vmax.f32 %v541_v20, 0.0  ;;  %v121_v28 = vmul.f32 %v2367_v40, %v78_v47  ;;  %v122_v35 = vmul.f32 %v2370_v41, %v78_v47 }
  0xda   :  { %1670 = vmatprep.subr.mxu1 %v589_v2  ;;  %2209 = vmatpush3.msk.msra.mxu0 %vm1023_vm0, %v611_v9  ;;  %v590_v51 = vmax.f32 %v534_v6, 0.0  ;;  %v73_v9 = vmul.f32 %v2343_v32, %v31_v10 }
  0xdb   :  { %1671 = vmatpush1.msra.mxu1 %v588_v13  ;;  %1544 = vmatprep.mubr.f32.mxu1 %v3088_v11  ;;  %v128_v32 = vadd.f32 %v121_v28, %v74_v48 }
  0xdc   :  { %2210 = vmatprep.subr.mxu0 %v604_v7  ;;  %1621 = vmatprep.mubr.f32.mxu0 %v3088_v11  ;;  %v127_v52 = vadd.f32 %v120_v27, %v73_v9 }
  0xdd   :  { %2211 = vmatpush3.msra.mxu0 %v604_v7  ;;  %2160 = vmatmul.mubr.msk.f32.gmra.mxu1 %vm1010_vm1, %v1416_v53  ;;  %v139_v39 = vadd.f32 %v132_v4, %v128_v32 }
  0xde   :  { %2212 = vmatprep.subr.mxu0 %v597_v8  ;;  %2164 = vmatmul.mubr.msk.f32.gmra.mxu0 %vm1010_vm1, %v2598_v5  ;;  %v138_v60 = vadd.f32 %v132_v4, %v127_v52 }
  0xdf   :  { %2213 = vmatpush3.msra.mxu0 %v597_v8  ;;  %1627 = vmatprep.mubr.f32.mxu0 %v3088_v11  ;;  %v186_v61 = vadd.f32 1.0, %v139_v39 }
  0xe0   :  { %2214 = vmatprep.subr.mxu0 %v590_v51  ;;  %1704 = vmatprep.mubr.f32.mxu1 %v3088_v11  ;;  %v185_v41 = vadd.f32 1.0, %v138_v60 }
  0xe1   :  { %2215 = vmatpush3.msra.mxu0 %v590_v51  ;;  %2169 = vmatmul.mubr.msk.f32.vlgmr.msra.gmra.mxu1 %vm1010_vm1, %v2575_v46  ;;  %v193_v62 = vmul.f32 28.0, %v186_v61 }
  0xe2   :  { %2165 = vmatmul.mubr.msk.f32.gmra.mxu0 %vm1010_vm1, %v1415_v58  ;;  %1710 = vmatprep.mubr.f32.mxu1 %v3088_v11  ;;  %v192_v2 = vmul.f32 28.0, %v185_v41 }
  0xe3   :  { %1633 = vmatprep.mubr.f32.mxu0 %v3088_v11  ;;  %v2123_v51 = vadd.f32 -1.0, %v193_v62 }
  0xe4   :  { %v2122_v8 = vadd.f32 -1.0, %v192_v2 }
  0xe5   :  { %2170 = vmatmul.mubr.msk.f32.gmra.mxu1 %vm1010_vm1, %v2598_v5 }
  0xe6   :  { %2166 = vmatmul.mubr.msk.f32.gmra.mxu0 %vm1010_vm1, %v1416_v53  ;;  %1716 = vmatprep.mubr.f32.mxu1 %v3088_v11 }
  0xe7   :  { %2216 = vmatprep.mubr.msk.f32.mxu0 %vm1010_vm1, %v2575_v46  ;;  %v116_v46 = vmul.f32 %v2349_v34, %v78_v47  ;;  %v75_v34 = vmul.f32 %v2361_v38, %v31_v10 }
  0xe9   :  { %2171 = vmatmul.mubr.msk.f32.gmra.mxu1 %vm1010_vm1, %v1415_v58  ;;  %v123_v49 = vadd.f32 %v116_v46, %v69_v14  ;;  %v129_v33 = vadd.f32 %v122_v35, %v75_v34 }
  0xea   :  { %2217 = vmatmul.mubr.msk.f32.vlgmr.msra.gmra.mxu0 %vm1010_vm1, %v2598_v5  ;;  %1722 = vmatprep.mubr.f32.mxu1 %v3088_v11  ;;  %v71_v5 = vmul.f32 %v2337_v30, %v31_v10  ;;  %v72_v11 = vmul.f32 %v2340_v31, %v31_v10  ;;  %v124_v30 = vadd.f32 %v117_v16, %v70_v15  ;;  %v206_v16 = vmul.f32 0.5, %v2122_v8 }
  0xeb   :  { %2219 = vmatprep.mubr.msk.f32.mxu0 %vm1010_vm1, %v1415_v58  ;;  %v134_v57 = vadd.f32 %v132_v4, %v123_v49  ;;  %v140_v63 = vadd.f32 %v132_v4, %v129_v33 }
  0xec   :  { %v125_v55 = vadd.f32 %v118_v26, %v71_v5  ;;  %v126_v31 = vadd.f32 %v119_v54, %v72_v11  ;;  %v135_v36 = vadd.f32 %v132_v4, %v124_v30  ;;  %v207_v5 = vmul.f32 0.5, %v2123_v51 }
  0xed   :  { %2172 = vmatmul.mubr.msk.f32.gmra.mxu1 %vm1010_vm1, %v1416_v53  ;;  %v181_v40 = vadd.f32 1.0, %v134_v57  ;;  %v187_v0 = vadd.f32 1.0, %v140_v63 }
  0xee   :  { %2220 = vmatmul.mubr.msk.f32.gmra.mxu0 %vm1010_vm1, %v1416_v53  ;;  %v136_v58 = vadd.f32 %v132_v4, %v125_v55  ;;  %v137_v37 = vadd.f32 %v132_v4, %v126_v31  ;;  %v182_v56 = vadd.f32 1.0, %v135_v36  ;;  %v621_v26 = vcombine.low %v206_v16, %v207_v5 }
  0xef   :  { %v188_v29 = vmul.f32 28.0, %v181_v40  ;;  %v194_v20 = vmul.f32 28.0, %v187_v0 }
  0xf0   :  { %v183_v38 = vadd.f32 1.0, %v136_v58  ;;  %v184_v12 = vadd.f32 1.0, %v137_v37  ;;  %v189_v1 = vmul.f32 28.0, %v182_v56  ;;  %v642_v28 = vrot.slane %v621_v26, %v2387_v59 }
  0xf1   :  { %v2118_v13 = vadd.f32 -1.0, %v188_v29  ;;  %v2124_v10 = vadd.f32 -1.0, %v194_v20 }
  0xf2   :  { %v190_v50 = vmul.f32 28.0, %v183_v38  ;;  %v191_v3 = vmul.f32 28.0, %v184_v12  ;;  %v2119_v7 = vadd.f32 -1.0, %v189_v1 }
  0xf3   :  { %v202_v47 = vmul.f32 0.5, %v2118_v13  ;;  %v208_v11 = vmul.f32 0.5, %v2124_v10 }
  0xf4   :  { %v2120_v53 = vadd.f32 -1.0, %v190_v50  ;;  %v2121_v6 = vadd.f32 -1.0, %v191_v3  ;;  %v203_v14 = vmul.f32 0.5, %v2119_v7 }
  0xf5   :  { %v649_v34 = vrot.slane %v208_v11, %v2387_v59 }
  0xf6   :  { %v204_v15 = vmul.f32 0.5, %v2120_v53  ;;  %v205_v46 = vmul.f32 0.5, %v2121_v6  ;;  %v619_v9 = vcombine.low %v202_v47, %v203_v14 }
  0xf7   :  { %v652_v49 = vcombine.low %v642_v28, %v649_v34  ;;  %v653_v60 = vcombine.high %v642_v28, %v649_v34 }
  0xf8   :  { %v620_v48 = vcombine.low %v204_v15, %v205_v46  ;;  %v628_v54 = vrot.slane %v619_v9, %v2387_v59 }
  0xf9   :  { %v674_v55 = vrot.slane %v652_v49, %v2387_v59  ;;  %v681_v61 = vrot.slane %v653_v60, %v2387_v59 }
  0xfa   :  { %v635_v27 = vrot.slane %v620_v48, %v2387_v59 }
  0xfc   :  { %v650_v35 = vcombine.low %v628_v54, %v635_v27  ;;  %v651_v57 = vcombine.high %v628_v54, %v635_v27 }
  0xfe   :  { %v660_v30 = vrot.slane %v650_v35, %v2387_v59  ;;  %v667_v56 = vrot.slane %v651_v57, %v2387_v59 }
 0x100   :  { %v682_v31 = vcombine.low %v660_v30, %v674_v55  ;;  %v2700_v11 = vcombine.low %v667_v56, %v681_v61 }
 0x102   :  { %v687_v52 = vrot.slane %v682_v31, %v2304_v18  ;;  %v695_v32 = vrot.slane %v682_v31, %v2313_v21  ;;  %v691_v4 = vrot.slane %v682_v31, %v2307_v19  ;;  %v2678_v33 = vrot.slane %v682_v31, %v2316_v22 }
 0x103   :  { %v703_v57 = vrot.slane %v682_v31, %v2319_v23 }
 0x104   :  { %v754_v36 = vsub.f32 %v2409_v45, %v687_v52  ;;  %v756_v58 = vsub.f32 %v2409_v45, %v695_v32  ;;  %v755_v37 = vsub.f32 %v2409_v45, %v691_v4  ;;  %v757_v39 = vsub.f32 %v2409_v45, %v2678_v33 }
 0x105   :  { %v761_v63 = vsub.f32 %v2406_v44, %v687_v52  ;;  %v763_v40 = vsub.f32 %v2406_v44, %v695_v32  ;;  %v762_v0 = vsub.f32 %v2406_v44, %v691_v4  ;;  %v764_v29 = vsub.f32 %v2406_v44, %v2678_v33 }
 0x106   :  { %v810_v38 = vand.u32 2147483647, %v754_v36  ;;  %v812_v12 = vand.u32 2147483647, %v756_v58  ;;  %v811_v41 = vand.u32 2147483647, %v755_v37  ;;  %v768_v1 = vsub.f32 %v2404_v43, %v687_v52 }
 0x107   :  { %v813_v50 = vand.u32 2147483647, %v757_v39  ;;  %v817_v3 = vand.u32 2147483647, %v761_v63  ;;  %v770_v2 = vsub.f32 %v2404_v43, %v695_v32  ;;  %v769_v62 = vsub.f32 %v2404_v43, %v691_v4 }
 0x108   :  { %v819_v20 = vand.u32 2147483647, %v763_v40  ;;  %v771_v13 = vsub.f32 %v2404_v43, %v2678_v33  ;;  %v775_v7 = vsub.f32 %v2402_v42, %v687_v52  ;;  %v777_v59 = vsub.f32 %v2402_v42, %v695_v32 }
 0x109   :  { %v866_v53 = vsub.f32 1.0, %v810_v38  ;;  %v868_v6 = vsub.f32 1.0, %v812_v12  ;;  %v867_v8 = vsub.f32 1.0, %v811_v41  ;;  %v776_v51 = vsub.f32 %v2402_v42, %v691_v4 }
 0x10a   :  { %v818_v10 = vand.u32 2147483647, %v762_v0  ;;  %v820_v47 = vand.u32 2147483647, %v764_v29  ;;  %v824_v14 = vand.u32 2147483647, %v768_v1  ;;  %v711_v63 = vrot.slane %v682_v31, %v2325_v25 }
 0x10b   :  { %v869_v15 = vsub.f32 1.0, %v813_v50  ;;  %v873_v46 = vsub.f32 1.0, %v817_v3  ;;  %v826_v16 = vand.u32 2147483647, %v770_v2  ;;  %v825_v5 = vand.u32 2147483647, %v769_v62 }
 0x10c   :  { %v827_v9 = vand.u32 2147483647, %v771_v13  ;;  %v831_v48 = vand.u32 2147483647, %v775_v7  ;;  %v833_v26 = vand.u32 2147483647, %v777_v59  ;;  %v707_v40 = vrot.slane %v682_v31, %v2322_v24 }
 0x10d   :  { %v2702_v54 = vmax.f32 %v866_v53, 0.0  ;;  %v2704_v27 = vmax.f32 %v868_v6, 0.0  ;;  %v875_v28 = vsub.f32 1.0, %v819_v20  ;;  %v832_v34 = vand.u32 2147483647, %v776_v51 }
 0x10e   :  { %v2706_v35 = vmax.f32 %v867_v8, 0.0  ;;  %v874_v49 = vsub.f32 1.0, %v818_v10  ;;  %v876_v30 = vsub.f32 1.0, %v820_v47  ;;  %v880_v55 = vsub.f32 1.0, %v824_v14 }
 0x10f   :  { %v2708_v52 = vmax.f32 %v869_v15, 0.0  ;;  %v882_v32 = vsub.f32 1.0, %v826_v16  ;;  %v881_v4 = vsub.f32 1.0, %v825_v5  ;;  %v883_v36 = vsub.f32 1.0, %v827_v9 }
 0x110   :  { %v887_v58 = vsub.f32 1.0, %v831_v48  ;;  %v889_v37 = vsub.f32 1.0, %v833_v26  ;;  %v2711_v60 = vmax.f32 %v873_v46, 0.0  ;;  %v888_v39 = vsub.f32 1.0, %v832_v34 }
 0x111   :  { %v2715_v56 = vmax.f32 %v875_v28, 0.0  ;;  %v2717_v38 = vmax.f32 %v874_v49, 0.0  ;;  %v2719_v12 = vmax.f32 %v876_v30, 0.0  ;;  %v2721_v41 = vmax.f32 %v880_v55, 0.0 }
 0x112   :  { %v2723_v61 = vmax.f32 %v882_v32, 0.0  ;;  %v2246_v0 = vmov 1983009808   ;;  %v778_v1 = vsub.f32 %v2402_v42, %v2678_v33  ;;  %v758_v50 = vsub.f32 %v2409_v45, %v703_v57 }
 0x113   :  { %v2725_v29 = vunpack.c.l.s4 %v2246_v0  ;;  %v2730_v3 = vmax.f32 %v881_v4, 0.0  ;;  %v2732_v31 = vmax.f32 %v883_v36, 0.0  ;;  %v2734_v2 = vmax.f32 %v887_v58, 0.0 }
 0x114   :  { %v2736_v62 = vmax.f32 %v889_v37, 0.0  ;;  %v2738_v20 = vmax.f32 %v888_v39, 0.0  ;;  %v767_v13 = vsub.f32 %v2406_v44, %v711_v63  ;;  %v759_v7 = vsub.f32 %v2409_v45, %v707_v40 }
 0x115   :  { %v760_v59 = vsub.f32 %v2409_v45, %v711_v63  ;;  %v765_v33 = vsub.f32 %v2406_v44, %v703_v57  ;;  %v781_v53 = vsub.f32 %v2402_v42, %v711_v63  ;;  %v766_v6 = vsub.f32 %v2406_v44, %v707_v40 }
 0x116   :  { %v2748_v8 = vrot.slane %v2700_v11, %v2304_v18  ;;  %v834_v10 = vand.u32 2147483647, %v778_v1  ;;  %v814_v47 = vand.u32 2147483647, %v758_v50  ;;  %v774_v14 = vsub.f32 %v2404_v43, %v711_v63 }
 0x117   :  { %v772_v15 = vsub.f32 %v2404_v43, %v703_v57  ;;  %v773_v46 = vsub.f32 %v2404_v43, %v707_v40  ;;  %v2756_v16 = vrot.slane %v2700_v11, %v2307_v19  ;;  %v779_v5 = vsub.f32 %v2402_v42, %v703_v57 }
 0x118   :  { %v823_v9 = vand.u32 2147483647, %v767_v13  ;;  %v815_v48 = vand.u32 2147483647, %v759_v7  ;;  %v816_v18 = vand.u32 2147483647, %v760_v59  ;;  %v780_v26 = vsub.f32 %v2402_v42, %v707_v40 }
 0x119   :  { %v821_v28 = vand.u32 2147483647, %v765_v33  ;;  %v837_v34 = vand.u32 2147483647, %v781_v53  ;;  %v822_v49 = vand.u32 2147483647, %v766_v6  ;;  %v782_v30 = vsub.f32 %v2409_v45, %v2748_v8 }
 0x11a   :  { %v890_v55 = vsub.f32 1.0, %v834_v10  ;;  %v870_v32 = vsub.f32 1.0, %v814_v47  ;;  %v830_v4 = vand.u32 2147483647, %v774_v14  ;;  %v789_v19 = vsub.f32 %v2406_v44, %v2748_v8 }
 0x11b   :  { %v828_v36 = vand.u32 2147483647, %v772_v15  ;;  %v829_v58 = vand.u32 2147483647, %v773_v46  ;;  %v783_v57 = vsub.f32 %v2409_v45, %v2756_v16  ;;  %v835_v37 = vand.u32 2147483647, %v779_v5 }
 0x11c   :  { %v879_v39 = vsub.f32 1.0, %v823_v9  ;;  %v871_v63 = vsub.f32 1.0, %v815_v48  ;;  %v872_v40 = vsub.f32 1.0, %v816_v18  ;;  %v836_v0 = vand.u32 2147483647, %v780_v26 }
 0x11d   :  { %v877_v1 = vsub.f32 1.0, %v821_v28  ;;  %v893_v50 = vsub.f32 1.0, %v837_v34  ;;  %v878_v13 = vsub.f32 1.0, %v822_v49  ;;  %v838_v7 = vand.u32 2147483647, %v782_v30 }
 0x11e   :  { %v2766_v59 = vmax.f32 %v890_v55, 0.0  ;;  %v2768_v33 = vmax.f32 %v870_v32, 0.0  ;;  %v886_v53 = vsub.f32 1.0, %v830_v4  ;;  %v845_v6 = vand.u32 2147483647, %v789_v19 }
 0x11f   :  { %v884_v10 = vsub.f32 1.0, %v828_v36  ;;  %v885_v47 = vsub.f32 1.0, %v829_v58  ;;  %v839_v14 = vand.u32 2147483647, %v783_v57  ;;  %v891_v15 = vsub.f32 1.0, %v835_v37 }
 0x120   :  { %3089 = vst [vmem:[#allocation2_spill] sm:$0xff] %v2768_v33  ;;  %v2770_v46 = vmax.f32 %v879_v39, 0.0  ;;  %v2772_v5 = vmax.f32 %v871_v63, 0.0  ;;  %v2774_v9 = vmax.f32 %v872_v40, 0.0  ;;  %v892_v48 = vsub.f32 1.0, %v836_v0 }
 0x121   :  { %v2776_v18 = vmax.f32 %v877_v1, 0.0  ;;  %v2778_v26 = vmax.f32 %v893_v50, 0.0  ;;  %v2780_v28 = vmax.f32 %v878_v13, 0.0  ;;  %v894_v34 = vsub.f32 1.0, %v838_v7 }
 0x122   :  { %3090 = vst [vmem:[#allocation3_spill] sm:$0xff] %v2770_v46  ;;  %3091 = vst [vmem:[#allocation4_spill] sm:$0xff] %v2772_v5  ;;  %v2782_v49 = vmax.f32 %v886_v53, 0.0  ;;  %v901_v30 = vsub.f32 1.0, %v845_v6  ;;  %v723_v55 = vrot.slane %v2700_v11, %v2313_v21  ;;  %v2788_v32 = vrot.slane %v2700_v11, %v2316_v22 }
 0x123   :  { %3092 = vst [vmem:[#allocation5_spill] sm:$0xff] %v2774_v9  ;;  %3093 = vst [vmem:[#allocation6_spill] sm:$0xff] %v2776_v18  ;;  %v2790_v4 = vmax.f32 %v884_v10, 0.0  ;;  %v2792_v19 = vmax.f32 %v885_v47, 0.0  ;;  %v895_v36 = vsub.f32 1.0, %v839_v14  ;;  %v2794_v58 = vmax.f32 %v891_v15, 0.0 }
 0x124   :  { %3094 = vst [vmem:[#allocation7_spill] sm:$0xff] %v2778_v26  ;;  %3095 = vst [vmem:[#allocation8_spill] sm:$0xff] %v2780_v28  ;;  %v2796_v57 = vmax.f32 %v892_v48, 0.0  ;;  %v790_v37 = vsub.f32 %v2406_v44, %v2756_v16  ;;  %v796_v39 = vsub.f32 %v2404_v43, %v2748_v8  ;;  %v797_v21 = vsub.f32 %v2404_v43, %v2756_v16 }
 0x125   :  { %3096 = vst [vmem:[#allocation9_spill] sm:$0xff] %v2782_v49  ;;  %3097 = vst [vmem:[#allocation10_spill] sm:$0xff] %v2790_v4  ;;  %v2806_v63 = vmax.f32 %v894_v34, 0.0  ;;  %v803_v40 = vsub.f32 %v2402_v42, %v2748_v8  ;;  %v804_v0 = vsub.f32 %v2402_v42, %v2756_v16  ;;  %v2814_v1 = vrot.slane %v2700_v11, %v2319_v23 }
 0x126   :  { %3098 = vst [vmem:[#allocation11_spill] sm:$0xff] %v2792_v19  ;;  %3099 = vst [vmem:[#allocation12_spill] sm:$0xff] %v2794_v58  ;;  %v2818_v13 = vmax.f32 %v901_v30, 0.0  ;;  %v784_v7 = vsub.f32 %v2409_v45, %v723_v55  ;;  %v785_v53 = vsub.f32 %v2409_v45, %v2788_v32  ;;  %v791_v6 = vsub.f32 %v2406_v44, %v723_v55 }
 0x127   :  { %3100 = vst [vmem:[#allocation13_spill] sm:$0xff] %v2796_v57  ;;  %3101 = vst [vmem:[#allocation14_spill] sm:$0xff] %v2806_v63  ;;  %v2826_v8 = vmax.f32 %v895_v36, 0.0  ;;  %v792_v16 = vsub.f32 %v2406_v44, %v2788_v32  ;;  %v798_v23 = vsub.f32 %v2404_v43, %v723_v55  ;;  %v799_v47 = vsub.f32 %v2404_v43, %v2788_v32 }
 0x128   :  { %3102 = vst [vmem:[#allocation15_spill] sm:$0xff] %v2818_v13  ;;  %v846_v15 = vand.u32 2147483647, %v790_v37  ;;  %v852_v48 = vand.u32 2147483647, %v796_v39  ;;  %v2837_v30 = vrot.slane %v2700_v11, %v2322_v24  ;;  %v786_v63 = vsub.f32 %v2409_v45, %v2814_v1 }
 0x129   :  { %3103 = vst [vmem:[#allocation16_spill] sm:$0xff] %v2826_v8  ;;  %v853_v34 = vand.u32 2147483647, %v797_v21  ;;  %v859_v36 = vand.u32 2147483647, %v803_v40  ;;  %v805_v19 = vsub.f32 %v2402_v42, %v723_v55  ;;  %v3104_v37 = vunpack.c.0.s8 %v2725_v29 }
 0x12a   :  { %v860_v8 = vand.u32 2147483647, %v804_v0  ;;  %v840_v57 = vand.u32 2147483647, %v784_v7  ;;  %v841_v13 = vand.u32 2147483647, %v785_v53  ;;  %v787_v55 = vsub.f32 %v2409_v45, %v2837_v30 }
 0x12b   :  { %v847_v4 = vand.u32 2147483647, %v791_v6  ;;  %v2847_v39 = vsub.s32 %v3104_v37, %v2301_v17  ;;  %v848_v24 = vand.u32 2147483647, %v792_v16  ;;  %v854_v21 = vand.u32 2147483647, %v798_v23 }
 0x12c   :  { %v855_v40 = vand.u32 2147483647, %v799_v47  ;;  %v902_v58 = vsub.f32 1.0, %v846_v15  ;;  %v908_v5 = vsub.f32 1.0, %v852_v48  ;;  %v806_v7 = vsub.f32 %v2402_v42, %v2788_v32 }
 0x12d   :  { %3105 = vst [vmem:[#allocation17_spill] sm:$0xff] %v2847_v39  ;;  %v909_v53 = vsub.f32 1.0, %v853_v34  ;;  %v842_v6 = vand.u32 2147483647, %v786_v63  ;;  %v861_v33 = vand.u32 2147483647, %v805_v19  ;;  %v793_v17 = vsub.f32 %v2406_v44, %v2814_v1 }
 0x12e   :  { %v896_v29 = vsub.f32 1.0, %v840_v57  ;;  %v915_v16 = vsub.f32 1.0, %v859_v36  ;;  %v903_v23 = vsub.f32 1.0, %v847_v4  ;;  %v916_v47 = vsub.f32 1.0, %v860_v8 }
 0x12f   :  { %v897_v39 = vsub.f32 1.0, %v841_v13  ;;  %v904_v15 = vsub.f32 1.0, %v848_v24  ;;  %v910_v48 = vsub.f32 1.0, %v854_v21  ;;  %v911_v49 = vsub.f32 1.0, %v855_v40 }
 0x130   :  { %v2857_v46 = vmax.f32 %v902_v58, 0.0  ;;  %v2859_v9 = vmax.f32 %v908_v5, 0.0  ;;  %v2861_v32 = vand.u32 2147483647, %v787_v55  ;;  %v2863_v19 = vand.u32 2147483647, %v806_v7 }
 0x131   :  { %v2865_v34 = vmax.f32 %v909_v53, 0.0  ;;  %v898_v57 = vsub.f32 1.0, %v842_v6  ;;  %v917_v4 = vsub.f32 1.0, %v861_v33  ;;  %v2867_v8 = vand.u32 2147483647, %v793_v17 }
 0x132   :  { %v2869_v36 = vmax.f32 %v896_v29, 0.0  ;;  %v2871_v24 = vmax.f32 %v915_v16, 0.0  ;;  %v2873_v58 = vmax.f32 %v903_v23, 0.0  ;;  %v2875_v5 = vmax.f32 %v916_v47, 0.0 }
 0x133   :  { %v2877_v21 = vmax.f32 %v897_v39, 0.0  ;;  %v2879_v40 = vmax.f32 %v904_v15, 0.0  ;;  %v2881_v55 = vmax.f32 %v910_v48, 0.0  ;;  %v2883_v7 = vmax.f32 %v911_v49, 0.0 }
 0x134   :  { %v794_v29 = vsub.f32 %v2406_v44, %v2837_v30  ;;  %v2891_v23 = vmax.f32 %v898_v57, 0.0  ;;  %v2893_v47 = vmax.f32 %v917_v4, 0.0  ;;  %v800_v48 = vsub.f32 %v2404_v43, %v2814_v1 }
 0x135   :  { %v2903_v17 = vrot.slane %v2700_v11, %v2325_v25  ;;  %v801_v4 = vsub.f32 %v2404_v43, %v2837_v30 }
 0x136   :  { %v850_v11 = vand.u32 2147483647, %v794_v29 }
 0x171   :  { %v2804_v22 = vpop.f32.mrf.mxu0 }
 0x172   :  { %v2816_v50 = vpop.f32.mrf.mxu1 }
 0x173   :  { %v2824_v10 = vpop.f32.mrf.mxu0 }
 0x174   :  { %v2833_v14 = vpop.f32.mrf.mxu1 }
 0x175   :  { %v1117_v51 = vpop.f32.mrf.mxu0 }
 0x176   :  { %v1206_v26 = vpop.f32.mrf.mxu1  ;;  %v1821_v33 = vmul.f32 %v1117_v51, %v2711_v60  ;;  %v1814_v60 = vmul.f32 %v2804_v22, %v2702_v54  ;;  %v808_v54 = vsub.f32 %v2402_v42, %v2837_v30  ;;  %v1815_v30 = vmul.f32 %v2824_v10, %v2706_v35 }
 0x177   :  { %v2842_v28 = vpop.f32.mrf.mxu0 }
 0x178   :  { %v2849_v0 = vpop.f32.mrf.mxu1  ;;  %v1822_v22 = vmul.f32 %v2842_v28, %v2717_v38 }
 0x17a   :  { %v1880_v35 = vadd.f32 %v1822_v22, %v1815_v30 }
 0x17b   :  { %v1123_v37 = vpop.f32.mrf.mxu0 }
 0x17c   :  { %v1212_v18 = vpop.f32.mrf.mxu1  ;;  %v1828_v51 = vmul.f32 %v1123_v37, %v2721_v41  ;;  %v1870_v41 = vadd.f32 %v1821_v33, %v1814_v60  ;;  %v795_v33 = vsub.f32 %v2406_v44, %v2903_v17  ;;  %v1817_v44 = vmul.f32 %v2833_v14, %v2708_v52 }
 0x17d   :  { %v1125_v63 = vpop.f32.mrf.mxu0  ;;  %v857_v60 = vand.u32 2147483647, %v801_v4  ;;  %v3106_v4 = vsub.f32 1.0, %v2861_v32  ;;  %v3108_v32 = vsub.f32 1.0, %v2867_v8 }
 0x17e   :  { %v1214_v13 = vpop.f32.mrf.mxu1  ;;  %v1871_v38 = vadd.f32 %v1870_v41, %v1828_v51  ;;  %v864_v41 = vand.u32 2147483647, %v808_v54 }
 0x180   :  { %v1129_v53 = vpop.f32.mrf.mxu0 }
 0x181   :  { %v1835_v16 = vmul.f32 %v1129_v53, %v2734_v2  ;;  %v1218_v39 = vpop.f32.mrf.mxu1  ;;  %v1823_v2 = vmul.f32 %v1206_v26, %v2715_v56  ;;  %v807_v53 = vsub.f32 %v2402_v42, %v2814_v1  ;;  %v1816_v56 = vmul.f32 %v2816_v50, %v2704_v27 }
 0x182   :  { %v1131_v15 = vpop.f32.mrf.mxu0  ;;  %v1837_v37 = vmul.f32 %v1218_v39, %v2736_v62  ;;  %v1830_v26 = vmul.f32 %v1212_v18, %v2723_v61  ;;  %v1829_v62 = vmul.f32 %v1125_v63, %v2730_v3  ;;  %v1824_v61 = vmul.f32 %v2849_v0, %v2719_v12 }
 0x183   :  { %v1220_v57 = vpop.f32.mrf.mxu1  ;;  %v1872_v49 = vsel %vm1023_vm0, %v1835_v16, 0.0  ;;  %v1836_v1 = vmul.f32 %v1131_v15, %v2738_v20  ;;  %v1890_v27 = vadd.f32 %v1823_v2, %v1816_v56  ;;  %v788_v20 = vsub.f32 %v2409_v45, %v2903_v17 }
 0x184   :  { %v2915_v25 = vpop.f32.mrf.mxu0  ;;  %v809_v50 = vsub.f32 %v2402_v42, %v2903_v17  ;;  %v1873_v10 = vadd.f32 %v1872_v49, %v1871_v38  ;;  %v1892_v3 = vsel %vm1023_vm0, %v1837_v37, 0.0  ;;  %v1838_v63 = vmul.f32 %v1220_v57, %v2766_v59 }
 0x185   :  { %v2922_v6 = vpop.f32.mrf.mxu1  ;;  %v1891_v29 = vadd.f32 %v1890_v27, %v1830_v26  ;;  %v1831_v16 = vmul.f32 %v1214_v13, %v2732_v31  ;;  %v1882_v12 = vsel %vm1023_vm0, %v1836_v1, 0.0  ;;  %v1881_v0 = vadd.f32 %v1880_v35, %v1829_v62 }
 0x186   :  { %v2927_v28 = vpop.f32.mrf.mxu0  ;;  %v856_v45 = vand.u32 2147483647, %v800_v48  ;;  %v863_v51 = vand.u32 2147483647, %v807_v53  ;;  %v1900_v42 = vadd.f32 %v1824_v61, %v1817_v44  ;;  %v851_v2 = vand.u32 2147483647, %v795_v33 }
 0x187   :  { %v1378_v18 = vpop.f32.mrf.mxu1  ;;  %v1893_v15 = vadd.f32 %v1892_v3, %v1891_v29  ;;  %v1874_v59 = vrot.slane %v1873_v10, 4  ;;  %v1883_v57 = vadd.f32 %v1882_v12, %v1881_v0  ;;  %v1902_v52 = vsel %vm1023_vm0, %v1838_v63, 0.0 }
 0x188   :  { %v844_v22 = vand.u32 2147483647, %v788_v20  ;;  %v1901_v31 = vadd.f32 %v1900_v42, %v1831_v16  ;;  %v906_v37 = vsub.f32 1.0, %v850_v11  ;;  %v865_v56 = vand.u32 2147483647, %v809_v50  ;;  %v3109_v16 = vld [vmem:[#allocation5_spill] sm:$0xff] }
 0x189   :  { %v802_v48 = vsub.f32 %v2404_v43, %v2903_v17  ;;  %v2950_v53 = vmax.f32 %v3106_v4, 0.0  ;;  %v912_v26 = vsub.f32 1.0, %v856_v45  ;;  %v913_v1 = vsub.f32 1.0, %v857_v60 }
 0x18a   :  { %v1295_v39 = vpop.f32.mrf.mxu0  ;;  %v919_v54 = vsub.f32 1.0, %v863_v51  ;;  %v1894_v30 = vrot.slane %v1893_v15, 4  ;;  %v1903_v38 = vadd.f32 %v1902_v52, %v1901_v31  ;;  %v907_v33 = vsub.f32 1.0, %v851_v2  ;;  %v3112_v52 = vld [vmem:[#allocation3_spill] sm:$0xff] }
 0x18b   :  { %v2943_v49 = vpop.f32.mrf.mxu1  ;;  %v920_v27 = vsub.f32 1.0, %v864_v41  ;;  %v1875_v61 = vadd.f32 %v1874_v59, %v1873_v10  ;;  %v1884_v20 = vrot.slane %v1883_v57, 4  ;;  %v3107_v11 = vsub.f32 1.0, %v2863_v19 }
 0x18c   :  { %v1297_v14 = vpop.f32.mrf.mxu0  ;;  %v900_v43 = vsub.f32 1.0, %v844_v22  ;;  %v2958_v3 = vmax.f32 %v3108_v32, 0.0  ;;  %v2960_v63 = vmax.f32 %v906_v37, 0.0  ;;  %v921_v44 = vsub.f32 1.0, %v865_v56  ;;  %v3113_v37 = vld [vmem:[#allocation6_spill] sm:$0xff] }
 0x18d   :  { %v1388_v13 = vpop.f32.mrf.mxu1  ;;  %v2954_v50 = vmax.f32 %v3107_v11, 0.0  ;;  %v2962_v29 = vand.u32 2147483647, %v802_v48  ;;  %v1820_v12 = vmul.f32 %v1378_v18, %v3109_v16  ;;  %v2965_v0 = vmax.f32 %v912_v26, 0.0  ;;  %v3114_v48 = vld [vmem:[#allocation9_spill] sm:$0xff] }
 0x18e   :  { %v2967_v45 = vmax.f32 %v913_v1, 0.0  ;;  %v2969_v19 = vmax.f32 %v919_v54, 0.0  ;;  %v1895_v60 = vadd.f32 %v1894_v30, %v1893_v15  ;;  %v1904_v51 = vrot.slane %v1903_v38, 4  ;;  %v3116_v54 = vld [vmem:[#allocation2_spill] sm:$0xff] }
 0x18f   :  { %v1528_v62 = vpop.f32.mrf.mxu1  ;;  %v2971_v8 = vmax.f32 %v907_v33, 0.0  ;;  %v2973_v2 = vmax.f32 %v920_v27, 0.0  ;;  %v1876_v41 = vrot.slane %v1875_v61, 2  ;;  %v1885_v59 = vadd.f32 %v1884_v20, %v1883_v57  ;;  %v3117_v33 = vld [vmem:[#allocation4_spill] sm:$0xff] }
 0x190   :  { %v1301_v35 = vpop.f32.mrf.mxu0  ;;  %v1827_v22 = vmul.f32 %v2922_v6, %v3112_v52  ;;  %v2977_v31 = vmax.f32 %v900_v43, 0.0  ;;  %v1825_v56 = vmul.f32 %v1295_v39, %v3113_v37  ;;  %v1834_v4 = vmul.f32 %v1388_v13, %v3114_v48  ;;  %v3118_v6 = vld [vmem:[#allocation12_spill] sm:$0xff]  ;;  %v3120_v13 = vld [vmem:[#allocation10_spill] sm:$0xff] }
 0x191   :  { %v1530_v17 = vpop.f32.mrf.mxu1  ;;  %3110 = vst [vmem:[#allocation5_spill] sm:$0xff] %v2971_v8  ;;  %3111 = vst [vmem:[#allocation18_spill] sm:$0xff] %v2973_v2  ;;  %v2981_v15 = vmax.f32 %v921_v44, 0.0  ;;  %v914_v1 = vsub.f32 1.0, %v2962_v29  ;;  %v1818_v30 = vmul.f32 %v2915_v25, %v3116_v54  ;;  %v1819_v57 = vmul.f32 %v2927_v28, %v3117_v33  ;;  %v3119_v39 = vld [vmem:[#allocation8_spill] sm:$0xff]  ;;  %v3121_v29 = vld [vmem:[#allocation15_spill] sm:$0xff] }
 0x192   :  { %v1303_v10 = vpop.f32.mrf.mxu0  ;;  %v1930_v27 = vadd.f32 %v1827_v22, %v1820_v12  ;;  %v1896_v43 = vrot.slane %v1895_v60, 2  ;;  %v1905_v32 = vadd.f32 %v1904_v51, %v1903_v38  ;;  %v1826_v16 = vmul.f32 %v1297_v14, %v3119_v39  ;;  %v3123_v28 = vld [vmem:[#allocation7_spill] sm:$0xff]  ;;  %v3125_v51 = vld [vmem:[#allocation14_spill] sm:$0xff] }
 0x193   :  { %v1534_v42 = vpop.f32.mrf.mxu1  ;;  %3115 = vst [vmem:[#allocation3_spill] sm:$0xff] %v2981_v15  ;;  %v1832_v52 = vmul.f32 %v1301_v35, %v3120_v13  ;;  %v1877_v37 = vadd.f32 %v1876_v41, %v1875_v61  ;;  %v1886_v48 = vrot.slane %v1885_v59, 2  ;;  %v3122_v15 = vld [vmem:[#allocation13_spill] sm:$0xff]  ;;  %v1910_v8 = vadd.f32 %v1825_v56, %v1818_v30  ;;  %v3126_v30 = vld [vmem:[#allocation16_spill] sm:$0xff] }
 0x194   :  { %v1307_v18 = vpop.f32.mrf.mxu0  ;;  %v1849_v2 = vmul.f32 %v1534_v42, %v3121_v29  ;;  %v1841_v12 = vmul.f32 %v2943_v49, %v3123_v28  ;;  %v1931_v22 = vadd.f32 %v1930_v27, %v1834_v4  ;;  %v1842_v14 = vmul.f32 %v1528_v62, %v3125_v51 }
 0x195   :  { %v1536_v26 = vpop.f32.mrf.mxu1  ;;  %v1839_v20 = vmul.f32 %v1307_v18, %v3118_v6  ;;  %v3124_v18 = vld [vmem:[#allocation11_spill] sm:$0xff]  ;;  %v1897_v6 = vadd.f32 %v1896_v43, %v1895_v60  ;;  %v1911_v56 = vadd.f32 %v1910_v8, %v1832_v52  ;;  %v1843_v39 = vmul.f32 %v1530_v17, %v3126_v30 }
 0x196   :  { %v1309_v11 = vpop.f32.mrf.mxu0  ;;  %v1833_v33 = vmul.f32 %v1303_v10, %v3124_v18  ;;  %v1850_v61 = vmul.f32 %v1536_v26, %v2857_v46  ;;  %v1940_v49 = vadd.f32 %v1849_v2, %v1842_v14  ;;  %v1932_v62 = vsel %vm1023_vm0, %v1841_v12, 0.0 }
 0x197   :  { %v1840_v25 = vmul.f32 %v1309_v11, %v3122_v15  ;;  %v1912_v35 = vsel %vm1023_vm0, %v1839_v20, 0.0  ;;  %v1906_v15 = vrot.slane %v1905_v32, 2  ;;  %v1920_v11 = vadd.f32 %v1826_v16, %v1819_v57 }
 0x198   :  { %v1540_v44 = vpop.f32.mrf.mxu1  ;;  %v1913_v13 = vadd.f32 %v1912_v35, %v1911_v56  ;;  %v1887_v26 = vadd.f32 %v1886_v48, %v1885_v59  ;;  %v1933_v60 = vadd.f32 %v1932_v62, %v1931_v22  ;;  %v1950_v43 = vadd.f32 %v1850_v61, %v1843_v39 }
 0x199   :  { %v1617_v54 = vpop.f32.mrf.mxu0  ;;  %v1856_v41 = vmul.f32 %v1540_v44, %v2859_v9  ;;  %v1922_v4 = vsel %vm1023_vm0, %v1840_v25, 0.0  ;;  %v1921_v20 = vadd.f32 %v1920_v11, %v1833_v33  ;;  %v1878_v44 = vrot.slane %v1877_v37, 1 }
 0x19a   :  { %v1542_v38 = vpop.f32.mrf.mxu1  ;;  %v1898_v29 = vrot.slane %v1897_v6, 1  ;;  %v1914_v59 = vrot.slane %v1913_v13, 4  ;;  %v1888_v33 = vrot.slane %v1887_v26, 1  ;;  %v1844_v35 = vmul.f32 %v1617_v54, %v2869_v36 }
 0x19b   :  { %v1619_v42 = vpop.f32.mrf.mxu0  ;;  %v1857_v10 = vmul.f32 %v1542_v38, %v2865_v34  ;;  %v1941_v57 = vadd.f32 %v1940_v49, %v1856_v41  ;;  %v1923_v16 = vadd.f32 %v1922_v4, %v1921_v20  ;;  %v3007_v34 = vmax.f32 %v914_v1, 0.0 }
 0x19c   :  { %v1934_v38 = vrot.slane %v1933_v60, 4  ;;  %v3018_v11 = vadd.f32 %v1898_v29, %v1897_v6  ;;  %v3021_v49 = vadd.f32 %v1914_v59, %v1913_v13  ;;  %v1845_v4 = vmul.f32 %v1619_v42, %v2877_v21 }
 0x19d   :  { %v1546_v27 = vpop.f32.mrf.mxu1  ;;  %v1951_v25 = vadd.f32 %v1950_v43, %v1857_v10  ;;  %v1924_v1 = vrot.slane %v1923_v16, 4  ;;  %v3024_v54 = vadd.f32 %v1888_v33, %v1887_v26 }
 0x19e   :  { %v1863_v46 = vmul.f32 %v1546_v27, %v2871_v24  ;;  %v1623_v9 = vpop.f32.mrf.mxu0  ;;  %v3009_v24 = vadd.f32 %v1906_v15, %v1905_v32  ;;  %v3016_v15 = vadd.f32 %v1878_v44, %v1877_v37  ;;  %v3028_v27 = vadd.f32 %v1934_v38, %v1933_v60 }
 0x19f   :  { %v1548_v8 = vpop.f32.mrf.mxu1  ;;  %v1851_v48 = vmul.f32 %v1623_v9, %v2873_v58  ;;  %v1925_v62 = vadd.f32 %v1924_v1, %v1923_v16 }
 0x1a0   :  { %v1942_v17 = vsel %vm1023_vm0, %v1863_v46, 0.0  ;;  %v1864_v2 = vmul.f32 %v1548_v8, %v2875_v5  ;;  %v1625_v52 = vpop.f32.mrf.mxu0  ;;  %v1908_v39 = vrot.slane %v3009_v24, 1 }
 0x1a1   :  { %v1943_v28 = vadd.f32 %v1942_v17, %v1941_v57  ;;  %v1706_v12 = vpop.f32.mrf.mxu1  ;;  %v1852_v61 = vmul.f32 %v1625_v52, %v2879_v40  ;;  %v1960_v10 = vadd.f32 %v1851_v48, %v1844_v35  ;;  %v1916_v57 = vrot.slane %v3021_v49, 2 }
 0x1a2   :  { %v1952_v22 = vsel %vm1023_vm0, %v1864_v2, 0.0  ;;  %v1629_v18 = vpop.f32.mrf.mxu0  ;;  %v1846_v16 = vmul.f32 %v1706_v12, %v2891_v23  ;;  %v1926_v29 = vrot.slane %v1925_v62, 2 }
 0x1a3   :  { %v1944_v51 = vrot.slane %v1943_v28, 4  ;;  %v1953_v5 = vadd.f32 %v1952_v22, %v1951_v25  ;;  %v1708_v14 = vpop.f32.mrf.mxu1  ;;  %v1858_v41 = vmul.f32 %v1629_v18, %v2881_v55  ;;  %v1970_v20 = vadd.f32 %v1852_v61, %v1845_v4 }
 0x1a4   :  { %v1631_v32 = vpop.f32.mrf.mxu0  ;;  %v1847_v25 = vmul.f32 %v1708_v14, %v2950_v53  ;;  %v3127_v14 = vld [vmem:[#allocation5_spill] sm:$0xff] }
 0x1a5   :  { %v1945_v58 = vadd.f32 %v1944_v51, %v1943_v28  ;;  %v1954_v56 = vrot.slane %v1953_v5, 4  ;;  %v1712_v30 = vpop.f32.mrf.mxu1  ;;  %v1859_v55 = vmul.f32 %v1631_v32, %v2883_v7  ;;  %v1961_v46 = vadd.f32 %v1960_v10, %v1858_v41  ;;  %v3128_v32 = vld [vmem:[#allocation3_spill] sm:$0xff] }
 0x1a6   :  { %v1635_v36 = vpop.f32.mrf.mxu0  ;;  %v1853_v42 = vmul.f32 %v1712_v30, %v2958_v3 }
 0x1a7   :  { %v1955_v40 = vadd.f32 %v1954_v56, %v1953_v5  ;;  %v1865_v37 = vmul.f32 %v1635_v36, %v2893_v47  ;;  %v1714_v6 = vpop.f32.mrf.mxu1  ;;  %v1946_v13 = vrot.slane %v1945_v58, 2  ;;  %v1971_v2 = vadd.f32 %v1970_v20, %v1859_v55 }
 0x1a8   :  { %v1637_v9 = vpop.f32.mrf.mxu0  ;;  %v1854_v47 = vmul.f32 %v1714_v6, %v2960_v63  ;;  %v1980_v22 = vadd.f32 %v1853_v42, %v1846_v16  ;;  %v1909_v6 = vadd.f32 %v1908_v39, %v3009_v24  ;;  %v2024_v24 = vcombine.low %v3016_v15, %v3024_v54  ;;  %v3130_v15 = vld [vmem:[#allocation17_spill] sm:$0xff] }
 0x1a9   :  { %v1956_v43 = vrot.slane %v1955_v40, 2  ;;  %v1962_v21 = vsel %vm1023_vm0, %v1865_v37, 0.0  ;;  %v1718_v26 = vpop.f32.mrf.mxu1  ;;  %v1866_v7 = vmul.f32 %v1637_v9, %v2954_v50  ;;  %v1947_v48 = vadd.f32 %v1946_v13, %v1945_v58 }
 0x1aa   :  { %v1963_v8 = vadd.f32 %v1962_v21, %v1961_v46  ;;  %v2218_v60 = vpop.f32.mrf.mxu0  ;;  %v1860_v52 = vmul.f32 %v1718_v26, %v2965_v0  ;;  %v1990_v38 = vadd.f32 %v1854_v47, %v1847_v25  ;;  %v1927_v13 = vadd.f32 %v1926_v29, %v1925_v62 }
 0x1ab   :  { %v1957_v17 = vadd.f32 %v1956_v43, %v1955_v40  ;;  %v1720_v44 = vpop.f32.mrf.mxu1  ;;  %v1972_v28 = vsel %vm1023_vm0, %v1866_v7, 0.0  ;;  %v1855_v1 = vmul.f32 %v2218_v60, %v3127_v14  ;;  %v1948_v4 = vrot.slane %v1947_v48, 1 }
 0x1ac   :  { %v1964_v3 = vrot.slane %v1963_v8, 4  ;;  %v1795_v59 = vpop.f32.mrf.mxu0  ;;  %v1973_v50 = vadd.f32 %v1972_v28, %v1971_v2  ;;  %v1861_v63 = vmul.f32 %v1720_v44, %v2967_v45  ;;  %v1981_v53 = vadd.f32 %v1980_v22, %v1860_v52  ;;  %v3129_v45 = vld [vmem:[#allocation18_spill] sm:$0xff] }
 0x1ad   :  { %v1724_v18 = vpop.f32.mrf.mxu1  ;;  %v1848_v23 = vmul.f32 %v1795_v59, %v2977_v31  ;;  %v1958_v51 = vrot.slane %v1957_v17, 1  ;;  %v1936_v60 = vrot.slane %v3028_v27, 2  ;;  %v1949_v16 = vadd.f32 %v1948_v4, %v1947_v48 }
 0x1ae   :  { %v1965_v33 = vadd.f32 %v1964_v3, %v1963_v8  ;;  %v1867_v0 = vmul.f32 %v1724_v18, %v2969_v19  ;;  %v2221_v12 = vpop.f32.mrf.mxu0  ;;  %v1974_v5 = vrot.slane %v1973_v50, 4  ;;  %v1991_v31 = vadd.f32 %v1990_v38, %v1861_v63 }
 0x1af   :  { %v1726_v35 = vpop.f32.mrf.mxu1  ;;  %v1869_v58 = vmul.f32 %v2221_v12, %v3128_v32  ;;  %v2000_v40 = vadd.f32 %v1855_v1, %v1848_v23  ;;  %v1959_v43 = vadd.f32 %v1958_v51, %v1957_v17  ;;  %v2025_v17 = vcombine.low %v3018_v11, %v1909_v6 }
 0x1b0   :  { %v1966_v61 = vrot.slane %v1965_v33, 2  ;;  %v1982_v41 = vsel %vm1023_vm0, %v1867_v0, 0.0  ;;  %v1868_v56 = vmul.f32 %v1726_v35, %v3129_v45  ;;  %v1805_v30 = vpop.f32.mrf.mxu0  ;;  %v1975_v10 = vadd.f32 %v1974_v5, %v1973_v50 }
 0x1b1   :  { %v1983_v36 = vadd.f32 %v1982_v41, %v1981_v53  ;;  %v1862_v37 = vmul.f32 %v1805_v30, %v3007_v34  ;;  %v2002_v21 = vsel %vm1023_vm0, %v1869_v58, 0.0  ;;  %v1917_v34 = vadd.f32 %v1916_v57, %v3021_v49 }
 0x1b2   :  { %v1967_v19 = vadd.f32 %v1966_v61, %v1965_v33  ;;  %v1992_v55 = vsel %vm1023_vm0, %v1868_v56, 0.0  ;;  %v1976_v20 = vrot.slane %v1975_v10, 2  ;;  %v1928_v44 = vrot.slane %v1927_v13, 1 }
 0x1b3   :  { %v1984_v46 = vrot.slane %v1983_v36, 4  ;;  %v1993_v9 = vadd.f32 %v1992_v55, %v1991_v31  ;;  %v2001_v42 = vadd.f32 %v2000_v40, %v1862_v37  ;;  %v2057_v29 = vcombine.low %v1949_v16, %v1959_v43 }
 0x1b4   :  { %v1968_v26 = vrot.slane %v1967_v19, 1  ;;  %v1977_v8 = vadd.f32 %v1976_v20, %v1975_v10  ;;  %v1937_v50 = vadd.f32 %v1936_v60, %v3028_v27  ;;  %v1918_v49 = vrot.slane %v1917_v34, 1 }
 0x1b5   :  { %v1985_v7 = vadd.f32 %v1984_v46, %v1983_v36  ;;  %v1994_v47 = vrot.slane %v1993_v9, 4  ;;  %v2003_v2 = vadd.f32 %v2002_v21, %v2001_v42  ;;  %v2032_v54 = vrot.slane %v2024_v24, %v3130_v15 }
 0x1b6   :  { %v1978_v39 = vrot.slane %v1977_v8, 1  ;;  %v1969_v3 = vadd.f32 %v1968_v26, %v1967_v19  ;;  %v1929_v33 = vadd.f32 %v1928_v44, %v1927_v13  ;;  %v2039_v11 = vrot.slane %v2025_v17, %v3130_v15 }
 0x1b7   :  { %v1986_v52 = vrot.slane %v1985_v7, 2  ;;  %v1995_v62 = vadd.f32 %v1994_v47, %v1993_v9  ;;  %v2004_v25 = vrot.slane %v2003_v2, 4  ;;  %v2065_v23 = vrot.slane %v2057_v29, %v3130_v15 }
 0x1b8   :  { %v1979_v28 = vadd.f32 %v1978_v39, %v1977_v8  ;;  %v1938_v51 = vrot.slane %v1937_v50, 1  ;;  %v1919_v5 = vadd.f32 %v1918_v49, %v1917_v34  ;;  %v2040_v41 = vcombine.low %v2032_v54, %v2039_v11 }
 0x1b9   :  { %v1987_v59 = vadd.f32 %v1986_v52, %v1985_v7  ;;  %v1996_v22 = vrot.slane %v1995_v62, 2  ;;  %v2005_v57 = vadd.f32 %v2004_v25, %v2003_v2 }
 0x1ba   :  { %v2058_v48 = vcombine.low %v1969_v3, %v1979_v28  ;;  %v2041_v35 = vcombine.low %v1919_v5, %v1929_v33  ;;  %v1939_v45 = vadd.f32 %v1938_v51, %v1937_v50 }
 0x1bb   :  { %v1988_v63 = vrot.slane %v1987_v59, 1  ;;  %v1997_v18 = vadd.f32 %v1996_v22, %v1995_v62  ;;  %v2006_v38 = vrot.slane %v2005_v57, 2 }
 0x1bc   :  { %v2072_v0 = vrot.slane %v2058_v48, %v3130_v15  ;;  %v2048_v10 = vrot.slane %v2041_v35, %v3130_v15  ;;  %v2055_v40 = vrot.slane %v1939_v45, %v3130_v15 }
 0x1bd   :  { %v1998_v12 = vrot.slane %v1997_v18, 1  ;;  %v2007_v53 = vadd.f32 %v2006_v38, %v2005_v57  ;;  %v1989_v14 = vadd.f32 %v1988_v63, %v1987_v59 }
 0x1be   :  { %v2073_v27 = vcombine.low %v2065_v23, %v2072_v0  ;;  %v2056_v6 = vcombine.low %v2048_v10, %v2055_v40 }
 0x1bf   :  { %v1999_v1 = vadd.f32 %v1998_v12, %v1997_v18  ;;  %v2008_v61 = vrot.slane %v2007_v53, 1 }
 0x1c0   :  { %v2094_v32 = vrot.slane %v2073_v27, 7 }
 0x1c1   :  { %v2074_v58 = vcombine.low %v1989_v14, %v1999_v1  ;;  %v2009_v56 = vadd.f32 %v2008_v61, %v2007_v53 }
 0x1c2   :  { %v2096_v30 = vsel %vm2095_vm2, %v2094_v32, %v2040_v41 }
 0x1c3   :  { %v2081_v4 = vrot.slane %v2074_v58, %v3130_v15  ;;  %v2098_v31 = vsel %vm2097_vm3, %v2094_v32, %v2096_v30  ;;  %v2088_v36 = vrot.slane %v2009_v56, %v3130_v15 }
 0x1c4   :  { %v2100_v19 = vsel %vm2099_vm4, %v2094_v32, %v2098_v31 }
 0x1c5   :  { %v2102_v55 = vsel %vm2101_vm5, %v2094_v32, %v2100_v19  ;;  %v2089_v37 = vcombine.low %v2081_v4, %v2088_v36 }
 0x1c6   :  { %2112 = vst [vmem:[%s3084_s4] sm:$0xff] %v2102_v55 }
 0x1c7   :  { %v2105_v20 = vrot.slane %v2089_v37, 7 }
 0x1c9   :  { %v2106_v46 = vsel %vm2095_vm2, %v2105_v20, %v2056_v6 }
 0x1ca   :  { %v2107_v9 = vsel %vm2097_vm3, %v2105_v20, %v2106_v46 }
 0x1cb   :  { %v2108_v13 = vsel %vm2099_vm4, %v2105_v20, %v2107_v9 }
 0x1cc   :  { %v2109_v43 = vsel %vm2101_vm5, %v2105_v20, %v2108_v13 }
 0x1cd   :  { %2113 = vst [vmem:[%s3084_s4 + $0x8] sm:$0x3f] %v2109_v43 }

// kernel: net_forward.11
= control target key start
LH: loop header
LB: loop body
LE: loop exit
PB: predicated region body
PF: predicated region fallthrough
CT: control target
= control target key end

     0   :  { %s2090_s12 = smov 0   ;;  %s2092_s13 = smov 0   ;;  %s2789_s0 = inlined_call_operand.vmem [shape: f32[10,25], index: 0, kind: input, shape index: {}]   ;;  %s2790_s1 = inlined_call_operand.vmem [shape: f32[25,1152], index: 1, kind: input, shape index: {}]   ;;  %s2791_s2 = inlined_call_operand.vmem [shape: f32[10,1], index: 2, kind: input, shape index: {}]   ;;  %s2792_s3 = inlined_call_operand.vmem [shape: f32[10,1152], index: 3, kind: output, shape index: {}]  }
   0x1   :  { %s2094_s14 = smov 0  }
   0x2 LB: > { %s2106_s15 = sadd.s32 4294967295, %s1934_s14   ;;  %s2109_s16 = sadd.s32 1, %s1934_s14   ;;  %s1934_s14 = sphi %s2094_s14, %s2821_s14   ;;  %s1930_s13 = sphi %s2092_s13, %s2820_s13   ;;  %s1926_s12 = sphi %s2090_s12, %s2819_s12  }
   0x3   : > { %s38_s17 = ssub.s32 %s1934_s14, %s2109_s16  ;;  %s41_s18 = sadd.s32 1, %s1930_s13 }
   0x4   : > { %p39_p0 = scmp.eq.s32.totalorder %s38_s17, 0  ;;  %p48_p1 = scmp.ne.s32.totalorder %s1930_s13, %s1926_s12 }
   0x5   : > { %p49_p2 = scmp.eq.s32.totalorder %s1934_s14, 0  ;;  %p99_p3 = scmp.eq.s32.totalorder %s2106_s15, 2 }
   0x6   : > { %s2119_s19 = scalar_select %p39_p0, %s1930_s13, %s41_s18  }
   0x7   : > { %p50_p4 = por %p49_p2, %p48_p1  ;;  %p2121_p5 = por %p99_p3, %p48_p1 }
   0x8   : > { %p1421_p6 = scmp.ge.s32.totalorder %s1934_s14, 3 }
   0xa   : > { %127 = sbr.rel (%p1421_p6) target bundleno = 136 (0x88), region = 24 }
   0xf   : > { %130 = sbr.rel (!%p50_p4) target bundleno = 136 (0x88), region = 28  ;;  %s132_s21 = sand.u32 (%p50_p4), 1, %s1930_s13  }
  0x10   : > { %s1423_s22 = sshll.u32 (%p50_p4), %s1934_s14, 2  ;;  %s1422_s23 = sshll.u32 (%p50_p4), %s132_s21, 7 }
  0x11   : > { %s136_s24 = ssub.s32 (%p50_p4), 9, %s1423_s22  ;;  %s1487_s25 = sshll.u32 (%p50_p4), %s1934_s14, 5 }
  0x12   : > { %p137_p7 = scmp.lt.s32.totalorder (%p50_p4), %s136_s24, 4  ;;  %s2132_s28 = scalar_lea.vmem (%p50_p4), %s2790_s1, %s1487_s25  }
  0x13   : > { %s2136_s4 = scalar_lea.vmem (%p50_p4), [#allocation2], %s1422_s23  }
  0x14   : > { %s2823_s24 = smov (!%p137_p7, %s136_s24), 4 }
  0x15   : > { %s1424_s29 = sshll.u32 %s2823_s24, 9  ;;  %s2134_s30 = sshll.u32 %s2823_s24, 3 }
  0x16   : > { %p1428_p8 = scmp.eq.s32.totalorder %s1424_s29, 0 }
  0x17   : > { %p147_p9 = scmp.lt.u32.totalorder (!%p1428_p8), %s2134_s30, 8 }
  0x18   : > { %146 = sbr.rel (%p1428_p8) target bundleno = 136 (0x88), region = 32 }
  0x1d   : > { %150 = sbr.rel (%p147_p9) target bundleno = 125 (0x7d), region = 36  ;;  %s2140_s5 = sand.u32 (!%p147_p9), 7, %s2134_s30  }
  0x1e   : > { %p173_p10 = scmp.eq.s32.totalorder (!%p147_p9), %s2140_s5, 0  ;;  %p1429_p11 = scmp.ne.s32.totalorder (!%p147_p9), %s2140_s5, 0 }
  0x22   : > { %176 = sbr.rel (%p1429_p11) target bundleno = 76 (0x4c), region = 51  ;;  %s177_s6 = sshrl.u32 (!%p1429_p11), %s2134_s30, 3 }
  0x23   : > { %s2147_s7 = sshrl.u32 (!%p1429_p11), %s177_s6, 4 }
  0x24   : > { %p1430_p12 = scmp.le.s32.totalorder (!%p1429_p11), %s2147_s7, 0 }
  0x27   : > { %1291 = sbr.rel (%p1430_p12) target bundleno = 60 (0x3c), region = 229  ;;  %s2794_s8 = smov (!%p1430_p12), %s2136_s4 }
  0x28   : > { %s2795_s9 = smov (!%p1430_p12), %s2132_s28  ;;  %s2156_s10 = smov (!%p1430_p12), 0  }
  0x29   : > { %s2158_s11 = smov (!%p1430_p12), 0  }
  0x2c LB: >> { %v272_v0 = vld [vmem:[%s1942_s9 + $0xd8] sm:$0xff]  ;;  %v274_v1 = vld [vmem:[%s1942_s9 + $0xe0] sm:$0xff]  ;;  %v276_v2 = vld [vmem:[%s1942_s9 + $0xe8] sm:$0xff]  ;;  %s318_s17 = sadd.s32 1, %s1946_s10  ;;  %s184_s11 = sadd.s32 1, %s1950_s11   ;;  %s1950_s11 = sphi %s2158_s11, %s184_s11   ;;  %s1946_s10 = sphi %s2156_s10, %s2798_s10   ;;  %s1942_s9 = sphi %s2795_s9, %s2797_s9   ;;  %s1938_s8 = sphi %s2794_s8, %s2796_s8  }
  0x2d   : >> { %v278_v3 = vld [vmem:[%s1942_s9 + $0xf0] sm:$0xff]  ;;  %v280_v4 = vld [vmem:[%s1942_s9 + $0xf8] sm:$0xff]  ;;  %v282_v5 = vld [vmem:[%s1942_s9 + $0x100] sm:$0xff]  ;;  %287 = vst [vmem:[%s1938_s8 + $0x60] sm:$0xff] %v272_v0  ;;  %p319_p13 = scmp.ge.s32.totalorder %s318_s17, %s2147_s7  ;;  %p183_p0 = scmp.ge.s32.totalorder %s184_s11, %s2147_s7 }
  0x2e   : >> { %289 = vst [vmem:[%s1938_s8 + $0x68] sm:$0xff] %v274_v1  ;;  %291 = vst [vmem:[%s1938_s8 + $0x70] sm:$0xff] %v276_v2  ;;  %v284_v6 = vld [vmem:[%s1942_s9 + $0x108] sm:$0xff]  ;;  %v190_v7 = vld [vmem:[%s1942_s9] sm:$0xff] }
  0x2f   : >> { %v192_v8 = vld [vmem:[%s1942_s9 + $0x8] sm:$0xff]  ;;  %293 = vst [vmem:[%s1938_s8 + $0x78] sm:$0xff] %v278_v3  ;;  %295 = vst [vmem:[%s1938_s8 + $0x80] sm:$0xff] %v280_v4  ;;  %v194_v9 = vld [vmem:[%s1942_s9 + $0x10] sm:$0xff]  ;;  %s2825_s17 = smov (%p319_p13, %s318_s17), 0 }
  0x30   : >> { %297 = vst [vmem:[%s1938_s8 + $0x88] sm:$0xff] %v282_v5  ;;  %191 = vst [vmem:[%s1938_s8] sm:$0xff] %v190_v7  ;;  %v196_v10 = vld [vmem:[%s1942_s9 + $0x18] sm:$0xff]  ;;  %v222_v11 = vld [vmem:[%s1942_s9 + $0x48] sm:$0xff]  ;;  %s1431_s18 = sshll.u32 %s2825_s17, 7  ;;  %s2798_s10 = smov %s2825_s17 }
  0x31   : >> { %193 = vst [vmem:[%s1938_s8 + $0x8] sm:$0xff] %v192_v8  ;;  %299 = vst [vmem:[%s1938_s8 + $0x90] sm:$0xff] %v284_v6  ;;  %v224_v12 = vld [vmem:[%s1942_s9 + $0x50] sm:$0xff]  ;;  %v226_v13 = vld [vmem:[%s1942_s9 + $0x58] sm:$0xff]  ;;  %s323_s21 = scalar_lea.vmem %s2132_s28, %s1431_s18   ;;  %s324_s22 = scalar_lea.vmem %s2136_s4, %s1431_s18 [#allocation2]  }
  0x32   : >> { %195 = vst [vmem:[%s1938_s8 + $0x10] sm:$0xff] %v194_v9  ;;  %197 = vst [vmem:[%s1938_s8 + $0x18] sm:$0xff] %v196_v10  ;;  %v228_v14 = vld [vmem:[%s1942_s9 + $0x60] sm:$0xff]  ;;  %v254_v15 = vld [vmem:[%s1942_s9 + $0x90] sm:$0xff] }
  0x33   : >> { %223 = vst [vmem:[%s1938_s8 + $0x20] sm:$0xff] %v222_v11  ;;  %225 = vst [vmem:[%s1938_s8 + $0x28] sm:$0xff] %v224_v12  ;;  %v256_v16 = vld [vmem:[%s1942_s9 + $0x98] sm:$0xff]  ;;  %v258_v17 = vld [vmem:[%s1942_s9 + $0xa0] sm:$0xff] }
  0x34   : >> { %227 = vst [vmem:[%s1938_s8 + $0x30] sm:$0xff] %v226_v13  ;;  %229 = vst [vmem:[%s1938_s8 + $0x38] sm:$0xff] %v228_v14  ;;  %v260_v18 = vld [vmem:[%s1942_s9 + $0xa8] sm:$0xff]  ;;  %v300_v19 = vld [vmem:[%s1942_s9 + $0x110] sm:$0xff] }
  0x35   : >> { %255 = vst [vmem:[%s1938_s8 + $0x40] sm:$0xff] %v254_v15  ;;  %257 = vst [vmem:[%s1938_s8 + $0x48] sm:$0xff] %v256_v16  ;;  %v302_v20 = vld [vmem:[%s1942_s9 + $0x118] sm:$0xff]  ;;  %v304_v21 = vld [vmem:[%s1942_s9 + $0x120] sm:$0xff] }
  0x36   : >> { %259 = vst [vmem:[%s1938_s8 + $0x50] sm:$0xff] %v258_v17  ;;  %261 = vst [vmem:[%s1938_s8 + $0x58] sm:$0xff] %v260_v18  ;;  %v306_v22 = vld [vmem:[%s1942_s9 + $0x128] sm:$0xff]  ;;  %v308_v23 = vld [vmem:[%s1942_s9 + $0x130] sm:$0xff] }
  0x37   : >> { %301 = vst [vmem:[%s1938_s8 + $0x98] sm:$0xff] %v300_v19  ;;  %303 = vst [vmem:[%s1938_s8 + $0xa0] sm:$0xff] %v302_v20  ;;  %v310_v24 = vld [vmem:[%s1942_s9 + $0x138] sm:$0xff]  ;;  %v312_v25 = vld [vmem:[%s1942_s9 + $0x140] sm:$0xff]  ;;  %186 = sbr.rel (!%p183_p0) target bundleno = 44 (0x2c), region = 235 }
  0x38   : >> { %305 = vst [vmem:[%s1938_s8 + $0xa8] sm:$0xff] %v304_v21  ;;  %307 = vst [vmem:[%s1938_s8 + $0xb0] sm:$0xff] %v306_v22  ;;  %v314_v26 = vld [vmem:[%s1942_s9 + $0x148] sm:$0xff]  ;;  %v316_v27 = vld [vmem:[%s1942_s9 + $0x150] sm:$0xff]  ;;  %s2797_s9 = smov %s323_s21 }
  0x39   : >> { %309 = vst [vmem:[%s1938_s8 + $0xb8] sm:$0xff] %v308_v23  ;;  %311 = vst [vmem:[%s1938_s8 + $0xc0] sm:$0xff] %v310_v24 }
  0x3a   : >> { %313 = vst [vmem:[%s1938_s8 + $0xc8] sm:$0xff] %v312_v25  ;;  %315 = vst [vmem:[%s1938_s8 + $0xd0] sm:$0xff] %v314_v26 }
  0x3b   : >> { %317 = vst [vmem:[%s1938_s8 + $0xd8] sm:$0xff] %v316_v27  ;;  %s2796_s8 = smov %s324_s22 }
  0x3c PF: > { %s2248_s23 = sand.u32 15, %s177_s6   ;;  %s1488_s24 = sshll.u32 %s2147_s7, 11 }
  0x3d   : > { %s329_s25 = sshra.s32 %s1488_s24, 4  ;;  %p1436_p1 = scmp.le.s32.totalorder %s2248_s23, 0 }
  0x3e   : > { %s2252_s26 = scalar_lea.vmem %s2132_s28, %s329_s25   ;;  %s2255_s27 = scalar_lea.vmem %s2136_s4, %s329_s25 [#allocation2]  }
  0x3f   : > { %1305 = sbr.rel (%p1436_p1) target bundleno = 76 (0x4c), region = 240  ;;  %s2799_s29 = smov (!%p1436_p1), %s2255_s27 }
  0x40   : > { %s2800_s8 = smov (!%p1436_p1), %s2252_s26  ;;  %s2264_s9 = smov (!%p1436_p1), 0  }
  0x41   : > { %s1964_s10 = smov (!%p1436_p1), 0  }
  0x44 LB: >> { %v345_v28 = vld [vmem:[%s1958_s8] sm:$0xff]  ;;  %v347_v29 = vld [vmem:[%s1958_s8 + $0x48] sm:$0xff]  ;;  %v349_v30 = vld [vmem:[%s1958_s8 + $0x90] sm:$0xff]  ;;  %s353_s6 = sadd.s32 1, %s1962_s9  ;;  %s339_s10 = sadd.s32 1, %s1966_s10   ;;  %s1966_s10 = sphi %s1964_s10, %s339_s10   ;;  %s1962_s9 = sphi %s2264_s9, %s2801_s9   ;;  %s1958_s8 = sphi %s2800_s8, %s358_s8   ;;  %s1954_s29 = sphi %s2799_s29, %s359_s29  }
  0x45   : >> { %346 = vst [vmem:[%s1954_s29] sm:$0xff] %v345_v28  ;;  %348 = vst [vmem:[%s1954_s29 + $0x20] sm:$0xff] %v347_v29  ;;  %v351_v31 = vld [vmem:[%s1958_s8 + $0xd8] sm:$0xff]  ;;  %p354_p2 = scmp.ge.s32.totalorder %s353_s6, %s2248_s23  ;;  %p338_p3 = scmp.ge.s32.totalorder %s339_s10, %s2248_s23 }
  0x46   : >> { %350 = vst [vmem:[%s1954_s29 + $0x40] sm:$0xff] %v349_v30  ;;  %352 = vst [vmem:[%s1954_s29 + $0x60] sm:$0xff] %v351_v31 }
  0x47   : >> { %s2827_s6 = smov (%p354_p2, %s353_s6), 0  ;;  %341 = sbr.rel (!%p338_p3) target bundleno = 68 (0x44), region = 246 }
  0x48   : >> { %s1437_s7 = sshll.u32 %s2827_s6, 3  ;;  %s2801_s9 = smov %s2827_s6 }
  0x49   : >> { %s358_s8 = scalar_lea.vmem %s2252_s26, %s1437_s7   ;;  %s359_s29 = scalar_lea.vmem %s2255_s27, %s1437_s7 [#allocation2]  }
  0x4c PF: > { %362 = sbr.rel (%p173_p10) target bundleno = 125 (0x7d), region = 69  ;;  %s364_s11 = ssub.s32 (!%p173_p10), %s2134_s30, %s2140_s5 }
  0x4d   : > { %s368_s17 = sshrl.u32 (!%p173_p10), %s2134_s30, 3  ;;  %s2285_s18 = scalar_lea.vmem (!%p173_p10), %s2132_s28, %s364_s11 }
  0x4e   : > { %s2288_s21 = scalar_lea.vmem (!%p173_p10), %s2136_s4, %s364_s11 [#allocation2]  ;;  %s2292_s22 = sshrl.u32 (!%p173_p10), %s368_s17, 4 }
  0x4f   : > { %p1439_p4 = scmp.le.s32.totalorder (!%p173_p10), %s2292_s22, 0 }
  0x51   : > { %1319 = sbr.rel (%p1439_p4) target bundleno = 102 (0x66), region = 251  ;;  %s2802_s23 = smov (!%p1439_p4), %s2136_s4 }
  0x52   : > { %s2803_s24 = smov (!%p1439_p4), %s2132_s28  ;;  %s2301_s25 = smov (!%p1439_p4), 0  }
  0x53   : > { %s2303_s26 = smov (!%p1439_p4), 0  }
  0x56 LB: >> { %v463_v32 = vld [vmem:[%s1974_s24 + $0xd8] sm:$0xff]  ;;  %v465_v33 = vld [vmem:[%s1974_s24 + $0xe0] sm:$0xff]  ;;  %v467_v34 = vld [vmem:[%s1974_s24 + $0xe8] sm:$0xff]  ;;  %s509_s27 = sadd.s32 1, %s1978_s25  ;;  %s375_s26 = sadd.s32 1, %s1982_s26   ;;  %s1982_s26 = sphi %s2303_s26, %s375_s26   ;;  %s1978_s25 = sphi %s2301_s25, %s2806_s25   ;;  %s1974_s24 = sphi %s2803_s24, %s2805_s24   ;;  %s1970_s23 = sphi %s2802_s23, %s2804_s23  }
  0x57   : >> { %v469_v35 = vld [vmem:[%s1974_s24 + $0xf0] sm:$0xff]  ;;  %v471_v36 = vld [vmem:[%s1974_s24 + $0xf8] sm:$0xff]  ;;  %v473_v37 = vld [vmem:[%s1974_s24 + $0x100] sm:$0xff]  ;;  %478 = vst [vmem:[%s1970_s23 + $0x60] sm:$0xff] %v463_v32  ;;  %p510_p6 = scmp.ge.s32.totalorder %s509_s27, %s2292_s22  ;;  %p374_p7 = scmp.ge.s32.totalorder %s375_s26, %s2292_s22 }
  0x58   : >> { %480 = vst [vmem:[%s1970_s23 + $0x68] sm:$0xff] %v465_v33  ;;  %482 = vst [vmem:[%s1970_s23 + $0x70] sm:$0xff] %v467_v34  ;;  %v475_v38 = vld [vmem:[%s1974_s24 + $0x108] sm:$0xff]  ;;  %v381_v39 = vld [vmem:[%s1974_s24] sm:$0xff] }
  0x59   : >> { %v383_v40 = vld [vmem:[%s1974_s24 + $0x8] sm:$0xff]  ;;  %484 = vst [vmem:[%s1970_s23 + $0x78] sm:$0xff] %v469_v35  ;;  %486 = vst [vmem:[%s1970_s23 + $0x80] sm:$0xff] %v471_v36  ;;  %v385_v41 = vld [vmem:[%s1974_s24 + $0x10] sm:$0xff]  ;;  %s2829_s27 = smov (%p510_p6, %s509_s27), 0 }
  0x5a   : >> { %488 = vst [vmem:[%s1970_s23 + $0x88] sm:$0xff] %v473_v37  ;;  %382 = vst [vmem:[%s1970_s23] sm:$0xff] %v381_v39  ;;  %v387_v42 = vld [vmem:[%s1974_s24 + $0x18] sm:$0xff]  ;;  %v413_v43 = vld [vmem:[%s1974_s24 + $0x48] sm:$0xff]  ;;  %s1440_s29 = sshll.u32 %s2829_s27, 7  ;;  %s2806_s25 = smov %s2829_s27 }
  0x5b   : >> { %384 = vst [vmem:[%s1970_s23 + $0x8] sm:$0xff] %v383_v40  ;;  %490 = vst [vmem:[%s1970_s23 + $0x90] sm:$0xff] %v475_v38  ;;  %v415_v44 = vld [vmem:[%s1974_s24 + $0x50] sm:$0xff]  ;;  %v417_v45 = vld [vmem:[%s1974_s24 + $0x58] sm:$0xff]  ;;  %s514_s8 = scalar_lea.vmem %s2132_s28, %s1440_s29   ;;  %s515_s9 = scalar_lea.vmem %s2136_s4, %s1440_s29 [#allocation2]  }
  0x5c   : >> { %386 = vst [vmem:[%s1970_s23 + $0x10] sm:$0xff] %v385_v41  ;;  %388 = vst [vmem:[%s1970_s23 + $0x18] sm:$0xff] %v387_v42  ;;  %v419_v46 = vld [vmem:[%s1974_s24 + $0x60] sm:$0xff]  ;;  %v445_v47 = vld [vmem:[%s1974_s24 + $0x90] sm:$0xff] }
  0x5d   : >> { %414 = vst [vmem:[%s1970_s23 + $0x20] sm:$0xff] %v413_v43  ;;  %416 = vst [vmem:[%s1970_s23 + $0x28] sm:$0xff] %v415_v44  ;;  %v447_v48 = vld [vmem:[%s1974_s24 + $0x98] sm:$0xff]  ;;  %v449_v49 = vld [vmem:[%s1974_s24 + $0xa0] sm:$0xff] }
  0x5e   : >> { %418 = vst [vmem:[%s1970_s23 + $0x30] sm:$0xff] %v417_v45  ;;  %420 = vst [vmem:[%s1970_s23 + $0x38] sm:$0xff] %v419_v46  ;;  %v451_v50 = vld [vmem:[%s1974_s24 + $0xa8] sm:$0xff]  ;;  %v491_v51 = vld [vmem:[%s1974_s24 + $0x110] sm:$0xff] }
  0x5f   : >> { %446 = vst [vmem:[%s1970_s23 + $0x40] sm:$0xff] %v445_v47  ;;  %448 = vst [vmem:[%s1970_s23 + $0x48] sm:$0xff] %v447_v48  ;;  %v493_v52 = vld [vmem:[%s1974_s24 + $0x118] sm:$0xff]  ;;  %v495_v53 = vld [vmem:[%s1974_s24 + $0x120] sm:$0xff] }
  0x60   : >> { %450 = vst [vmem:[%s1970_s23 + $0x50] sm:$0xff] %v449_v49  ;;  %452 = vst [vmem:[%s1970_s23 + $0x58] sm:$0xff] %v451_v50  ;;  %v497_v54 = vld [vmem:[%s1974_s24 + $0x128] sm:$0xff]  ;;  %v499_v55 = vld [vmem:[%s1974_s24 + $0x130] sm:$0xff] }
  0x61   : >> { %492 = vst [vmem:[%s1970_s23 + $0x98] sm:$0xff] %v491_v51  ;;  %494 = vst [vmem:[%s1970_s23 + $0xa0] sm:$0xff] %v493_v52  ;;  %v501_v56 = vld [vmem:[%s1974_s24 + $0x138] sm:$0xff]  ;;  %v503_v57 = vld [vmem:[%s1974_s24 + $0x140] sm:$0xff]  ;;  %377 = sbr.rel (!%p374_p7) target bundleno = 86 (0x56), region = 257 }
  0x62   : >> { %496 = vst [vmem:[%s1970_s23 + $0xa8] sm:$0xff] %v495_v53  ;;  %498 = vst [vmem:[%s1970_s23 + $0xb0] sm:$0xff] %v497_v54  ;;  %v505_v58 = vld [vmem:[%s1974_s24 + $0x148] sm:$0xff]  ;;  %v507_v59 = vld [vmem:[%s1974_s24 + $0x150] sm:$0xff]  ;;  %s2805_s24 = smov %s514_s8 }
  0x63   : >> { %500 = vst [vmem:[%s1970_s23 + $0xb8] sm:$0xff] %v499_v55  ;;  %502 = vst [vmem:[%s1970_s23 + $0xc0] sm:$0xff] %v501_v56 }
  0x64   : >> { %504 = vst [vmem:[%s1970_s23 + $0xc8] sm:$0xff] %v503_v57  ;;  %506 = vst [vmem:[%s1970_s23 + $0xd0] sm:$0xff] %v505_v58 }
  0x65   : >> { %508 = vst [vmem:[%s1970_s23 + $0xd8] sm:$0xff] %v507_v59  ;;  %s2804_s23 = smov %s515_s9 }
  0x66 PF: > { %s2393_s10 = sand.u32 15, %s368_s17   ;;  %s1490_s6 = sshll.u32 %s2292_s22, 11 }
  0x67   : > { %s520_s7 = sshra.s32 %s1490_s6, 4  ;;  %p1445_p8 = scmp.le.s32.totalorder %s2393_s10, 0 }
  0x68   : > { %s2397_s11 = scalar_lea.vmem %s2132_s28, %s520_s7   ;;  %s2400_s29 = scalar_lea.vmem %s2136_s4, %s520_s7 [#allocation2]  }
  0x69   : > { %1333 = sbr.rel (%p1445_p8) target bundleno = 118 (0x76), region = 262  ;;  %s2807_s23 = smov (!%p1445_p8), %s2400_s29 }
  0x6a   : > { %s2808_s24 = smov (!%p1445_p8), %s2397_s11  ;;  %s1992_s25 = smov (!%p1445_p8), 0  }
  0x6b   : > { %s1996_s26 = smov (!%p1445_p8), 0  }
  0x6e LB: >> { %v536_v60 = vld [vmem:[%s1990_s24] sm:$0xff]  ;;  %v538_v61 = vld [vmem:[%s1990_s24 + $0x48] sm:$0xff]  ;;  %v540_v62 = vld [vmem:[%s1990_s24 + $0x90] sm:$0xff]  ;;  %s544_s17 = sadd.s32 1, %s1994_s25  ;;  %s530_s26 = sadd.s32 1, %s1998_s26   ;;  %s1998_s26 = sphi %s1996_s26, %s530_s26   ;;  %s1994_s25 = sphi %s1992_s25, %s1993_s25   ;;  %s1990_s24 = sphi %s2808_s24, %s549_s24   ;;  %s1986_s23 = sphi %s2807_s23, %s550_s23  }
  0x6f   : >> { %537 = vst [vmem:[%s1986_s23] sm:$0xff] %v536_v60  ;;  %539 = vst [vmem:[%s1986_s23 + $0x20] sm:$0xff] %v538_v61  ;;  %v542_v63 = vld [vmem:[%s1990_s24 + $0xd8] sm:$0xff]  ;;  %p545_p9 = scmp.ge.s32.totalorder %s544_s17, %s2393_s10  ;;  %p529_p10 = scmp.ge.s32.totalorder %s530_s26, %s2393_s10 }
  0x70   : >> { %541 = vst [vmem:[%s1986_s23 + $0x40] sm:$0xff] %v540_v62  ;;  %543 = vst [vmem:[%s1986_s23 + $0x60] sm:$0xff] %v542_v63 }
  0x71   : >> { %s2831_s17 = smov (%p545_p9, %s544_s17), 0  ;;  %532 = sbr.rel (!%p529_p10) target bundleno = 110 (0x6e), region = 268 }
  0x72   : >> { %s1446_s22 = sshll.u32 %s2831_s17, 3  ;;  %s1993_s25 = smov %s2831_s17  }
  0x73   : >> { %s549_s24 = scalar_lea.vmem %s2397_s11, %s1446_s22   ;;  %s550_s23 = scalar_lea.vmem %s2400_s29, %s1446_s22 [#allocation2]  }
  0x76 PF: > { %s2064_s27 = smov 1  }
  0x77   : > { %s551_s8 = sshll.u32 %s2064_s27, %s2140_s5 }
  0x78   : > { %s1448_s9 = sadd.s32 4294967295, %s551_s8 }
  0x79   : > { %v561_v0 = vld [vmem:[%s2285_s18] sm:%s1448_s9]  ;;  %v563_v1 = vld [vmem:[%s2285_s18 + $0x48] sm:%s1448_s9] }
  0x7a   : > { %562 = vst [vmem:[%s2288_s21] sm:%s1448_s9] %v561_v0  ;;  %564 = vst [vmem:[%s2288_s21 + $0x20] sm:%s1448_s9] %v563_v1 }
  0x7b   : > { %v565_v2 = vld [vmem:[%s2285_s18 + $0x90] sm:%s1448_s9]  ;;  %v567_v3 = vld [vmem:[%s2285_s18 + $0xd8] sm:%s1448_s9] }
  0x7c   : > { %566 = vst [vmem:[%s2288_s21 + $0x40] sm:%s1448_s9] %v565_v2  ;;  %568 = vst [vmem:[%s2288_s21 + $0x60] sm:%s1448_s9] %v567_v3 }
  0x7d PF: > { %p1449_p11 = scmp.ge.u32.totalorder %s2134_s30, 8 }
  0x7e   : > { %s2065_s10 = smov (!%p1449_p11), 1  }
  0x7f   : > { %153 = sbr.rel (%p1449_p11) target bundleno = 136 (0x88), region = 40  ;;  %s154_s5 = sshll.u32 (!%p1449_p11), %s2065_s10, %s2134_s30 }
  0x80   : > { %s1450_s6 = sadd.s32 (!%p1449_p11), 4294967295, %s154_s5 }
  0x84   : > { %v164_v4 = vld [vmem:[%s2132_s28] sm:%s1450_s6]  ;;  %v166_v5 = vld [vmem:[%s2132_s28 + $0x48] sm:%s1450_s6] }
  0x85   : > { %165 = vst [vmem:[%s2136_s4] sm:%s1450_s6] %v164_v4  ;;  %167 = vst [vmem:[%s2136_s4 + $0x20] sm:%s1450_s6] %v166_v5 }
  0x86   : > { %v168_v6 = vld [vmem:[%s2132_s28 + $0x90] sm:%s1450_s6]  ;;  %v170_v7 = vld [vmem:[%s2132_s28 + $0xd8] sm:%s1450_s6] }
  0x87   : > { %169 = vst [vmem:[%s2136_s4 + $0x40] sm:%s1450_s6] %v168_v6  ;;  %171 = vst [vmem:[%s2136_s4 + $0x60] sm:%s1450_s6] %v170_v7 }
  0x88 PF: > { %p1451_p12 = scmp.ge.s32.totalorder %s1934_s14, 1  ;;  %p571_p13 = scmp.lt.s32.totalorder %s1934_s14, 4 }
  0x8a   : > { %p572_p0 = pnand %p1451_p12, %p571_p13 }
  0x8b   : > { %s578_s30 = sand.u32 (!%p572_p0), 1, %s1926_s12  }
  0x8c   : > { %575 = sbr.rel (%p572_p0) target bundleno = 491 (0x1eb), region = 94  ;;  %s1452_s18 = sshll.u32 (!%p572_p0), %s578_s30, 7 }
  0x8d   : > { %s580_s7 = scalar_lea.vmem (!%p572_p0), [#allocation2], %s1452_s18  ;;  %s1453_s25 = sshll.u32 (!%p572_p0), %s578_s30, 6 }
  0x8e   : > { %s2457_s26 = scalar_lea.vmem (!%p572_p0), [#allocation3], %s1453_s25  }
  0x91   : > { %vm654_vm0 = vcmask 1043456   ;;  %vm655_vm1 = vcmask 1044480   ;;  %v2066_v8 = vmov 65535   ;;  %v2067_v10 = vmov 0   ;;  %v638_v11 = vld [vmem:[%s2791_s2] sm:$0xff]  ;;  %v623_v13 = vld [vmem:[%s580_s7 + $0x48] sm:$0xff] }
  0x92   : > { %v656_v9 = vsel %vm654_vm0, 4294967295, %v2066_v8  ;;  %702 = vmatprep.mubr.bf16.mxu0 %v2067_v10  ;;  %745 = vmatprep.mubr.bf16.mxu1 %v2067_v10  ;;  %v639_v12 = vld [vmem:[%s2791_s2 + $0x8] sm:$0x3]  ;;  %v625_v16 = vld [vmem:[%s580_s7 + $0x58] sm:$0xff]  ;;  %v622_v19 = vld [vmem:[%s580_s7 + $0x40] sm:$0xff]  ;;  %vm650_vm2 = vcmask 203776  }
  0x93   : > { %1783 = vset.pattern.permute.xlu0 %v2067_v10  ;;  %v627_v14 = vld [vmem:[%s580_s7 + $0x68] sm:$0x1]  ;;  %v657_v15 = vsel %vm655_vm1, %v656_v9, 0  ;;  %v629_v18 = vld [vmem:[%s580_s7 + $0x78] sm:$0x1]  ;;  %v624_v23 = vld [vmem:[%s580_s7 + $0x50] sm:$0xff] }
  0x94   : > { %642 = vperm.xlu0 %1783, %v638_v11   ;;  %v635_v17 = vpack.c.bf16 %v627_v14, %v623_v13  ;;  %v626_v20 = vld [vmem:[%s580_s7 + $0x60] sm:$0x1]  ;;  %v637_v21 = vpack.c.bf16 %v629_v18, %v625_v16  ;;  %v628_v24 = vld [vmem:[%s580_s7 + $0x70] sm:$0x1]  ;;  %v615_v25 = vld [vmem:[%s580_s7 + $0x8] sm:$0xff]  ;;  %s1457_s12 = sshll.u32 (%p2121_p5), %s2106_s15, 2 }
  0x95   : > { %v634_v22 = vpack.c.bf16 %v626_v20, %v622_v19  ;;  %v636_v27 = vpack.c.bf16 %v628_v24, %v624_v23  ;;  %v619_v28 = vld [vmem:[%s580_s7 + $0x28] sm:$0xff]  ;;  %v617_v29 = vld [vmem:[%s580_s7 + $0x18] sm:$0xff]  ;;  %v614_v35 = vld [vmem:[%s580_s7] sm:$0xff]  ;;  %s1492_s17 = sshll.u32 (%p2121_p5), %s2106_s15, 5  ;;  %s780_s22 = ssub.s32 (%p2121_p5), 9, %s1457_s12 }
  0x96   : > { %v662_v26 = vand.u32 %v657_v15, %v635_v17  ;;  %v621_v30 = vld [vmem:[%s580_s7 + $0x38] sm:$0xff]  ;;  %v668_v31 = vand.u32 %v657_v15, %v637_v21  ;;  %v631_v33 = vpack.c.bf16 %v619_v28, %v615_v25  ;;  %v618_v36 = vld [vmem:[%s580_s7 + $0x20] sm:$0xff]  ;;  %v616_v37 = vld [vmem:[%s580_s7 + $0x10] sm:$0xff]  ;;  %s2474_s9 = scalar_lea.vmem (%p2121_p5), %s2792_s3, %s1492_s17   ;;  %p781_p1 = scmp.lt.s32.totalorder (%p2121_p5), %s780_s22, 4 }
  0x97   : > { %v659_v32 = vand.u32 %v657_v15, %v634_v22  ;;  %v633_v34 = vpack.c.bf16 %v621_v30, %v617_v29  ;;  %v665_v38 = vand.u32 %v657_v15, %v636_v27  ;;  %v620_v39 = vld [vmem:[%s580_s7 + $0x30] sm:$0xff]  ;;  %v630_v40 = vpack.c.bf16 %v618_v36, %v614_v35  ;;  %v611_v41 = vld [vmem:[%s2789_s0] sm:$0xff]  ;;  %v612_v42 = vld [vmem:[%s2789_s0 + $0x8] sm:$0x3] }
  0x98   : > { %647 = vperm.xlu0 %1783, %v639_v12   ;;  %682 = vmatprep.subr.bf16.mxu0 %v662_v26  ;;  %v632_v43 = vpack.c.bf16 %v620_v39, %v616_v37  ;;  %v613_v44 = vpack.c.bf16 %v612_v42, %v611_v41 }
  0x99   : > { %725 = vmatprep.subr.bf16.mxu1 %v668_v31  ;;  %683 = vmatpush1.bf16.msra.mxu0 %v659_v32 }
  0x9a   : > { %726 = vmatpush1.bf16.msra.mxu1 %v665_v38  ;;  %684 = vmatprep.subr.bf16.mxu0 %v631_v33 }
  0x9b   : > { %727 = vmatprep.subr.bf16.mxu1 %v633_v34 }
  0x9d   : > { %685 = vmatpush1.bf16.msra.mxu0 %v630_v40 }
  0x9e   : > { %728 = vmatpush1.bf16.msra.mxu1 %v632_v43 }
  0xa0   : > { %1454 = vmatmul.mubr.msk.bf16.vlgmr.msra.gmra.mxu0 %vm650_vm2, %v613_v44 }
  0xa1   : > { %1455 = vmatmul.mubr.msk.bf16.vlgmr.msra.gmra.mxu1 %vm650_vm2, %v613_v44 }
 0x10f   : > { %v643_v45 = vpop.permute.xlu0 %642 }
 0x113   : > { %v648_v55 = vpop.permute.xlu0 %647 }
 0x160   : > { %v704_v46 = vpop.f32.mrf.mxu0 }
 0x161   : > { %v705_v47 = vadd.f32 %v704_v46, %v643_v45  ;;  %v747_v48 = vpop.f32.mrf.mxu1 }
 0x162   : > { %v748_v49 = vadd.f32 %v747_v48, %v643_v45  ;;  %v706_v50 = vpop.f32.mrf.mxu0 }
 0x163   : > { %v756_v51 = vmax.f32 %v705_v47, 0.0  ;;  %v707_v52 = vadd.f32 %v706_v50, %v643_v45  ;;  %v749_v53 = vpop.f32.mrf.mxu1 }
 0x164   : > { %v758_v54 = vmax.f32 %v748_v49, 0.0  ;;  %v750_v56 = vadd.f32 %v749_v53, %v643_v45  ;;  %v708_v57 = vpop.f32.mrf.mxu0 }
 0x165   : > { %764 = vst [vmem:[%s2457_s26] sm:$0xff] %v756_v51  ;;  %v757_v58 = vmax.f32 %v707_v52, 0.0  ;;  %v709_v59 = vadd.f32 %v708_v57, %v648_v55  ;;  %v751_v60 = vpop.f32.mrf.mxu1 }
 0x166   : > { %766 = vst [vmem:[%s2457_s26 + $0x10] sm:$0xff] %v758_v54  ;;  %v759_v61 = vmax.f32 %v750_v56, 0.0  ;;  %v752_v62 = vadd.f32 %v751_v60, %v648_v55  ;;  %v710_v63 = vpop.f32.mrf.mxu0 }
 0x167   : > { %765 = vst [vmem:[%s2457_s26 + $0x8] sm:$0xff] %v757_v58  ;;  %v760_v0 = vmax.f32 %v709_v59, 0.0  ;;  %v711_v1 = vadd.f32 %v710_v63, %v648_v55  ;;  %v753_v2 = vpop.f32.mrf.mxu1 }
 0x168   : > { %767 = vst [vmem:[%s2457_s26 + $0x18] sm:$0xff] %v759_v61  ;;  %v762_v3 = vmax.f32 %v752_v62, 0.0  ;;  %v754_v4 = vadd.f32 %v753_v2, %v648_v55  ;;  %778 = sbr.rel (!%p2121_p5) target bundleno = 491 (0x1eb), region = 102 }
 0x169   : > { %768 = vst [vmem:[%s2457_s26 + $0x20] sm:$0x3] %v760_v0  ;;  %v761_v5 = vmax.f32 %v711_v1, 0.0 }
 0x16a   : > { %770 = vst [vmem:[%s2457_s26 + $0x30] sm:$0x3] %v762_v3  ;;  %v763_v6 = vmax.f32 %v754_v4, 0.0 }
 0x16b   : > { %769 = vst [vmem:[%s2457_s26 + $0x28] sm:$0x3] %v761_v5 }
 0x16c   : > { %771 = vst [vmem:[%s2457_s26 + $0x38] sm:$0x3] %v763_v6 }
 0x16d   : > { %s2833_s22 = smov (!%p781_p1, %s780_s22), 4 }
 0x16e   : > { %s1458_s10 = sshll.u32 %s2833_s22, 8  ;;  %s2476_s5 = sshll.u32 %s2833_s22, 3 }
 0x16f   : > { %p1462_p2 = scmp.eq.s32.totalorder %s1458_s10, 0 }
 0x170   : > { %p791_p3 = scmp.lt.u32.totalorder (!%p1462_p2), %s2476_s5, 8 }
 0x171   : > { %790 = sbr.rel (%p1462_p2) target bundleno = 491 (0x1eb), region = 106 }
 0x176   : > { %794 = sbr.rel (%p791_p3) target bundleno = 481 (0x1e1), region = 110  ;;  %s2480_s20 = sand.u32 (!%p791_p3), 7, %s2476_s5  }
 0x177   : > { %p813_p5 = scmp.eq.s32.totalorder (!%p791_p3), %s2480_s20, 0  ;;  %p1463_p4 = scmp.ne.s32.totalorder (!%p791_p3), %s2480_s20, 0 }
 0x17b   : > { %816 = sbr.rel (%p1463_p4) target bundleno = 427 (0x1ab), region = 125  ;;  %s817_s15 = sshrl.u32 (!%p1463_p4), %s2476_s5, 3 }
 0x17c   : > { %s2487_s6 = sshrl.u32 (!%p1463_p4), %s817_s15, 5 }
 0x17d   : > { %p1464_p6 = scmp.le.s32.totalorder (!%p1463_p4), %s2487_s6, 0 }
 0x180   : > { %1347 = sbr.rel (%p1464_p6) target bundleno = 411 (0x19b), region = 273  ;;  %s2809_s30 = smov (!%p1464_p6), %s2474_s9 }
 0x181   : > { %s2810_s18 = smov (!%p1464_p6), %s2457_s26  ;;  %s2496_s28 = smov (!%p1464_p6), 0  }
 0x182   : > { %s2498_s4 = smov (!%p1464_p6), 0  }
 0x185 LB: >> { %v830_v7 = vld [vmem:[%s2006_s18] sm:$0xff]  ;;  %v832_v8 = vld [vmem:[%s2006_s18 + $0x8] sm:$0xff]  ;;  %v834_v9 = vld [vmem:[%s2006_s18 + $0x10] sm:$0xff]  ;;  %s958_s14 = sadd.s32 1, %s2010_s28  ;;  %s824_s4 = sadd.s32 1, %s2014_s4   ;;  %s2014_s4 = sphi %s2498_s4, %s824_s4   ;;  %s2010_s28 = sphi %s2496_s28, %s2813_s28   ;;  %s2006_s18 = sphi %s2810_s18, %s2812_s18   ;;  %s2002_s30 = sphi %s2809_s30, %s2811_s30  }
 0x186   : >> { %831 = vst [vmem:[%s2002_s30] sm:$0xff] %v830_v7  ;;  %833 = vst [vmem:[%s2002_s30 + $0x8] sm:$0xff] %v832_v8  ;;  %v836_v10 = vld [vmem:[%s2006_s18 + $0x18] sm:$0xff]  ;;  %v838_v11 = vld [vmem:[%s2006_s18 + $0x20] sm:$0xff]  ;;  %p959_p7 = scmp.ge.s32.totalorder %s958_s14, %s2487_s6  ;;  %p823_p8 = scmp.ge.s32.totalorder %s824_s4, %s2487_s6 }
 0x187   : >> { %835 = vst [vmem:[%s2002_s30 + $0x10] sm:$0xff] %v834_v9  ;;  %v840_v12 = vld [vmem:[%s2006_s18 + $0x28] sm:$0xff]  ;;  %837 = vst [vmem:[%s2002_s30 + $0x18] sm:$0xff] %v836_v10  ;;  %v842_v13 = vld [vmem:[%s2006_s18 + $0x30] sm:$0xff] }
 0x188   : >> { %839 = vst [vmem:[%s2002_s30 + $0x20] sm:$0xff] %v838_v11  ;;  %841 = vst [vmem:[%s2002_s30 + $0x28] sm:$0xff] %v840_v12  ;;  %v844_v14 = vld [vmem:[%s2006_s18 + $0x38] sm:$0xff]  ;;  %v846_v15 = vld [vmem:[%s2006_s18 + $0x40] sm:$0xff]  ;;  %s2835_s14 = smov (%p959_p7, %s958_s14), 0 }
 0x189   : >> { %895 = vst [vmem:[%s2002_s30 + $0x48] sm:$0xff] %v838_v11  ;;  %897 = vst [vmem:[%s2002_s30 + $0x50] sm:$0xff] %v840_v12  ;;  %v904_v16 = vld [vmem:[%s2006_s18 + $0x48] sm:$0xff]  ;;  %v906_v17 = vld [vmem:[%s2006_s18 + $0x50] sm:$0xff]  ;;  %s1465_s21 = sshll.u32 %s2835_s14, 8  ;;  %s2813_s28 = smov %s2835_s14 }
 0x18a   : >> { %843 = vst [vmem:[%s2002_s30 + $0x30] sm:$0xff] %v842_v13  ;;  %845 = vst [vmem:[%s2002_s30 + $0x38] sm:$0xff] %v844_v14  ;;  %v908_v18 = vld [vmem:[%s2006_s18 + $0x58] sm:$0xff]  ;;  %v910_v19 = vld [vmem:[%s2006_s18 + $0x60] sm:$0xff]  ;;  %s963_s7 = scalar_lea.vmem %s2457_s26, %s1465_s21 [#allocation3]   ;;  %s964_s11 = scalar_lea.vmem %s2474_s9, %s1465_s21  }
 0x18b   : >> { %847 = vst [vmem:[%s2002_s30 + $0x40] sm:$0xff] %v846_v15  ;;  %899 = vst [vmem:[%s2002_s30 + $0x58] sm:$0xff] %v842_v13  ;;  %v912_v20 = vld [vmem:[%s2006_s18 + $0x68] sm:$0xff]  ;;  %v914_v21 = vld [vmem:[%s2006_s18 + $0x70] sm:$0xff] }
 0x18c   : >> { %901 = vst [vmem:[%s2002_s30 + $0x60] sm:$0xff] %v844_v14  ;;  %903 = vst [vmem:[%s2002_s30 + $0x68] sm:$0xff] %v846_v15  ;;  %v916_v22 = vld [vmem:[%s2006_s18 + $0x78] sm:$0xff]  ;;  %v918_v23 = vld [vmem:[%s2006_s18 + $0x80] sm:$0xff] }
 0x18d   : >> { %905 = vst [vmem:[%s2002_s30 + $0x70] sm:$0xff] %v904_v16  ;;  %907 = vst [vmem:[%s2002_s30 + $0x78] sm:$0xff] %v906_v17  ;;  %v920_v24 = vld [vmem:[%s2006_s18 + $0x88] sm:$0xff]  ;;  %v922_v25 = vld [vmem:[%s2006_s18 + $0x90] sm:$0xff] }
 0x18e   : >> { %909 = vst [vmem:[%s2002_s30 + $0x80] sm:$0xff] %v908_v18  ;;  %911 = vst [vmem:[%s2002_s30 + $0x88] sm:$0xff] %v910_v19  ;;  %v924_v26 = vld [vmem:[%s2006_s18 + $0x98] sm:$0xff]  ;;  %v926_v27 = vld [vmem:[%s2006_s18 + $0xa0] sm:$0xff] }
 0x18f   : >> { %913 = vst [vmem:[%s2002_s30 + $0x90] sm:$0xff] %v912_v20  ;;  %915 = vst [vmem:[%s2002_s30 + $0x98] sm:$0xff] %v914_v21  ;;  %v928_v28 = vld [vmem:[%s2006_s18 + $0xa8] sm:$0xff]  ;;  %v930_v29 = vld [vmem:[%s2006_s18 + $0xb0] sm:$0xff] }
 0x190   : >> { %917 = vst [vmem:[%s2002_s30 + $0xa0] sm:$0xff] %v916_v22  ;;  %919 = vst [vmem:[%s2002_s30 + $0xa8] sm:$0xff] %v918_v23  ;;  %v932_v30 = vld [vmem:[%s2006_s18 + $0xb8] sm:$0xff]  ;;  %v934_v31 = vld [vmem:[%s2006_s18 + $0xc0] sm:$0xff] }
 0x191   : >> { %921 = vst [vmem:[%s2002_s30 + $0xb0] sm:$0xff] %v920_v24  ;;  %923 = vst [vmem:[%s2002_s30 + $0xb8] sm:$0xff] %v922_v25  ;;  %v936_v32 = vld [vmem:[%s2006_s18 + $0xc8] sm:$0xff]  ;;  %v938_v33 = vld [vmem:[%s2006_s18 + $0xd0] sm:$0xff] }
 0x192   : >> { %925 = vst [vmem:[%s2002_s30 + $0xc0] sm:$0xff] %v924_v26  ;;  %927 = vst [vmem:[%s2002_s30 + $0xc8] sm:$0xff] %v926_v27  ;;  %v940_v34 = vld [vmem:[%s2006_s18 + $0xd8] sm:$0xff]  ;;  %v942_v35 = vld [vmem:[%s2006_s18 + $0xe0] sm:$0xff] }
 0x193   : >> { %929 = vst [vmem:[%s2002_s30 + $0xd0] sm:$0xff] %v928_v28  ;;  %931 = vst [vmem:[%s2002_s30 + $0xd8] sm:$0xff] %v930_v29  ;;  %v944_v36 = vld [vmem:[%s2006_s18 + $0xe8] sm:$0xff]  ;;  %v946_v37 = vld [vmem:[%s2006_s18 + $0xf0] sm:$0xff] }
 0x194   : >> { %933 = vst [vmem:[%s2002_s30 + $0xe0] sm:$0xff] %v932_v30  ;;  %935 = vst [vmem:[%s2002_s30 + $0xe8] sm:$0xff] %v934_v31  ;;  %v948_v38 = vld [vmem:[%s2006_s18 + $0xf8] sm:$0xff]  ;;  %v950_v39 = vld [vmem:[%s2006_s18 + $0x100] sm:$0xff] }
 0x195   : >> { %937 = vst [vmem:[%s2002_s30 + $0xf0] sm:$0xff] %v936_v32  ;;  %939 = vst [vmem:[%s2002_s30 + $0xf8] sm:$0xff] %v938_v33  ;;  %v952_v40 = vld [vmem:[%s2006_s18 + $0x108] sm:$0xff]  ;;  %v954_v41 = vld [vmem:[%s2006_s18 + $0x110] sm:$0xff] }
 0x196   : >> { %941 = vst [vmem:[%s2002_s30 + $0x100] sm:$0xff] %v940_v34  ;;  %943 = vst [vmem:[%s2002_s30 + $0x108] sm:$0xff] %v942_v35  ;;  %v956_v42 = vld [vmem:[%s2006_s18 + $0x118] sm:$0xff]  ;;  %s2812_s18 = smov %s963_s7  ;;  %826 = sbr.rel (!%p823_p8) target bundleno = 389 (0x185), region = 279 }
 0x197   : >> { %945 = vst [vmem:[%s2002_s30 + $0x110] sm:$0xff] %v944_v36  ;;  %947 = vst [vmem:[%s2002_s30 + $0x118] sm:$0xff] %v946_v37 }
 0x198   : >> { %949 = vst [vmem:[%s2002_s30 + $0x120] sm:$0xff] %v948_v38  ;;  %951 = vst [vmem:[%s2002_s30 + $0x128] sm:$0xff] %v950_v39 }
 0x199   : >> { %953 = vst [vmem:[%s2002_s30 + $0x130] sm:$0xff] %v952_v40  ;;  %955 = vst [vmem:[%s2002_s30 + $0x138] sm:$0xff] %v954_v41 }
 0x19a   : >> { %957 = vst [vmem:[%s2002_s30 + $0x140] sm:$0xff] %v956_v42  ;;  %s2811_s30 = smov %s964_s11 }
 0x19b PF: > { %s2609_s29 = sand.u32 31, %s817_s15   ;;  %s1493_s23 = sshll.u32 %s2487_s6, 12 }
 0x19c   : > { %s969_s24 = sshra.s32 %s1493_s23, 4  ;;  %p1470_p9 = scmp.le.s32.totalorder %s2609_s29, 0 }
 0x19d   : > { %s2613_s25 = scalar_lea.vmem %s2457_s26, %s969_s24 [#allocation3]   ;;  %s973_s12 = scalar_lea.vmem %s2474_s9, %s969_s24  }
 0x19e   : > { %1361 = sbr.rel (%p1470_p9) target bundleno = 427 (0x1ab), region = 284  ;;  %s2016_s17 = smov (!%p1470_p9), %s973_s12  }
 0x19f   : > { %s2020_s22 = smov (!%p1470_p9), %s2613_s25   ;;  %s2024_s27 = smov (!%p1470_p9), 0  }
 0x1a0   : > { %s2028_s8 = smov (!%p1470_p9), 0  }
 0x1a3 LB: >> { %v985_v43 = vld [vmem:[%s2022_s22] sm:$0xff]  ;;  %s989_s10 = sadd.s32 1, %s2026_s27  ;;  %s979_s8 = sadd.s32 1, %s2030_s8   ;;  %s2030_s8 = sphi %s2028_s8, %s979_s8   ;;  %s2026_s27 = sphi %s2024_s27, %s2025_s27   ;;  %s2022_s22 = sphi %s2020_s22, %s994_s22   ;;  %s2018_s17 = sphi %s2016_s17, %s995_s17  }
 0x1a4   : >> { %v987_v44 = vld [vmem:[%s2022_s22 + $0x20] sm:$0xff]  ;;  %986 = vst [vmem:[%s2018_s17] sm:$0xff] %v985_v43  ;;  %p990_p10 = scmp.ge.s32.totalorder %s989_s10, %s2609_s29  ;;  %p978_p11 = scmp.ge.s32.totalorder %s979_s8, %s2609_s29 }
 0x1a5   : >> { %988 = vst [vmem:[%s2018_s17 + $0x48] sm:$0xff] %v987_v44 }
 0x1a6   : >> { %s2837_s10 = smov (%p990_p10, %s989_s10), 0  ;;  %981 = sbr.rel (!%p978_p11) target bundleno = 419 (0x1a3), region = 290 }
 0x1a7   : >> { %s1471_s15 = sshll.u32 %s2837_s10, 3  ;;  %s2025_s27 = smov %s2837_s10  }
 0x1a8   : >> { %s994_s22 = scalar_lea.vmem %s2613_s25, %s1471_s15 [#allocation3]   ;;  %s995_s17 = scalar_lea.vmem %s973_s12, %s1471_s15  }
 0x1ab PF: > { %998 = sbr.rel (%p813_p5) target bundleno = 481 (0x1e1), region = 143  ;;  %s1000_s6 = ssub.s32 (!%p813_p5), %s2476_s5, %s2480_s20 }
 0x1ac   : > { %s1004_s30 = sshrl.u32 (!%p813_p5), %s2476_s5, 3  ;;  %s2627_s18 = scalar_lea.vmem (!%p813_p5), %s2457_s26, %s1000_s6 [#allocation3] }
 0x1ad   : > { %s2630_s28 = scalar_lea.vmem (!%p813_p5), %s2474_s9, %s1000_s6  ;;  %s2634_s4 = sshrl.u32 (!%p813_p5), %s1004_s30, 5 }
 0x1ae   : > { %p1473_p12 = scmp.le.s32.totalorder (!%p813_p5), %s2634_s4, 0 }
 0x1b0   : > { %1375 = sbr.rel (%p1473_p12) target bundleno = 459 (0x1cb), region = 295  ;;  %s2814_s14 = smov (!%p1473_p12), %s2474_s9 }
 0x1b1   : > { %s2815_s21 = smov (!%p1473_p12), %s2457_s26  ;;  %s2643_s7 = smov (!%p1473_p12), 0  }
 0x1b2   : > { %s2645_s11 = smov (!%p1473_p12), 0  }
 0x1b5 LB: >> { %v1017_v45 = vld [vmem:[%s2038_s21] sm:$0xff]  ;;  %v1019_v46 = vld [vmem:[%s2038_s21 + $0x8] sm:$0xff]  ;;  %v1021_v47 = vld [vmem:[%s2038_s21 + $0x10] sm:$0xff]  ;;  %s1145_s29 = sadd.s32 1, %s2042_s7  ;;  %s1011_s11 = sadd.s32 1, %s2046_s11   ;;  %s2046_s11 = sphi %s2645_s11, %s1011_s11   ;;  %s2042_s7 = sphi %s2643_s7, %s2818_s7   ;;  %s2038_s21 = sphi %s2815_s21, %s2817_s21   ;;  %s2034_s14 = sphi %s2814_s14, %s2816_s14  }
 0x1b6   : >> { %1018 = vst [vmem:[%s2034_s14] sm:$0xff] %v1017_v45  ;;  %1020 = vst [vmem:[%s2034_s14 + $0x8] sm:$0xff] %v1019_v46  ;;  %v1023_v48 = vld [vmem:[%s2038_s21 + $0x18] sm:$0xff]  ;;  %v1025_v49 = vld [vmem:[%s2038_s21 + $0x20] sm:$0xff]  ;;  %p1146_p13 = scmp.ge.s32.totalorder %s1145_s29, %s2634_s4  ;;  %p1010_p0 = scmp.ge.s32.totalorder %s1011_s11, %s2634_s4 }
 0x1b7   : >> { %1022 = vst [vmem:[%s2034_s14 + $0x10] sm:$0xff] %v1021_v47  ;;  %v1027_v50 = vld [vmem:[%s2038_s21 + $0x28] sm:$0xff]  ;;  %1024 = vst [vmem:[%s2034_s14 + $0x18] sm:$0xff] %v1023_v48  ;;  %v1029_v51 = vld [vmem:[%s2038_s21 + $0x30] sm:$0xff] }
 0x1b8   : >> { %1026 = vst [vmem:[%s2034_s14 + $0x20] sm:$0xff] %v1025_v49  ;;  %1028 = vst [vmem:[%s2034_s14 + $0x28] sm:$0xff] %v1027_v50  ;;  %v1031_v52 = vld [vmem:[%s2038_s21 + $0x38] sm:$0xff]  ;;  %v1033_v53 = vld [vmem:[%s2038_s21 + $0x40] sm:$0xff]  ;;  %s2839_s29 = smov (%p1146_p13, %s1145_s29), 0 }
 0x1b9   : >> { %1082 = vst [vmem:[%s2034_s14 + $0x48] sm:$0xff] %v1025_v49  ;;  %1084 = vst [vmem:[%s2034_s14 + $0x50] sm:$0xff] %v1027_v50  ;;  %v1091_v54 = vld [vmem:[%s2038_s21 + $0x48] sm:$0xff]  ;;  %v1093_v55 = vld [vmem:[%s2038_s21 + $0x50] sm:$0xff]  ;;  %s1474_s23 = sshll.u32 %s2839_s29, 8  ;;  %s2818_s7 = smov %s2839_s29 }
 0x1ba   : >> { %1030 = vst [vmem:[%s2034_s14 + $0x30] sm:$0xff] %v1029_v51  ;;  %1032 = vst [vmem:[%s2034_s14 + $0x38] sm:$0xff] %v1031_v52  ;;  %v1095_v56 = vld [vmem:[%s2038_s21 + $0x58] sm:$0xff]  ;;  %v1097_v57 = vld [vmem:[%s2038_s21 + $0x60] sm:$0xff]  ;;  %s1150_s24 = scalar_lea.vmem %s2457_s26, %s1474_s23 [#allocation3]   ;;  %s1151_s25 = scalar_lea.vmem %s2474_s9, %s1474_s23  }
 0x1bb   : >> { %1034 = vst [vmem:[%s2034_s14 + $0x40] sm:$0xff] %v1033_v53  ;;  %1086 = vst [vmem:[%s2034_s14 + $0x58] sm:$0xff] %v1029_v51  ;;  %v1099_v58 = vld [vmem:[%s2038_s21 + $0x68] sm:$0xff]  ;;  %v1101_v59 = vld [vmem:[%s2038_s21 + $0x70] sm:$0xff] }
 0x1bc   : >> { %1088 = vst [vmem:[%s2034_s14 + $0x60] sm:$0xff] %v1031_v52  ;;  %1090 = vst [vmem:[%s2034_s14 + $0x68] sm:$0xff] %v1033_v53  ;;  %v1103_v60 = vld [vmem:[%s2038_s21 + $0x78] sm:$0xff]  ;;  %v1105_v61 = vld [vmem:[%s2038_s21 + $0x80] sm:$0xff] }
 0x1bd   : >> { %1092 = vst [vmem:[%s2034_s14 + $0x70] sm:$0xff] %v1091_v54  ;;  %1094 = vst [vmem:[%s2034_s14 + $0x78] sm:$0xff] %v1093_v55  ;;  %v1107_v62 = vld [vmem:[%s2038_s21 + $0x88] sm:$0xff]  ;;  %v1109_v63 = vld [vmem:[%s2038_s21 + $0x90] sm:$0xff] }
 0x1be   : >> { %1096 = vst [vmem:[%s2034_s14 + $0x80] sm:$0xff] %v1095_v56  ;;  %1098 = vst [vmem:[%s2034_s14 + $0x88] sm:$0xff] %v1097_v57  ;;  %v1111_v0 = vld [vmem:[%s2038_s21 + $0x98] sm:$0xff]  ;;  %v1113_v1 = vld [vmem:[%s2038_s21 + $0xa0] sm:$0xff] }
 0x1bf   : >> { %1100 = vst [vmem:[%s2034_s14 + $0x90] sm:$0xff] %v1099_v58  ;;  %1102 = vst [vmem:[%s2034_s14 + $0x98] sm:$0xff] %v1101_v59  ;;  %v1115_v2 = vld [vmem:[%s2038_s21 + $0xa8] sm:$0xff]  ;;  %v1117_v3 = vld [vmem:[%s2038_s21 + $0xb0] sm:$0xff] }
 0x1c0   : >> { %1104 = vst [vmem:[%s2034_s14 + $0xa0] sm:$0xff] %v1103_v60  ;;  %1106 = vst [vmem:[%s2034_s14 + $0xa8] sm:$0xff] %v1105_v61  ;;  %v1119_v4 = vld [vmem:[%s2038_s21 + $0xb8] sm:$0xff]  ;;  %v1121_v5 = vld [vmem:[%s2038_s21 + $0xc0] sm:$0xff] }
 0x1c1   : >> { %1108 = vst [vmem:[%s2034_s14 + $0xb0] sm:$0xff] %v1107_v62  ;;  %1110 = vst [vmem:[%s2034_s14 + $0xb8] sm:$0xff] %v1109_v63  ;;  %v1123_v6 = vld [vmem:[%s2038_s21 + $0xc8] sm:$0xff]  ;;  %v1125_v7 = vld [vmem:[%s2038_s21 + $0xd0] sm:$0xff] }
 0x1c2   : >> { %1112 = vst [vmem:[%s2034_s14 + $0xc0] sm:$0xff] %v1111_v0  ;;  %1114 = vst [vmem:[%s2034_s14 + $0xc8] sm:$0xff] %v1113_v1  ;;  %v1127_v8 = vld [vmem:[%s2038_s21 + $0xd8] sm:$0xff]  ;;  %v1129_v9 = vld [vmem:[%s2038_s21 + $0xe0] sm:$0xff] }
 0x1c3   : >> { %1116 = vst [vmem:[%s2034_s14 + $0xd0] sm:$0xff] %v1115_v2  ;;  %1118 = vst [vmem:[%s2034_s14 + $0xd8] sm:$0xff] %v1117_v3  ;;  %v1131_v10 = vld [vmem:[%s2038_s21 + $0xe8] sm:$0xff]  ;;  %v1133_v11 = vld [vmem:[%s2038_s21 + $0xf0] sm:$0xff] }
 0x1c4   : >> { %1120 = vst [vmem:[%s2034_s14 + $0xe0] sm:$0xff] %v1119_v4  ;;  %1122 = vst [vmem:[%s2034_s14 + $0xe8] sm:$0xff] %v1121_v5  ;;  %v1135_v12 = vld [vmem:[%s2038_s21 + $0xf8] sm:$0xff]  ;;  %v1137_v13 = vld [vmem:[%s2038_s21 + $0x100] sm:$0xff] }
 0x1c5   : >> { %1124 = vst [vmem:[%s2034_s14 + $0xf0] sm:$0xff] %v1123_v6  ;;  %1126 = vst [vmem:[%s2034_s14 + $0xf8] sm:$0xff] %v1125_v7  ;;  %v1139_v14 = vld [vmem:[%s2038_s21 + $0x108] sm:$0xff]  ;;  %v1141_v15 = vld [vmem:[%s2038_s21 + $0x110] sm:$0xff] }
 0x1c6   : >> { %1128 = vst [vmem:[%s2034_s14 + $0x100] sm:$0xff] %v1127_v8  ;;  %1130 = vst [vmem:[%s2034_s14 + $0x108] sm:$0xff] %v1129_v9  ;;  %v1143_v16 = vld [vmem:[%s2038_s21 + $0x118] sm:$0xff]  ;;  %s2817_s21 = smov %s1150_s24  ;;  %1013 = sbr.rel (!%p1010_p0) target bundleno = 437 (0x1b5), region = 301 }
 0x1c7   : >> { %1132 = vst [vmem:[%s2034_s14 + $0x110] sm:$0xff] %v1131_v10  ;;  %1134 = vst [vmem:[%s2034_s14 + $0x118] sm:$0xff] %v1133_v11 }
 0x1c8   : >> { %1136 = vst [vmem:[%s2034_s14 + $0x120] sm:$0xff] %v1135_v12  ;;  %1138 = vst [vmem:[%s2034_s14 + $0x128] sm:$0xff] %v1137_v13 }
 0x1c9   : >> { %1140 = vst [vmem:[%s2034_s14 + $0x130] sm:$0xff] %v1139_v14  ;;  %1142 = vst [vmem:[%s2034_s14 + $0x138] sm:$0xff] %v1141_v15 }
 0x1ca   : >> { %1144 = vst [vmem:[%s2034_s14 + $0x140] sm:$0xff] %v1143_v16  ;;  %s2816_s14 = smov %s1151_s25 }
 0x1cb PF: > { %s2756_s12 = sand.u32 31, %s1004_s30   ;;  %s1495_s17 = sshll.u32 %s2634_s4, 12 }
 0x1cc   : > { %s1156_s22 = sshra.s32 %s1495_s17, 4  ;;  %p1479_p1 = scmp.le.s32.totalorder %s2756_s12, 0 }
 0x1cd   : > { %s2760_s27 = scalar_lea.vmem %s2457_s26, %s1156_s22 [#allocation3]   ;;  %s1160_s8 = scalar_lea.vmem %s2474_s9, %s1156_s22  }
 0x1ce   : > { %1389 = sbr.rel (%p1479_p1) target bundleno = 475 (0x1db), region = 306  ;;  %s2048_s10 = smov (!%p1479_p1), %s1160_s8  }
 0x1cf   : > { %s2052_s15 = smov (!%p1479_p1), %s2760_s27   ;;  %s2056_s6 = smov (!%p1479_p1), 0  }
 0x1d0   : > { %s2060_s14 = smov (!%p1479_p1), 0  }
 0x1d3 LB: >> { %v1172_v17 = vld [vmem:[%s2054_s15] sm:$0xff]  ;;  %s1176_s30 = sadd.s32 1, %s2058_s6  ;;  %s1166_s14 = sadd.s32 1, %s2062_s14   ;;  %s2062_s14 = sphi %s2060_s14, %s1166_s14   ;;  %s2058_s6 = sphi %s2056_s6, %s2057_s6   ;;  %s2054_s15 = sphi %s2052_s15, %s1181_s15   ;;  %s2050_s10 = sphi %s2048_s10, %s1182_s10  }
 0x1d4   : >> { %v1174_v18 = vld [vmem:[%s2054_s15 + $0x20] sm:$0xff]  ;;  %1173 = vst [vmem:[%s2050_s10] sm:$0xff] %v1172_v17  ;;  %p1177_p2 = scmp.ge.s32.totalorder %s1176_s30, %s2756_s12  ;;  %p1165_p3 = scmp.ge.s32.totalorder %s1166_s14, %s2756_s12 }
 0x1d5   : >> { %1175 = vst [vmem:[%s2050_s10 + $0x48] sm:$0xff] %v1174_v18 }
 0x1d6   : >> { %s2841_s30 = smov (%p1177_p2, %s1176_s30), 0  ;;  %1168 = sbr.rel (!%p1165_p3) target bundleno = 467 (0x1d3), region = 312 }
 0x1d7   : >> { %s1480_s4 = sshll.u32 %s2841_s30, 3  ;;  %s2057_s6 = smov %s2841_s30  }
 0x1d8   : >> { %s1181_s15 = scalar_lea.vmem %s2760_s27, %s1480_s4 [#allocation3]   ;;  %s1182_s10 = scalar_lea.vmem %s1160_s8, %s1480_s4  }
 0x1db PF: > { %s2068_s21 = smov 1  }
 0x1dc   : > { %s1183_s7 = sshll.u32 %s2068_s21, %s2480_s20 }
 0x1dd   : > { %s1482_s11 = sadd.s32 4294967295, %s1183_s7 }
 0x1de   : > { %v1193_v19 = vld [vmem:[%s2627_s18] sm:%s1482_s11] }
 0x1df   : > { %v1195_v20 = vld [vmem:[%s2627_s18 + $0x20] sm:%s1482_s11]  ;;  %1194 = vst [vmem:[%s2630_s28] sm:%s1482_s11] %v1193_v19 }
 0x1e0   : > { %1196 = vst [vmem:[%s2630_s28 + $0x48] sm:%s1482_s11] %v1195_v20 }
 0x1e1 PF: > { %p1483_p5 = scmp.ge.u32.totalorder %s2476_s5, 8 }
 0x1e2   : > { %s2069_s29 = smov (!%p1483_p5), 1  }
 0x1e3   : > { %797 = sbr.rel (%p1483_p5) target bundleno = 491 (0x1eb), region = 114  ;;  %s798_s23 = sshll.u32 (!%p1483_p5), %s2069_s29, %s2476_s5 }
 0x1e4   : > { %s1484_s24 = sadd.s32 (!%p1483_p5), 4294967295, %s798_s23 }
 0x1e8   : > { %v808_v21 = vld [vmem:[%s2457_s26] sm:%s1484_s24] }
 0x1e9   : > { %v810_v22 = vld [vmem:[%s2457_s26 + $0x20] sm:%s1484_s24]  ;;  %809 = vst [vmem:[%s2474_s9] sm:%s1484_s24] %v808_v21 }
 0x1ea   : > { %811 = vst [vmem:[%s2474_s9 + $0x48] sm:%s1484_s24] %v810_v22 }
 0x1eb PF: > { %p10_p4 = scmp.ge.s32.totalorder %s2109_s16, 5   ;;  %s2819_s12 = smov %s1930_s13 }
 0x1ec   : > { %s2820_s13 = smov %s2119_s19  ;;  %s2821_s14 = smov %s2109_s16 }
 0x1ed   :  { %12 = sbr.rel (!%p10_p4) target bundleno = 2 (0x2), region = 323 }

// kernel: net_forward.12
= control target key start
LH: loop header
LB: loop body
LE: loop exit
PB: predicated region body
PF: predicated region fallthrough
CT: control target
= control target key end

     0   :  { %vm98_vm0 = vcmask 1044480   ;;  %v211_v3 = vmov 0   ;;  %vm91_vm1 = vcmask 998400   ;;  %s366_s1 = inlined_call_operand.vmem [shape: f32[250,128], index: 1, kind: input, shape index: {}]   ;;  %s367_s0 = inlined_call_operand.vmem [shape: f32[20,250], index: 0, kind: input, shape index: {}]   ;;  %s368_s2 = inlined_call_operand.vmem [shape: f32[20,1], index: 2, kind: input, shape index: {}]   ;;  %s369_s3 = inlined_call_operand.vmem [shape: f32[20,128], index: 3, kind: output, shape index: {}]  }
   0x1   :  { %v55_v0 = vld [vmem:[%s366_s1 + $0xf0] sm:$0xff]  ;;  %v56_v1 = vld [vmem:[%s366_s1 + $0xf8] sm:$0x3]  ;;  %209 = vset.pattern.permute.xlu0 %v211_v3  ;;  %210 = vset.pattern.permute.xlu1 %v211_v3  ;;  %v53_v6 = vld [vmem:[%s366_s1 + $0xe0] sm:$0xff] }
   0x2   :  { %v39_v2 = vld [vmem:[%s366_s1 + $0x70] sm:$0xff]  ;;  %v72_v4 = vpack.c.bf16 %v56_v1, %v55_v0  ;;  %v40_v5 = vld [vmem:[%s366_s1 + $0x78] sm:$0xff]  ;;  %v54_v7 = vld [vmem:[%s366_s1 + $0xe8] sm:$0xff] }
   0x3   :  { %v64_v8 = vpack.c.bf16 %v40_v5, %v39_v2  ;;  %v71_v9 = vpack.c.bf16 %v54_v7, %v53_v6  ;;  %v37_v10 = vld [vmem:[%s366_s1 + $0x60] sm:$0xff]  ;;  %v38_v11 = vld [vmem:[%s366_s1 + $0x68] sm:$0xff]  ;;  %v51_v12 = vld [vmem:[%s366_s1 + $0xd0] sm:$0xff] }
   0x4   :  { %206 = vmatprep.subr.msk.bf16.mxu0 %vm98_vm0, %v72_v4  ;;  %207 = vmatprep.subr.msk.bf16.mxu1 %vm98_vm0, %v72_v4  ;;  %v52_v13 = vld [vmem:[%s366_s1 + $0xd8] sm:$0xff]  ;;  %v63_v14 = vpack.c.bf16 %v38_v11, %v37_v10  ;;  %v35_v16 = vld [vmem:[%s366_s1 + $0x50] sm:$0xff]  ;;  %v49_v18 = vld [vmem:[%s366_s1 + $0xc0] sm:$0xff] }
   0x5   :  { %163 = vmatpush3.bf16.msra.mxu0 %v64_v8  ;;  %198 = vmatpush3.bf16.msra.mxu1 %v64_v8  ;;  %v70_v15 = vpack.c.bf16 %v52_v13, %v51_v12  ;;  %v36_v17 = vld [vmem:[%s366_s1 + $0x58] sm:$0xff]  ;;  %v50_v19 = vld [vmem:[%s366_s1 + $0xc8] sm:$0xff]  ;;  %v33_v22 = vld [vmem:[%s366_s1 + $0x40] sm:$0xff] }
   0x6   :  { %164 = vmatprep.subr.bf16.mxu0 %v71_v9  ;;  %191 = vmatprep.subr.bf16.mxu1 %v71_v9  ;;  %v62_v20 = vpack.c.bf16 %v36_v17, %v35_v16  ;;  %v69_v21 = vpack.c.bf16 %v50_v19, %v49_v18  ;;  %v34_v23 = vld [vmem:[%s366_s1 + $0x48] sm:$0xff]  ;;  %v47_v24 = vld [vmem:[%s366_s1 + $0xb0] sm:$0xff]  ;;  %v48_v25 = vld [vmem:[%s366_s1 + $0xb8] sm:$0xff] }
   0x7   :  { %v16_v26 = vld [vmem:[%s367_s0 + $0x8] sm:$0xff]  ;;  %v18_v27 = vld [vmem:[%s367_s0 + $0x18] sm:$0xff]  ;;  %v61_v29 = vpack.c.bf16 %v34_v23, %v33_v22  ;;  %v73_v32 = vld [vmem:[%s368_s2] sm:$0xff]  ;;  %v68_v33 = vpack.c.bf16 %v48_v25, %v47_v24 }
   0x8   :  { %v20_v28 = vld [vmem:[%s367_s0 + $0x28] sm:$0xf]  ;;  %v22_v30 = vpack.c.bf16 %v18_v27, %v16_v26  ;;  %v31_v34 = vld [vmem:[%s366_s1 + $0x30] sm:$0xff]  ;;  %v32_v35 = vld [vmem:[%s366_s1 + $0x38] sm:$0xff]  ;;  %78 = vperm.xlu0 %209, %v73_v32  }
   0x9   :  { %165 = vmatpush3.bf16.msra.mxu0 %v63_v14  ;;  %199 = vmatpush3.bf16.msra.mxu1 %v63_v14  ;;  %v24_v31 = vpack.c.bf16 %v20_v28, %v20_v28  ;;  %v75_v36 = vld [vmem:[%s368_s2 + $0x10] sm:$0xf]  ;;  %v45_v37 = vld [vmem:[%s366_s1 + $0xa0] sm:$0xff]  ;;  %v46_v38 = vld [vmem:[%s366_s1 + $0xa8] sm:$0xff]  ;;  %v60_v39 = vpack.c.bf16 %v32_v35, %v31_v34 }
   0xa   :  { %166 = vmatprep.subr.bf16.mxu0 %v70_v15  ;;  %192 = vmatprep.subr.bf16.mxu1 %v70_v15  ;;  %v74_v40 = vld [vmem:[%s368_s2 + $0x8] sm:$0xff]  ;;  %v67_v41 = vpack.c.bf16 %v46_v38, %v45_v37  ;;  %v29_v42 = vld [vmem:[%s366_s1 + $0x20] sm:$0xff]  ;;  %v43_v44 = vld [vmem:[%s366_s1 + $0x90] sm:$0xff] }
   0xb   :  { %160 = vmatprep.mubr.msk.bf16.mxu0 %vm91_vm1, %v22_v30  ;;  %161 = vmatprep.mubr.msk.bf16.mxu1 %vm91_vm1, %v24_v31  ;;  %v30_v43 = vld [vmem:[%s366_s1 + $0x28] sm:$0xff]  ;;  %v44_v45 = vld [vmem:[%s366_s1 + $0x98] sm:$0xff]  ;;  %v27_v48 = vld [vmem:[%s366_s1 + $0x10] sm:$0xff] }
   0xc   :  { %88 = vperm.xlu1 %210, %v75_v36   ;;  %83 = vperm.xlu0 %209, %v74_v40   ;;  %v59_v46 = vpack.c.bf16 %v30_v43, %v29_v42  ;;  %v66_v47 = vpack.c.bf16 %v44_v45, %v43_v44  ;;  %v28_v49 = vld [vmem:[%s366_s1 + $0x18] sm:$0xff]  ;;  %v41_v50 = vld [vmem:[%s366_s1 + $0x80] sm:$0xff]  ;;  %v42_v51 = vld [vmem:[%s366_s1 + $0x88] sm:$0xff] }
   0xd   :  { %167 = vmatpush3.bf16.msra.mxu0 %v62_v20  ;;  %200 = vmatpush3.bf16.msra.mxu1 %v62_v20  ;;  %v58_v52 = vpack.c.bf16 %v28_v49, %v27_v48  ;;  %v65_v53 = vpack.c.bf16 %v42_v51, %v41_v50  ;;  %v25_v54 = vld [vmem:[%s366_s1] sm:$0xff]  ;;  %v26_v55 = vld [vmem:[%s366_s1 + $0x8] sm:$0xff]  ;;  %v17_v58 = vld [vmem:[%s367_s0 + $0x10] sm:$0xff] }
   0xe   :  { %168 = vmatprep.subr.bf16.mxu0 %v69_v21  ;;  %193 = vmatprep.subr.bf16.mxu1 %v69_v21  ;;  %v57_v56 = vpack.c.bf16 %v26_v55, %v25_v54  ;;  %v15_v57 = vld [vmem:[%s367_s0] sm:$0xff] }
   0xf   :  { %v19_v59 = vld [vmem:[%s367_s0 + $0x20] sm:$0xf]  ;;  %v21_v60 = vpack.c.bf16 %v17_v58, %v15_v57 }
  0x10   :  { %v23_v61 = vpack.c.bf16 %v19_v59, %v19_v59 }
  0x11   :  { %169 = vmatpush3.bf16.msra.mxu0 %v61_v29  ;;  %201 = vmatpush3.bf16.msra.mxu1 %v61_v29 }
  0x12   :  { %170 = vmatprep.subr.bf16.mxu0 %v68_v33  ;;  %194 = vmatprep.subr.bf16.mxu1 %v68_v33 }
  0x15   :  { %171 = vmatpush3.bf16.msra.mxu0 %v60_v39  ;;  %202 = vmatpush3.bf16.msra.mxu1 %v60_v39 }
  0x16   :  { %172 = vmatprep.subr.bf16.mxu0 %v67_v41  ;;  %195 = vmatprep.subr.bf16.mxu1 %v67_v41 }
  0x19   :  { %173 = vmatpush3.bf16.msra.mxu0 %v59_v46  ;;  %203 = vmatpush3.bf16.msra.mxu1 %v59_v46 }
  0x1a   :  { %174 = vmatprep.subr.bf16.mxu0 %v66_v47  ;;  %196 = vmatprep.subr.bf16.mxu1 %v66_v47 }
  0x1d   :  { %175 = vmatpush3.bf16.msra.mxu0 %v58_v52  ;;  %204 = vmatpush3.bf16.msra.mxu1 %v58_v52 }
  0x1e   :  { %176 = vmatprep.subr.bf16.mxu0 %v65_v53  ;;  %197 = vmatprep.subr.bf16.mxu1 %v65_v53 }
  0x21   :  { %177 = vmatpush3.bf16.msra.mxu0 %v57_v56  ;;  %205 = vmatpush3.bf16.msra.mxu1 %v57_v56 }
  0x24   :  { %135 = vmatmul.mubr.bf16.vlgmr.msra.gmra.mxu0 %v21_v60  ;;  %143 = vmatmul.mubr.bf16.vlgmr.msra.gmra.mxu1 %v23_v61 }
  0x83   :  { %v79_v0 = vpop.permute.xlu0 %78 }
  0x87   :  { %v89_v1 = vpop.permute.xlu1 %88  ;;  %v84_v15 = vpop.permute.xlu0 %83 }
  0xe4   :  { %v178_v62 = vpop.f32.mrf.mxu0  ;;  %v184_v63 = vpop.f32.mrf.mxu1 }
  0xe6   :  { %v179_v2 = vpop.f32.mrf.mxu0  ;;  %v185_v3 = vpop.f32.mrf.mxu1 }
  0xe7   :  { %v180_v4 = vadd.f32 %v179_v2, %v178_v62  ;;  %v186_v5 = vadd.f32 %v185_v3, %v184_v63 }
  0xe8   :  { %v181_v6 = vpop.f32.mrf.mxu0  ;;  %v187_v7 = vpop.f32.mrf.mxu1 }
  0xe9   :  { %v137_v8 = vadd.f32 %v180_v4, %v79_v0  ;;  %v145_v9 = vadd.f32 %v186_v5, %v89_v1 }
  0xea   :  { %v182_v10 = vpop.f32.mrf.mxu0  ;;  %v188_v11 = vpop.f32.mrf.mxu1 }
  0xeb   :  { %v150_v12 = vmax.f32 %v137_v8, 0.0  ;;  %v152_v13 = vmax.f32 %v145_v9, 0.0  ;;  %v183_v14 = vadd.f32 %v182_v10, %v181_v6 }
  0xed   :  { %153 = vst [vmem:[%s369_s3] sm:$0xff] %v150_v12  ;;  %155 = vst [vmem:[%s369_s3 + $0x10] sm:$0xf] %v152_v13  ;;  %v140_v16 = vadd.f32 %v183_v14, %v84_v15 }
  0xef   :  { %v151_v17 = vmax.f32 %v140_v16, 0.0 }
  0xf1   :  { %154 = vst [vmem:[%s369_s3 + $0x8] sm:$0xff] %v151_v17 }

// kernel: net_forward.13
= control target key start
LH: loop header
LB: loop body
LE: loop exit
PB: predicated region body
PF: predicated region fallthrough
CT: control target
= control target key end

     0   :  { %v476_v4 = vmov 0.0   ;;  %v477_v5 = vmov 1983009808   ;;  %v74_v7 = vlaneseq  ;;  %vm478_vm0 = vmmov 0   ;;  %s685_s0 = inlined_call_operand.vmem [shape: f32[2,320], index: 0, kind: input, shape index: {}]   ;;  %s686_s1 = inlined_call_operand.vmem [shape: f32[320,50], index: 1, kind: input, shape index: {}]   ;;  %s687_s2 = inlined_call_operand.vmem [shape: f32[1,50], index: 2, kind: input, shape index: {}]   ;;  %s688_s3 = inlined_call_operand.vmem [shape: f32[50,10], index: 3, kind: input, shape index: {}]   ;;  %s689_s4 = inlined_call_operand.vmem [shape: f32[1,10], index: 4, kind: input, shape index: {}]   ;;  %s690_s5 = inlined_call_operand.hbm [shape: f32[2,10], index: 5, kind: output, shape index: {}]  }
   0x1   :  { %v53_v0 = vld [vmem:[%s686_s1 + $0xf8] sm:$0xff]  ;;  %v52_v2 = vld [vmem:[%s686_s1 + $0xf0] sm:$0xff]  ;;  %409 = vmatprep.subr.mxu1 %v476_v4  ;;  %v72_v6 = vunpack.c.l.s4 %v477_v5  ;;  %v51_v8 = vld [vmem:[%s686_s1 + $0xe8] sm:$0xff]  ;;  %425 = vmatprep.mubr.msk.f32.mxu1 %vm478_vm0, %v476_v4 }
   0x2   :  { %v37_v1 = vld [vmem:[%s686_s1 + $0x78] sm:$0xff]  ;;  %357 = vmatprep.subr.mxu0 %v53_v0  ;;  %v36_v3 = vld [vmem:[%s686_s1 + $0x70] sm:$0xff]  ;;  %v35_v9 = vld [vmem:[%s686_s1 + $0x68] sm:$0xff]  ;;  %v75_v13 = vshrl.u32 %v74_v7, 7 }
   0x3   :  { %358 = vmatpush3.msra.mxu0 %v37_v1  ;;  %v50_v10 = vld [vmem:[%s686_s1 + $0xe0] sm:$0xff]  ;;  %v73_v12 = vunpack.c.0.s8 %v72_v6  ;;  %v49_v14 = vld [vmem:[%s686_s1 + $0xd8] sm:$0xff]  ;;  %v48_v17 = vld [vmem:[%s686_s1 + $0xd0] sm:$0xff] }
   0x4   :  { %359 = vmatprep.subr.mxu0 %v52_v2  ;;  %v34_v11 = vld [vmem:[%s686_s1 + $0x60] sm:$0xff]  ;;  %v33_v15 = vld [vmem:[%s686_s1 + $0x58] sm:$0xff]  ;;  %v60_v18 = vld [vmem:[%s686_s1 + $0x130] sm:$0xff] }
   0x5   :  { %360 = vmatpush3.msra.mxu0 %v36_v3  ;;  %v61_v16 = vld [vmem:[%s686_s1 + $0x138] sm:$0xff]  ;;  %v32_v19 = vld [vmem:[%s686_s1 + $0x50] sm:$0xff]  ;;  %v59_v20 = vld [vmem:[%s686_s1 + $0x128] sm:$0xff]  ;;  %v76_v21 = vsub.s32 %v73_v12, %v75_v13 }
   0x6   :  { %361 = vmatprep.subr.mxu0 %v51_v8  ;;  %410 = vmatpush3.msra.mxu1 %v61_v16  ;;  %v47_v22 = vld [vmem:[%s686_s1 + $0xc8] sm:$0xff]  ;;  %v58_v24 = vld [vmem:[%s686_s1 + $0x120] sm:$0xff]  ;;  %v57_v28 = vld [vmem:[%s686_s1 + $0x118] sm:$0xff] }
   0x7   :  { %362 = vmatpush3.msra.mxu0 %v35_v9  ;;  %411 = vmatprep.subr.mxu1 %v476_v4  ;;  %v31_v23 = vld [vmem:[%s686_s1 + $0x48] sm:$0xff]  ;;  %v46_v25 = vld [vmem:[%s686_s1 + $0xc0] sm:$0xff]  ;;  %v45_v30 = vld [vmem:[%s686_s1 + $0xb8] sm:$0xff] }
   0x8   :  { %363 = vmatprep.subr.mxu0 %v50_v10  ;;  %412 = vmatpush3.msra.mxu1 %v60_v18  ;;  %v21_v26 = vld [vmem:[%s685_s0] sm:$0x3f] }
   0x9   :  { %364 = vmatpush3.msra.mxu0 %v34_v11  ;;  %413 = vmatprep.subr.mxu1 %v476_v4  ;;  %v30_v27 = vld [vmem:[%s686_s1 + $0x40] sm:$0xff]  ;;  %v77_v29 = vrot.slane %v21_v26, %v76_v21 }
   0xa   :  { %365 = vmatprep.subr.mxu0 %v49_v14  ;;  %414 = vmatpush3.msra.mxu1 %v59_v20 }
   0xb   :  { %366 = vmatpush3.msra.mxu0 %v33_v15  ;;  %415 = vmatprep.subr.mxu1 %v476_v4 }
   0xc   :  { %367 = vmatprep.subr.mxu0 %v48_v17  ;;  %416 = vmatpush3.msra.mxu1 %v58_v24 }
   0xd   :  { %368 = vmatpush3.msra.mxu0 %v32_v19 }
   0xe   :  { %369 = vmatprep.subr.mxu0 %v47_v22 }
   0xf   :  { %370 = vmatpush3.msra.mxu0 %v31_v23 }
  0x10   :  { %10 = vsyncpa [#allocation3], 0  ;;  %371 = vmatprep.subr.mxu0 %v46_v25  ;;  %v29_v31 = vld [vmem:[%s686_s1 + $0x38] sm:$0xff]  ;;  %417 = vmatprep.subr.mxu1 %v476_v4  ;;  %v85_v32 = vcombine.high %v77_v29, %v77_v29  ;;  %v44_v33 = vld [vmem:[%s686_s1 + $0xb0] sm:$0xff]  ;;  %v70_v34 = vcombine.high %v21_v26, %v21_v26  ;;  %vm88_vm1 = vcmask 523264   ;;  %vm250_vm2 = vcmask 1041408  }
  0x11   :  { %372 = vmatpush3.msra.mxu0 %v30_v27  ;;  %418 = vmatpush3.msra.mxu1 %v57_v28  ;;  %v56_v35 = vld [vmem:[%s686_s1 + $0x110] sm:$0xff]  ;;  %v43_v37 = vld [vmem:[%s686_s1 + $0xa8] sm:$0xff]  ;;  %v42_v40 = vld [vmem:[%s686_s1 + $0xa0] sm:$0xff]  ;;  %vm246_vm3 = vcmask 408576   ;;  %vm324_vm4 = vcmask 74752  }
  0x12   :  { %373 = vmatprep.subr.mxu0 %v45_v30  ;;  %v28_v36 = vld [vmem:[%s686_s1 + $0x30] sm:$0xff]  ;;  %419 = vmatprep.subr.mxu1 %v476_v4  ;;  %v55_v38 = vld [vmem:[%s686_s1 + $0x108] sm:$0xff]  ;;  %v84_v41 = vrot.slane %v70_v34, %v76_v21  ;;  %v54_v42 = vld [vmem:[%s686_s1 + $0x100] sm:$0xff] }
  0x13   :  { %374 = vmatpush3.msra.mxu0 %v29_v31  ;;  %155 = vmatprep.mubr.f32.mxu0 %v85_v32  ;;  %v27_v39 = vld [vmem:[%s686_s1 + $0x28] sm:$0xff]  ;;  %v26_v43 = vld [vmem:[%s686_s1 + $0x20] sm:$0xff]  ;;  %v41_v44 = vld [vmem:[%s686_s1 + $0x98] sm:$0xff] }
  0x14   :  { %375 = vmatprep.subr.mxu0 %v44_v33  ;;  %420 = vmatpush3.msra.mxu1 %v56_v35  ;;  %v25_v45 = vld [vmem:[%s686_s1 + $0x18] sm:$0xff]  ;;  %v238_v46 = vld [vmem:[%s688_s3 + $0x30] sm:$0x3]  ;;  %v39_v49 = vld [vmem:[%s686_s1 + $0x88] sm:$0xff] }
  0x15   :  { %376 = vmatpush3.msra.mxu0 %v28_v36  ;;  %421 = vmatprep.subr.mxu1 %v476_v4  ;;  %v40_v47 = vld [vmem:[%s686_s1 + $0x90] sm:$0xff]  ;;  %v23_v50 = vld [vmem:[%s686_s1 + $0x8] sm:$0xff]  ;;  %v38_v51 = vld [vmem:[%s686_s1 + $0x80] sm:$0xff] }
  0x16   :  { %377 = vmatprep.subr.mxu0 %v43_v37  ;;  %422 = vmatpush3.msra.mxu1 %v55_v38  ;;  %v24_v48 = vld [vmem:[%s686_s1 + $0x10] sm:$0xff]  ;;  %v22_v52 = vld [vmem:[%s686_s1] sm:$0xff]  ;;  %v237_v53 = vld [vmem:[%s688_s3 + $0x28] sm:$0xff] }
  0x17   :  { %378 = vmatpush3.msra.mxu0 %v27_v39  ;;  %423 = vmatprep.subr.mxu1 %v476_v4  ;;  %v236_v54 = vld [vmem:[%s688_s3 + $0x20] sm:$0xff]  ;;  %v235_v55 = vld [vmem:[%s688_s3 + $0x18] sm:$0xff]  ;;  %v234_v56 = vld [vmem:[%s688_s3 + $0x10] sm:$0xff] }
  0x18   :  { %379 = vmatprep.subr.mxu0 %v42_v40  ;;  %424 = vmatpush3.msra.mxu1 %v54_v42  ;;  %v233_v57 = vld [vmem:[%s688_s3 + $0x8] sm:$0xff]  ;;  %v232_v58 = vld [vmem:[%s688_s3] sm:$0xff] }
  0x19   :  { %380 = vmatpush3.msra.mxu0 %v26_v43  ;;  %426 = vmatmul.mubr.msk.f32.vlgmr.msra.gmra.mxu1 %vm88_vm1, %v84_v41  ;;  %v352_v63 = vld [vmem:[%s687_s2] ss:$0 sm:$0xff]  ;;  %s479_s2 = smov [#allocation2]  }
  0x1a   :  { %381 = vmatprep.subr.mxu0 %v41_v44  ;;  %428 = vmatprep.subr.mxu1 %v476_v4  ;;  %s344_s3 = sshll.u32 %s479_s2, 4  ;;  %s345_s3 = int_to_ptr.vmem [resolvable:$true] %s344_s3 }
  0x1b   :  { %382 = vmatpush3.msra.mxu0 %v25_v45  ;;  %429 = vmatpush3.msk.msra.mxu1 %vm250_vm2, %v238_v46  ;;  %p459_p1 = scmp.lt.s32.totalorder %s345_s3, %s345_s3 }
  0x1c   :  { %383 = vmatprep.subr.mxu0 %v40_v47  ;;  %430 = vmatprep.subr.mxu1 %v476_v4 }
  0x1d   :  { %384 = vmatpush3.msra.mxu0 %v24_v48  ;;  %442 = vmatprep.mubr.msk.f32.mxu1 %vm478_vm0, %v476_v4 }
  0x1e   :  { %385 = vmatprep.subr.mxu0 %v39_v49  ;;  %431 = vmatpush3.msra.mxu1 %v237_v53 }
  0x1f   :  { %386 = vmatpush3.msra.mxu0 %v23_v50  ;;  %432 = vmatprep.subr.mxu1 %v476_v4 }
  0x20   :  { %387 = vmatprep.subr.mxu0 %v38_v51  ;;  %433 = vmatpush3.msra.mxu1 %v236_v54 }
  0x21   :  { %388 = vmatpush3.msra.mxu0 %v22_v52  ;;  %434 = vmatprep.subr.mxu1 %v476_v4 }
  0x22   :  { %156 = vmatmul.mubr.f32.vlgmr.msra.gmra.mxu0 %v77_v29  ;;  %435 = vmatpush3.msra.mxu1 %v235_v55 }
  0x23   :  { %436 = vmatprep.subr.mxu1 %v476_v4 }
  0x24   :  { %437 = vmatpush3.msra.mxu1 %v234_v56 }
  0x25   :  { %438 = vmatprep.subr.mxu1 %v476_v4 }
  0x26   :  { %439 = vmatpush3.msra.mxu1 %v233_v57 }
  0x27   :  { %440 = vmatprep.subr.mxu1 %v476_v4  ;;  %v354_v4 = vld [vmem:[%s689_s4] ss:$0 sm:$0xff]  ;;  %s454_s4 = scalar_lea.vmem %s345_s3, 32 }
  0x28   :  { %441 = vmatpush3.msra.mxu1 %v232_v58  ;;  %p455_p0 = scmp.ne.s32.totalorder %s345_s3, %s454_s4  ;;  %p460_p2 = scmp.lt.s32.totalorder %s454_s4, %s454_s4 }
  0x2a   :  { %p461_p3 = por %p460_p2, %p459_p1 }
  0x2c   :  { %p462_p4 = pnand %p461_p3, %p455_p0 }
  0xd9   :  { %v227_v59 = vpop.f32.mrf.mxu1 }
  0xdb   :  { %v427_v60 = vpop.f32.mrf.mxu1 }
  0xe2   :  { %v389_v61 = vpop.f32.mrf.mxu0 }
  0xe4   :  { %v390_v62 = vpop.f32.mrf.mxu0 }
  0xe5   :  { %v391_v0 = vadd.f32 %v390_v62, %v389_v61 }
  0xe7   :  { %v158_v1 = vadd.f32 %v391_v0, %v352_v63 }
  0xe9   :  { %v228_v2 = vadd.f32 %v227_v59, %v158_v1 }
  0xeb   :  { %v231_v3 = vmax.f32 %v228_v2, 0.0 }
  0xed   :  { %443 = vmatmul.mubr.msk.f32.vlgmr.msra.gmra.mxu1 %vm246_vm3, %v231_v3 }
 0x1ad   :  { %v320_v5 = vpop.f32.mrf.mxu1 }
 0x1ae   :  { %v321_v6 = vadd.f32 %v354_v4, %v320_v5 }
 0x1af   :  { %v444_v7 = vpop.f32.mrf.mxu1 }
 0x1b0   :  { %v325_v8 = vsel %vm324_vm4, %v321_v6, -inf }
 0x1b1   :  { %326 = vmax.xlane.f32.xlu0 %v325_v8 }
 0x23a   :  { %v327_v9 = vpop.xlane.xlu0 %326 }
 0x23b   :  { %v328_v10 = vsub.f32 %v321_v6, %v327_v9 }
 0x23d   :  { %v329_v11 = vmul.f32 1.442695, %v328_v10 }
 0x23f   :  { %450 = vpow2.f32 %v329_v11 }
 0x24c   :  { %v451_v12 = vpop.eup %450 }
 0x24d   :  { %v331_v13 = vsel %vm324_vm4, %v451_v12, 0.0 }
 0x24e   :  { %332 = vadd.xlane.f32.xlu0 %v331_v13 }
 0x2d7   :  { %v333_v14 = vpop.xlane.xlu0 %332 }
 0x2d8   :  { %452 = vlog2.f32 %v333_v14 }
 0x2e5   :  { %v453_v15 = vpop.eup %452 }
 0x2e6   :  { %v335_v16 = vmul.f32 0.6931472, %v453_v15 }
 0x2e8   :  { %v336_v17 = vsub.f32 %v328_v10, %v335_v16 }
 0x2ea   :  { %337 = vst.msk [vmem:[#allocation2] sm:$0x3] %vm324_vm4, %v336_v17 }
 0x2eb   :  { %465 = shalt.err (!%p462_p4)
}
 0x2ec   :  { %347 = dma.vmem_to_hbm [thread:$0]  %s345_s3, 32, %s690_s5, [#allocation3]  }
 0x2ed   :  { %474 = dma.done.wait [#allocation3], 32  }
 0x2ee   :  { %475 = vsyncadd [#allocation3], 4294967264 }
 0x2ef   :  { %351 = vsyncpa [#allocation3], 1 }

</bundles_post_ra>
